<compile_context>
chip_gen: v7x
topology: tpu7x:2x2x1
jax: 0.10.0
libtpu: 0.0.40
codegen_flags: <defaults>
</compile_context>

<pallas_src>
import functools
import math

import jax
import jax.numpy as jnp
from jax import lax
from jax.experimental import pallas as pl
from jax.experimental.pallas import tpu as pltpu


def _attn_kernel(x_ref, w_ref, b_ref, o_ref, *, num_heads, head_dim, out_channels):
    # x_ref: (1, C, S)    channel-major tokens, VMEM
    # w_ref: (3*OUT, C)   fused [Wq*scale; Wk; Wv] in torch (out, in) layout
    # b_ref: (3*OUT, 1)   fused [bq*scale; bk; bv]
    # o_ref: (1, OUT, S)  channel-major output
    x = x_ref[0]                                                      # (C, S)

    # Fused QKV projection: one MXU matmul instead of three.
    qkv = jnp.dot(w_ref[...], x, preferred_element_type=jnp.float32) + b_ref[...]

    outs = []
    for h in range(num_heads):                      # static, small head count
        q0 = h * head_dim
        k0 = out_channels + h * head_dim
        v0 = 2 * out_channels + h * head_dim
        qh = qkv[q0:q0 + head_dim, :]               # (hd, S) sublane-aligned
        kh = qkv[k0:k0 + head_dim, :]               # (hd, S)
        vh = qkv[v0:v0 + head_dim, :]               # (hd, S)

        # s[q, k] = sum_d qh[d, q] * kh[d, k]   (1/sqrt(hd) already folded in)
        s = lax.dot_general(qh, kh, (((0,), (0,)), ((), ())),
                            preferred_element_type=jnp.float32)       # (S, S)
        s = s - jnp.max(s, axis=-1, keepdims=True)
        p = jnp.exp(s)
        p = p * pl.reciprocal(jnp.sum(p, axis=-1, keepdims=True), approx=True)

        # out[d, q] = sum_k vh[d, k] * p[q, k]
        outs.append(lax.dot_general(vh, p, (((1,), (1,)), ((), ())),
                                    preferred_element_type=jnp.float32))  # (hd, S)

    # Single lane-dense, full-width store (sublane-stacked, unmasked when
    # S is a multiple of 128).
    o_ref[0] = jnp.concatenate(outs, axis=0).astype(o_ref.dtype)


@functools.partial(jax.jit, static_argnames=("num_heads",))
def adaptive_block_self_attention(x_nchw, params, *, num_heads):
    """x_nchw: (B, C, H, W) f32. params: torch-layout wq/wk/wv (OUT, C), bq/bk/bv (OUT,)."""
    B, C, H, W = x_nchw.shape
    S = H * W
    OUT = params["wq"].shape[0]
    assert OUT % num_heads == 0
    head_dim = OUT // num_heads
    # the final .view(B, H*W, C) in the PyTorch module requires OUT == C
    assert OUT == C

    # Fold the 1/sqrt(head_dim) scale into the Q projection and fuse the three
    # projections into one weight / bias (trace-time, free).
    scale = 1.0 / math.sqrt(head_dim)
    w_qkv = jnp.concatenate(
        [params["wq"] * scale, params["wk"], params["wv"]], axis=0)      # (3*OUT, C)
    b_qkv = jnp.concatenate(
        [params["bq"] * scale, params["bk"], params["bv"]], axis=0
    ).reshape(3 * OUT, 1)                                                # (3*OUT, 1)

    # NCHW -> (B, C, S): a free reshape — no wrapper transposes.
    x_bcs = x_nchw.reshape(B, C, S)

    kernel = functools.partial(_attn_kernel, num_heads=num_heads,
                               head_dim=head_dim, out_channels=OUT)

    flops_per_b = 2 * (3 * OUT) * C * S + num_heads * (2 * 2 * head_dim * S * S)
    cost = pl.CostEstimate(
        flops=B * flops_per_b,
        transcendentals=B * num_heads * S * S,
        bytes_accessed=4 * (x_bcs.size + w_qkv.size + b_qkv.size + B * OUT * S),
    )

    out_bcs = pl.pallas_call(
        kernel,
        out_shape=jax.ShapeDtypeStruct((B, OUT, S), x_bcs.dtype),
        grid_spec=pltpu.PrefetchScalarGridSpec(
            num_scalar_prefetch=0,
            grid=(B,),
            in_specs=[
                pl.BlockSpec((1, C, S), lambda b: (b, 0, 0)),        # x
                pl.BlockSpec((3 * OUT, C), lambda b: (0, 0)),        # fused W (resident)
                pl.BlockSpec((3 * OUT, 1), lambda b: (0, 0)),        # fused b (resident)
            ],
            out_specs=pl.BlockSpec((1, OUT, S), lambda b: (b, 0, 0)),
        ),
        compiler_params=pltpu.CompilerParams(
            dimension_semantics=("parallel",)),   # v7x: batch fans over both TCs
        cost_estimate=cost,
    )(x_bcs, w_qkv, b_qkv)

    # (B, C, S) -> NCHW: free reshape.
    return out_bcs.reshape(B, OUT, H, W)


def _reference(x_nchw, params, *, num_heads):
    """Pure-JAX reference mirroring the PyTorch forward (torch weight layout)."""
    B, C, H, W = x_nchw.shape
    S = H * W
    OUT = params["wq"].shape[0]
    hd = OUT // num_heads
    x = jnp.transpose(x_nchw.reshape(B, C, S), (0, 2, 1))          # (B, S, C)
    q = x @ params["wq"].T + params["bq"]
    k = x @ params["wk"].T + params["bk"]
    v = x @ params["wv"].T + params["bv"]
    q = q.reshape(B, S, num_heads, hd).transpose(0, 2, 1, 3)
    k = k.reshape(B, S, num_heads, hd).transpose(0, 2, 1, 3)
    v = v.reshape(B, S, num_heads, hd).transpose(0, 2, 1, 3)
    attn = jnp.einsum("bhqd,bhkd->bhqk", q, k) / math.sqrt(hd)
    attn = jax.nn.softmax(attn, axis=-1)
    out = jnp.einsum("bhqk,bhkd->bhqd", attn, v)
    out = out.transpose(0, 2, 1, 3).reshape(B, S, OUT)
    return jnp.transpose(out, (0, 2, 1)).reshape(B, C, H, W)


if __name__ == "__main__":
    # Config (out_channels == in_channels is required by the PyTorch view()).
    in_channels = 32
    out_channels = 32
    num_heads = 4              # head_dim = 8 -> sublane-aligned head slices
    B, H, W = 2, 16, 16        # S = 256 -> lane-dense (multiple of 128) stores

    key = jax.random.PRNGKey(0)
    kx, kq, kk, kv, kbq, kbk, kbv = jax.random.split(key, 7)

    x = jax.random.normal(kx, (B, in_channels, H, W), dtype=jnp.float32)

    # Deterministic parameter init in torch.nn.Linear layout: W (out, in), b (out,)
    # so that y = x @ W.T + b.
    std = 1.0 / math.sqrt(in_channels)
    params = {
        "wq": jax.random.uniform(kq, (out_channels, in_channels), jnp.float32, -std, std),
        "wk": jax.random.uniform(kk, (out_channels, in_channels), jnp.float32, -std, std),
        "wv": jax.random.uniform(kv, (out_channels, in_channels), jnp.float32, -std, std),
        "bq": jax.random.uniform(kbq, (out_channels,), jnp.float32, -std, std),
        "bk": jax.random.uniform(kbk, (out_channels,), jnp.float32, -std, std),
        "bv": jax.random.uniform(kbv, (out_channels,), jnp.float32, -std, std),
    }

    out = adaptive_block_self_attention(x, params, num_heads=num_heads)
    out = jax.block_until_ready(out)

    ref = _reference(x, params, num_heads=num_heads)
    assert out.shape == (B, in_channels, H, W)
    # Tolerance loosened slightly (2e-3) for the EUP approximate reciprocal
    # (~2^-12 relative error) used in the softmax normalization.
    assert jnp.allclose(out, ref, atol=2e-3, rtol=2e-3), "mismatch vs reference"

    print("KERNEL_OK")
</pallas_src>

<mosaic_0001>
module attributes {stable_mosaic.version = 11 : i64} {
  func.func @_attn_kernel(%arg0: i32, %arg1: memref<1x32x256xf32, #tpu.memory_space<vmem>>, %arg2: memref<96x32xf32, #tpu.memory_space<vmem>>, %arg3: memref<96x1xf32, #tpu.memory_space<vmem>>, %arg4: memref<1x32x256xf32, #tpu.memory_space<vmem>>) attributes {dimension_semantics = [#tpu.dimension_semantics<parallel>], iteration_bounds = array<i64: 2>, scalar_prefetch = 0 : i64, scratch_operands = 0 : i64, tpu.core_type = #tpu.core_type<tc>, window_params = [{transform_indices = @transform_0, window_bounds = array<i64: 1, 32, 256>}, {pipeline_mode = #tpu.pipeline_mode<synchronous>, transform_indices = @transform_1, window_bounds = array<i64: 96, 32>}, {pipeline_mode = #tpu.pipeline_mode<synchronous>, transform_indices = @transform_2, window_bounds = array<i64: 96, 1>}, {transform_indices = @transform_3, window_bounds = array<i64: 1, 32, 256>}]} {
    %c0 = arith.constant 0 : index
    %c0_0 = arith.constant 0 : index
    %c0_1 = arith.constant 0 : index
    %0 = vector.load %arg1[%c0, %c0_0, %c0_1] : memref<1x32x256xf32, #tpu.memory_space<vmem>>, vector<1x32x256xf32>
    %1 = vector.shape_cast %0 : vector<1x32x256xf32> to vector<32x256xf32>
    %c0_2 = arith.constant 0 : index
    %c0_3 = arith.constant 0 : index
    %2 = vector.load %arg2[%c0_2, %c0_3] : memref<96x32xf32, #tpu.memory_space<vmem>>, vector<96x32xf32>
    %cst = arith.constant dense<0.000000e+00> : vector<96x256xf32>
    %3 = tpu.matmul %2, %1, %cst {dimension_numbers = #tpu.dot_dimension_numbers<[1], [0], [0], [1], [0, 0, 1, 1], [], []>} : vector<96x32xf32>, vector<32x256xf32>, vector<96x256xf32> -> vector<96x256xf32>
    %c0_4 = arith.constant 0 : index
    %c0_5 = arith.constant 0 : index
    %4 = vector.load %arg3[%c0_4, %c0_5] : memref<96x1xf32, #tpu.memory_space<vmem>>, vector<96x1xf32>
    %5 = vector.broadcast %4 : vector<96x1xf32> to vector<96x256xf32>
    %6 = arith.addf %3, %5 : vector<96x256xf32>
    %7 = vector.extract_strided_slice %6 {offsets = [0, 0], sizes = [8, 256], strides = [1, 1]} : vector<96x256xf32> to vector<8x256xf32>
    %8 = vector.extract_strided_slice %6 {offsets = [32, 0], sizes = [8, 256], strides = [1, 1]} : vector<96x256xf32> to vector<8x256xf32>
    %9 = vector.extract_strided_slice %6 {offsets = [64, 0], sizes = [8, 256], strides = [1, 1]} : vector<96x256xf32> to vector<8x256xf32>
    %cst_6 = arith.constant dense<0.000000e+00> : vector<256x256xf32>
    %10 = tpu.matmul %7, %8, %cst_6 {dimension_numbers = #tpu.dot_dimension_numbers<[0], [0], [1], [1], [0, 1, 1, 1], [], []>} : vector<8x256xf32>, vector<8x256xf32>, vector<256x256xf32> -> vector<256x256xf32>
    %cst_7 = arith.constant dense<0xFF800000> : vector<256xf32>
    %11 = vector.multi_reduction <maximumf>, %10, %cst_7 [1] : vector<256x256xf32> to vector<256xf32>
    %12 = vector.shape_cast %11 : vector<256xf32> to vector<256x1xf32>
    %13 = vector.broadcast %12 : vector<256x1xf32> to vector<256x256xf32>
    %14 = arith.subf %10, %13 : vector<256x256xf32>
    %15 = math.exp %14 : vector<256x256xf32>
    %cst_8 = arith.constant dense<0.000000e+00> : vector<256xf32>
    %16 = vector.multi_reduction <add>, %15, %cst_8 [1] : vector<256x256xf32> to vector<256xf32>
    %17 = vector.shape_cast %16 : vector<256xf32> to vector<256x1xf32>
    %18 = tpu.reciprocal %17 {approx = true} : vector<256x1xf32> -> vector<256x1xf32>
    %19 = vector.broadcast %18 : vector<256x1xf32> to vector<256x256xf32>
    %20 = arith.mulf %15, %19 : vector<256x256xf32>
    %cst_9 = arith.constant dense<0.000000e+00> : vector<8x256xf32>
    %21 = tpu.matmul %9, %20, %cst_9 {dimension_numbers = #tpu.dot_dimension_numbers<[1], [1], [0], [0], [0, 0, 1, 0], [], []>} : vector<8x256xf32>, vector<256x256xf32>, vector<8x256xf32> -> vector<8x256xf32>
    %22 = vector.extract_strided_slice %6 {offsets = [8, 0], sizes = [8, 256], strides = [1, 1]} : vector<96x256xf32> to vector<8x256xf32>
    %23 = vector.extract_strided_slice %6 {offsets = [40, 0], sizes = [8, 256], strides = [1, 1]} : vector<96x256xf32> to vector<8x256xf32>
    %24 = vector.extract_strided_slice %6 {offsets = [72, 0], sizes = [8, 256], strides = [1, 1]} : vector<96x256xf32> to vector<8x256xf32>
    %cst_10 = arith.constant dense<0.000000e+00> : vector<256x256xf32>
    %25 = tpu.matmul %22, %23, %cst_10 {dimension_numbers = #tpu.dot_dimension_numbers<[0], [0], [1], [1], [0, 1, 1, 1], [], []>} : vector<8x256xf32>, vector<8x256xf32>, vector<256x256xf32> -> vector<256x256xf32>
    %cst_11 = arith.constant dense<0xFF800000> : vector<256xf32>
    %26 = vector.multi_reduction <maximumf>, %25, %cst_11 [1] : vector<256x256xf32> to vector<256xf32>
    %27 = vector.shape_cast %26 : vector<256xf32> to vector<256x1xf32>
    %28 = vector.broadcast %27 : vector<256x1xf32> to vector<256x256xf32>
    %29 = arith.subf %25, %28 : vector<256x256xf32>
    %30 = math.exp %29 : vector<256x256xf32>
    %cst_12 = arith.constant dense<0.000000e+00> : vector<256xf32>
    %31 = vector.multi_reduction <add>, %30, %cst_12 [1] : vector<256x256xf32> to vector<256xf32>
    %32 = vector.shape_cast %31 : vector<256xf32> to vector<256x1xf32>
    %33 = tpu.reciprocal %32 {approx = true} : vector<256x1xf32> -> vector<256x1xf32>
    %34 = vector.broadcast %33 : vector<256x1xf32> to vector<256x256xf32>
    %35 = arith.mulf %30, %34 : vector<256x256xf32>
    %cst_13 = arith.constant dense<0.000000e+00> : vector<8x256xf32>
    %36 = tpu.matmul %24, %35, %cst_13 {dimension_numbers = #tpu.dot_dimension_numbers<[1], [1], [0], [0], [0, 0, 1, 0], [], []>} : vector<8x256xf32>, vector<256x256xf32>, vector<8x256xf32> -> vector<8x256xf32>
    %37 = vector.extract_strided_slice %6 {offsets = [16, 0], sizes = [8, 256], strides = [1, 1]} : vector<96x256xf32> to vector<8x256xf32>
    %38 = vector.extract_strided_slice %6 {offsets = [48, 0], sizes = [8, 256], strides = [1, 1]} : vector<96x256xf32> to vector<8x256xf32>
    %39 = vector.extract_strided_slice %6 {offsets = [80, 0], sizes = [8, 256], strides = [1, 1]} : vector<96x256xf32> to vector<8x256xf32>
    %cst_14 = arith.constant dense<0.000000e+00> : vector<256x256xf32>
    %40 = tpu.matmul %37, %38, %cst_14 {dimension_numbers = #tpu.dot_dimension_numbers<[0], [0], [1], [1], [0, 1, 1, 1], [], []>} : vector<8x256xf32>, vector<8x256xf32>, vector<256x256xf32> -> vector<256x256xf32>
    %cst_15 = arith.constant dense<0xFF800000> : vector<256xf32>
    %41 = vector.multi_reduction <maximumf>, %40, %cst_15 [1] : vector<256x256xf32> to vector<256xf32>
    %42 = vector.shape_cast %41 : vector<256xf32> to vector<256x1xf32>
    %43 = vector.broadcast %42 : vector<256x1xf32> to vector<256x256xf32>
    %44 = arith.subf %40, %43 : vector<256x256xf32>
    %45 = math.exp %44 : vector<256x256xf32>
    %cst_16 = arith.constant dense<0.000000e+00> : vector<256xf32>
    %46 = vector.multi_reduction <add>, %45, %cst_16 [1] : vector<256x256xf32> to vector<256xf32>
    %47 = vector.shape_cast %46 : vector<256xf32> to vector<256x1xf32>
    %48 = tpu.reciprocal %47 {approx = true} : vector<256x1xf32> -> vector<256x1xf32>
    %49 = vector.broadcast %48 : vector<256x1xf32> to vector<256x256xf32>
    %50 = arith.mulf %45, %49 : vector<256x256xf32>
    %cst_17 = arith.constant dense<0.000000e+00> : vector<8x256xf32>
    %51 = tpu.matmul %39, %50, %cst_17 {dimension_numbers = #tpu.dot_dimension_numbers<[1], [1], [0], [0], [0, 0, 1, 0], [], []>} : vector<8x256xf32>, vector<256x256xf32>, vector<8x256xf32> -> vector<8x256xf32>
    %52 = vector.extract_strided_slice %6 {offsets = [24, 0], sizes = [8, 256], strides = [1, 1]} : vector<96x256xf32> to vector<8x256xf32>
    %53 = vector.extract_strided_slice %6 {offsets = [56, 0], sizes = [8, 256], strides = [1, 1]} : vector<96x256xf32> to vector<8x256xf32>
    %54 = vector.extract_strided_slice %6 {offsets = [88, 0], sizes = [8, 256], strides = [1, 1]} : vector<96x256xf32> to vector<8x256xf32>
    %cst_18 = arith.constant dense<0.000000e+00> : vector<256x256xf32>
    %55 = tpu.matmul %52, %53, %cst_18 {dimension_numbers = #tpu.dot_dimension_numbers<[0], [0], [1], [1], [0, 1, 1, 1], [], []>} : vector<8x256xf32>, vector<8x256xf32>, vector<256x256xf32> -> vector<256x256xf32>
    %cst_19 = arith.constant dense<0xFF800000> : vector<256xf32>
    %56 = vector.multi_reduction <maximumf>, %55, %cst_19 [1] : vector<256x256xf32> to vector<256xf32>
    %57 = vector.shape_cast %56 : vector<256xf32> to vector<256x1xf32>
    %58 = vector.broadcast %57 : vector<256x1xf32> to vector<256x256xf32>
    %59 = arith.subf %55, %58 : vector<256x256xf32>
    %60 = math.exp %59 : vector<256x256xf32>
    %cst_20 = arith.constant dense<0.000000e+00> : vector<256xf32>
    %61 = vector.multi_reduction <add>, %60, %cst_20 [1] : vector<256x256xf32> to vector<256xf32>
    %62 = vector.shape_cast %61 : vector<256xf32> to vector<256x1xf32>
    %63 = tpu.reciprocal %62 {approx = true} : vector<256x1xf32> -> vector<256x1xf32>
    %64 = vector.broadcast %63 : vector<256x1xf32> to vector<256x256xf32>
    %65 = arith.mulf %60, %64 : vector<256x256xf32>
    %cst_21 = arith.constant dense<0.000000e+00> : vector<8x256xf32>
    %66 = tpu.matmul %54, %65, %cst_21 {dimension_numbers = #tpu.dot_dimension_numbers<[1], [1], [0], [0], [0, 0, 1, 0], [], []>} : vector<8x256xf32>, vector<256x256xf32>, vector<8x256xf32> -> vector<8x256xf32>
    %67 = tpu.concatenate %21, %36, %51, %66 in 0 : vector<8x256xf32>, vector<8x256xf32>, vector<8x256xf32>, vector<8x256xf32> -> vector<32x256xf32>
    %c0_22 = arith.constant 0 : index
    %c0_23 = arith.constant 0 : index
    %c0_24 = arith.constant 0 : index
    %68 = vector.load %arg4[%c0_22, %c0_23, %c0_24] : memref<1x32x256xf32, #tpu.memory_space<vmem>>, vector<1x32x256xf32>
    %69 = vector.shape_cast %68 : vector<1x32x256xf32> to vector<32x256xf32>
    %70 = vector.shape_cast %67 : vector<32x256xf32> to vector<1x32x256xf32>
    tpu.vector_store %arg4[%c0_22, %c0_23, %c0_24], %70 {strides = array<i32>} : memref<1x32x256xf32, #tpu.memory_space<vmem>>, vector<1x32x256xf32>,
    return
  }
  func.func @transform_0(%arg0: i32) -> (i32, i32, i32) {
    %c0_i32 = arith.constant 0 : i32
    %c0_i32_0 = arith.constant 0 : i32
    %c0_i32_1 = arith.constant 0 : i32
    return %arg0, %c0_i32, %c0_i32_0 : i32, i32, i32
  }
  func.func @transform_1(%arg0: i32) -> (i32, i32) {
    %c0_i32 = arith.constant 0 : i32
    %c0_i32_0 = arith.constant 0 : i32
    %c0_i32_1 = arith.constant 0 : i32
    return %c0_i32, %c0_i32_0 : i32, i32
  }
  func.func @transform_2(%arg0: i32) -> (i32, i32) {
    %c0_i32 = arith.constant 0 : i32
    %c0_i32_0 = arith.constant 0 : i32
    %c0_i32_1 = arith.constant 0 : i32
    return %c0_i32, %c0_i32_0 : i32, i32
  }
  func.func @transform_3(%arg0: i32) -> (i32, i32, i32) {
    %c0_i32 = arith.constant 0 : i32
    %c0_i32_0 = arith.constant 0 : i32
    %c0_i32_1 = arith.constant 0 : i32
    return %arg0, %c0_i32, %c0_i32_0 : i32, i32, i32
  }
}

</mosaic_0001>

<bundles_post_ra>
// kernel: adaptive_block_self_attention.1
= control target key start
LH: loop header
LB: loop body
LE: loop exit
PB: predicated region body
PF: predicated region fallthrough
CT: control target
= control target key end

     0   :  { %s5604_s12 = smov 0   ;;  %s8098_s0 = inlined_call_operand.vmem [shape: f32[2,32,256], index: 0, kind: input, shape index: {}]   ;;  %s8099_s1 = inlined_call_operand.vmem [shape: f32[96,32], index: 1, kind: input, shape index: {}]   ;;  %s8100_s2 = inlined_call_operand.vmem [shape: f32[96,1], index: 2, kind: input, shape index: {}]   ;;  %s8101_s3 = inlined_call_operand.vmem [shape: f32[2,32,256], index: 3, kind: output, shape index: {}]  }
   0x1 LB: > { %s4373_s13 = sadd.s32 4294967295, %s5580_s12   ;;  %p4377_p0 = scmp.ge.s32.totalorder %s5580_s12, 1  ;;  %s5580_s12 = sphi %s5604_s12, %s13_s12  }
   0x2   : > { %p137_p1 = scmp.lt.s32.totalorder %s5580_s12, 3 }
   0x4   : > { %p138_p2 = pnand %p4377_p0, %p137_p1 }
   0x6   : > { %141 = sbr.rel (%p138_p2) target bundleno = 1944 (0x798), region = 32 }
   0xd   : > { %p161_p3 = scmp.lt.s32.totalorder %s4373_s13, 1  ;;  %v8102_v0 = vmov 0.0   ;;  %v191_v1 = vld [vmem:[%s8100_s2] sm:$0xff]  ;;  %v5583_v2 = vmov 0   ;;  %v192_v4 = vld [vmem:[%s8100_s2 + $0x8] sm:$0xff]  ;;  %vm263_vm0 = vcmask 261120  }
   0xe   : > { %364 = vmatprep.mubr.f32.mxu0 %v8102_v0  ;;  %400 = vmatprep.mubr.f32.mxu1 %v8102_v0  ;;  %v195_v3 = vld [vmem:[%s8100_s2 + $0x20] sm:$0xff]  ;;  %v196_v5 = vld [vmem:[%s8100_s2 + $0x28] sm:$0xff]  ;;  %v181_v20 = vld [vmem:[%s8099_s1 + $0x10] sm:$0xff]  ;;  %vm501_vm1 = vcmask 64512  }
   0xf   : > { %s9090_s13 = smov (!%p161_p3, %s4373_s13), 1  ;;  %4804 = vset.pattern.permute.xlu0 %v5583_v2  ;;  %4805 = vset.pattern.permute.xlu1 %v5583_v2  ;;  %v179_v18 = vld [vmem:[%s8099_s1] sm:$0xff]  ;;  %v180_v19 = vld [vmem:[%s8099_s1 + $0x8] sm:$0xff]  ;;  %v182_v21 = vld [vmem:[%s8099_s1 + $0x18] sm:$0xff] }
  0x10   : > { %205 = vperm.xlu0 %4804, %v191_v1   ;;  %225 = vperm.xlu1 %4805, %v195_v3   ;;  %s4524_s18 = sshll.u32 %s9090_s13, 6  ;;  %v183_v22 = vld [vmem:[%s8099_s1 + $0x20] sm:$0xff]  ;;  %v184_v23 = vld [vmem:[%s8099_s1 + $0x28] sm:$0xff]  ;;  %v185_v24 = vld [vmem:[%s8099_s1 + $0x30] sm:$0xff] }
  0x11   : > { %s165_s25 = scalar_lea.vmem %s8098_s0, %s4524_s18  ;;  %v186_v25 = vld [vmem:[%s8099_s1 + $0x38] sm:$0xff]  ;;  %v187_v26 = vld [vmem:[%s8099_s1 + $0x40] sm:$0xff]  ;;  %v188_v27 = vld [vmem:[%s8099_s1 + $0x48] sm:$0xff]  ;;  %s7051_s15 = scalar_lea.vmem %s8101_s3, %s4524_s18 }
  0x12   : > { %v172_v6 = vld [vmem:[%s165_s25 + $0x8] sm:$0xff]  ;;  %v174_v7 = vld [vmem:[%s165_s25 + $0x18] sm:$0xff]  ;;  %v171_v8 = vld [vmem:[%s165_s25] sm:$0xff] }
  0x13   : > { %v4526_v9 = vpack.c.bf16 %v174_v7, %v172_v6  ;;  %v173_v10 = vld [vmem:[%s165_s25 + $0x10] sm:$0xff]  ;;  %v176_v11 = vld [vmem:[%s165_s25 + $0x28] sm:$0xff]  ;;  %v178_v12 = vld [vmem:[%s165_s25 + $0x38] sm:$0xff] }
  0x14   : > { %210 = vperm.xlu0 %4804, %v192_v4   ;;  %230 = vperm.xlu1 %4805, %v196_v5   ;;  %v4528_v13 = vpack.c.bf16 %v173_v10, %v171_v8  ;;  %v4530_v14 = vpack.c.bf16 %v178_v12, %v176_v11  ;;  %v175_v15 = vld [vmem:[%s165_s25 + $0x20] sm:$0xff]  ;;  %v177_v16 = vld [vmem:[%s165_s25 + $0x30] sm:$0xff]  ;;  %v190_v29 = vld [vmem:[%s8099_s1 + $0x58] sm:$0xff] }
  0x15   : > { %4527 = vmatprep.subr.bf16.mxu0 %v4526_v9  ;;  %4790 = vmatprep.subr.bf16.mxu1 %v4526_v9  ;;  %v4532_v17 = vpack.c.bf16 %v177_v16, %v175_v15  ;;  %v189_v28 = vld [vmem:[%s8099_s1 + $0x50] sm:$0xff]  ;;  %v199_v10 = vld [vmem:[%s8100_s2 + $0x40] sm:$0xff] }
  0x16   : > { %4529 = vmatpush1.bf16.msra.mxu0 %v4528_v13  ;;  %4792 = vmatpush1.bf16.msra.mxu1 %v4528_v13  ;;  %v193_v6 = vld [vmem:[%s8100_s2 + $0x10] sm:$0xff]  ;;  %v194_v13 = vld [vmem:[%s8100_s2 + $0x18] sm:$0xff] }
  0x17   : > { %4531 = vmatprep.subr.bf16.mxu0 %v4530_v14  ;;  %4791 = vmatprep.subr.bf16.mxu1 %v4530_v14 }
  0x1a   : > { %4533 = vmatpush1.bf16.msra.mxu0 %v4532_v17  ;;  %4793 = vmatpush1.bf16.msra.mxu1 %v4532_v17 }
  0x1d   : > { %4382 = vmatmul.mubr.msk.f32.vlgmr.msra.gmra.mrb[0].mxu0 %vm263_vm0, %v179_v18  ;;  %4388 = vmatmul.mubr.msk.f32.vlgmr.msra.gmra.mrb[0].mxu1 %vm263_vm0, %v185_v24 }
  0x1e   : > { %370 = vmatprep.mubr.f32.mxu0 %v8102_v0  ;;  %406 = vmatprep.mubr.f32.mxu1 %v8102_v0 }
  0x21   : > { %4383 = vmatmul.mubr.msk.f32.gmra.mrb[2].mxu0 %vm263_vm0, %v180_v19  ;;  %4389 = vmatmul.mubr.msk.f32.gmra.mrb[2].mxu1 %vm263_vm0, %v186_v25 }
  0x22   : > { %376 = vmatprep.mubr.f32.mxu0 %v8102_v0  ;;  %412 = vmatprep.mubr.f32.mxu1 %v8102_v0 }
  0x25   : > { %4384 = vmatmul.mubr.msk.f32.gmra.mrb[4].mxu0 %vm263_vm0, %v181_v20  ;;  %4390 = vmatmul.mubr.msk.f32.gmra.mrb[4].mxu1 %vm263_vm0, %v187_v26 }
  0x26   : > { %382 = vmatprep.mubr.f32.mxu0 %v8102_v0  ;;  %418 = vmatprep.mubr.f32.mxu1 %v8102_v0 }
  0x29   : > { %4385 = vmatmul.mubr.msk.f32.gmra.mrb[6].mxu0 %vm263_vm0, %v182_v21  ;;  %4391 = vmatmul.mubr.msk.f32.gmra.mrb[6].mxu1 %vm263_vm0, %v188_v27 }
  0x2a   : > { %388 = vmatprep.mubr.f32.mxu0 %v8102_v0  ;;  %424 = vmatprep.mubr.f32.mxu1 %v8102_v0 }
  0x2d   : > { %4386 = vmatmul.mubr.msk.f32.gmra.mrb[8].mxu0 %vm263_vm0, %v183_v22  ;;  %4392 = vmatmul.mubr.msk.f32.gmra.mrb[8].mxu1 %vm263_vm0, %v189_v28 }
  0x2e   : > { %394 = vmatprep.mubr.f32.mxu0 %v8102_v0  ;;  %430 = vmatprep.mubr.f32.mxu1 %v8102_v0 }
  0x31   : > { %4387 = vmatmul.mubr.msk.f32.gmra.mrb[10].mxu0 %vm263_vm0, %v184_v23  ;;  %4393 = vmatmul.mubr.msk.f32.gmra.mrb[10].mxu1 %vm263_vm0, %v190_v29 }
  0x32   : > { %1630 = vmatprep.mubr.f32.mxu0 %v8102_v0  ;;  %662 = vmatprep.mubr.f32.mxu1 %v8102_v0 }
  0x8f   : > { %v206_v30 = vpop.permute.xlu0 %205  ;;  %v226_v41 = vpop.permute.xlu1 %225 }
  0x93   : > { %v211_v34 = vpop.permute.xlu0 %210  ;;  %v231_v47 = vpop.permute.xlu1 %230 }
  0xf0   : > { %v366_v31 = vpop.f32.mrb[0].mxu0  ;;  %v5722_v2 = vpop.f32.mrb[0].mxu1 }
  0xf1   : > { %v367_v32 = vadd.f32 %v366_v31, %v206_v30  ;;  %v368_v33 = vpop.f32.mrb[1].mxu0  ;;  %8426 = vst [vmem:[#allocation6_spill] sm:$0xff] %v5722_v2  ;;  %v5726_v3 = vpop.f32.mrb[1].mxu1 }
  0xf2   : > { %v369_v52 = vadd.f32 %v368_v33, %v206_v30  ;;  %8427 = vst [vmem:[#allocation7_spill] sm:$0xff] %v5726_v3 }
  0xf3   : > { %437 = vxpose.xlu0.b32.start.end [1/1] (short) %v367_v32, 128 }
  0xf4   : > { %v372_v35 = vpop.f32.mrb[2].mxu0  ;;  %v5735_v7 = vpop.f32.mrb[2].mxu1 }
  0xf5   : > { %v373_v36 = vadd.f32 %v372_v35, %v211_v34  ;;  %v374_v37 = vpop.f32.mrb[3].mxu0  ;;  %8428 = vst [vmem:[#allocation8_spill] sm:$0xff] %v5735_v7  ;;  %v5742_v11 = vpop.f32.mrb[3].mxu1 }
  0xf6   : > { %v375_v53 = vadd.f32 %v374_v37, %v211_v34  ;;  %8429 = vst [vmem:[#allocation9_spill] sm:$0xff] %v5742_v11 }
  0xf7   : > { %1406 = vxpose.xlu1.b32.start.end [1/1] (short) %v373_v36, 128 }
  0xf8   : > { %v5694_v38 = vpop.f32.mrb[4].mxu0  ;;  %v5746_v12 = vpop.f32.mrb[4].mxu1 }
  0xf9   : > { %8422 = vst [vmem:[#allocation2_spill] sm:$0xff] %v5694_v38  ;;  %v5696_v39 = vpop.f32.mrb[5].mxu0  ;;  %8430 = vst [vmem:[#allocation10_spill] sm:$0xff] %v5746_v12  ;;  %v5751_v14 = vpop.f32.mrb[5].mxu1 }
  0xfa   : > { %8423 = vst [vmem:[#allocation3_spill] sm:$0xff] %v5696_v39 }
  0xfc   : > { %v5698_v40 = vpop.f32.mrb[6].mxu0  ;;  %v5756_v17 = vpop.f32.mrb[6].mxu1 }
  0xfd   : > { %8424 = vst [vmem:[#allocation4_spill] sm:$0xff] %v5698_v40  ;;  %v5700_v42 = vpop.f32.mrb[7].mxu0  ;;  %8431 = vst [vmem:[#allocation11_spill] sm:$0xff] %v5756_v17  ;;  %v5759_v18 = vpop.f32.mrb[7].mxu1 }
  0xfe   : > { %8425 = vst [vmem:[#allocation5_spill] sm:$0xff] %v5700_v42  ;;  %8432 = vst [vmem:[#allocation12_spill] sm:$0xff] %v5759_v18 }
 0x100   : > { %v390_v43 = vpop.f32.mrb[8].mxu0  ;;  %v5763_v21 = vpop.f32.mrb[8].mxu1 }
 0x101   : > { %v391_v44 = vadd.f32 %v390_v43, %v226_v41  ;;  %v392_v45 = vpop.f32.mrb[9].mxu0  ;;  %8433 = vst [vmem:[#allocation13_spill] sm:$0xff] %v5763_v21  ;;  %v5767_v22 = vpop.f32.mrb[9].mxu1 }
 0x102   : > { %v393_v46 = vadd.f32 %v392_v45, %v226_v41  ;;  %8434 = vst [vmem:[#allocation14_spill] sm:$0xff] %v5767_v22 }
 0x104   : > { %v396_v48 = vpop.f32.mrb[10].mxu0  ;;  %598 = vmatprep.subr.mxu1 %v393_v46  ;;  %v5771_v25 = vpop.f32.mrb[10].mxu1 }
 0x105   : > { %v397_v49 = vadd.f32 %v396_v48, %v231_v47  ;;  %v398_v50 = vpop.f32.mrb[11].mxu0  ;;  %599 = vmatpush1.msra.mxu1 %v391_v44  ;;  %8435 = vst [vmem:[#allocation15_spill] sm:$0xff] %v5771_v25  ;;  %v5775_v26 = vpop.f32.mrb[11].mxu1 }
 0x106   : > { %v399_v51 = vadd.f32 %v398_v50, %v231_v47  ;;  %8436 = vst [vmem:[#allocation16_spill] sm:$0xff] %v5775_v26 }
 0x108   : > { %1566 = vmatprep.subr.mxu0 %v399_v51 }
 0x109   : > { %1567 = vmatpush1.msra.mxu0 %v397_v49 }
 0x130   : > { %469 = vxpose.xlu0.b32.start.end [1/1] (short) %v369_v52, 128 }
 0x134   : > { %1438 = vxpose.xlu1.b32.start.end [1/1] (short) %v375_v53, 128 }
 0x173   : > { %v453_v54 = vpop.trf.xlu0 }
 0x174   : > { %4394 = vmatmul.mubr.msk.f32.vlgmr.msra.gmra.mrb[12].mxu1 %vm501_vm1, %v453_v54 }
 0x175   : > { %668 = vmatprep.mubr.f32.mxu1 %v8102_v0 }
 0x177   : > { %v1422_v55 = vpop.trf.xlu1  ;;  %v454_v56 = vpop.trf.xlu0 }
 0x178   : > { %4395 = vmatmul.mubr.msk.f32.gmra.mrb[14].mxu1 %vm501_vm1, %v454_v56  ;;  %4426 = vmatmul.mubr.msk.f32.vlgmr.msra.gmra.mrb[12].mxu0 %vm501_vm1, %v1422_v55 }
 0x179   : > { %1636 = vmatprep.mubr.f32.mxu0 %v8102_v0  ;;  %674 = vmatprep.mubr.f32.mxu1 %v8102_v0 }
 0x17b   : > { %v1423_v57 = vpop.trf.xlu1  ;;  %v455_v58 = vpop.trf.xlu0 }
 0x17c   : > { %4396 = vmatmul.mubr.msk.f32.gmra.mrb[16].mxu1 %vm501_vm1, %v455_v58  ;;  %4427 = vmatmul.mubr.msk.f32.gmra.mrb[14].mxu0 %vm501_vm1, %v1423_v57 }
 0x17d   : > { %1642 = vmatprep.mubr.f32.mxu0 %v8102_v0  ;;  %680 = vmatprep.mubr.f32.mxu1 %v8102_v0 }
 0x17f   : > { %v1424_v59 = vpop.trf.xlu1  ;;  %v456_v60 = vpop.trf.xlu0 }
 0x180   : > { %4397 = vmatmul.mubr.msk.f32.gmra.mrb[18].mxu1 %vm501_vm1, %v456_v60  ;;  %4428 = vmatmul.mubr.msk.f32.gmra.mrb[16].mxu0 %vm501_vm1, %v1424_v59 }
 0x181   : > { %1648 = vmatprep.mubr.f32.mxu0 %v8102_v0  ;;  %686 = vmatprep.mubr.f32.mxu1 %v8102_v0 }
 0x183   : > { %v1425_v61 = vpop.trf.xlu1  ;;  %v457_v62 = vpop.trf.xlu0 }
 0x184   : > { %4398 = vmatmul.mubr.msk.f32.gmra.mrb[20].mxu1 %vm501_vm1, %v457_v62  ;;  %4429 = vmatmul.mubr.msk.f32.gmra.mrb[18].mxu0 %vm501_vm1, %v1425_v61 }
 0x185   : > { %1654 = vmatprep.mubr.f32.mxu0 %v8102_v0  ;;  %692 = vmatprep.mubr.f32.mxu1 %v8102_v0 }
 0x187   : > { %v1426_v63 = vpop.trf.xlu1  ;;  %v458_v1 = vpop.trf.xlu0 }
 0x188   : > { %4399 = vmatmul.mubr.msk.f32.gmra.mrb[22].mxu1 %vm501_vm1, %v458_v1  ;;  %4430 = vmatmul.mubr.msk.f32.gmra.mrb[20].mxu0 %vm501_vm1, %v1426_v63 }
 0x189   : > { %1660 = vmatprep.mubr.f32.mxu0 %v8102_v0  ;;  %698 = vmatprep.mubr.f32.mxu1 %v8102_v0 }
 0x18b   : > { %v1427_v4 = vpop.trf.xlu1  ;;  %v459_v5 = vpop.trf.xlu0 }
 0x18c   : > { %4400 = vmatmul.mubr.msk.f32.gmra.mrb[24].mxu1 %vm501_vm1, %v459_v5  ;;  %4431 = vmatmul.mubr.msk.f32.gmra.mrb[22].mxu0 %vm501_vm1, %v1427_v4 }
 0x18d   : > { %1666 = vmatprep.mubr.f32.mxu0 %v8102_v0  ;;  %704 = vmatprep.mubr.f32.mxu1 %v8102_v0 }
 0x18e   : > { %215 = vperm.xlu1 %4805, %v193_v6  }
 0x18f   : > { %v1428_v8 = vpop.trf.xlu1  ;;  %v460_v9 = vpop.trf.xlu0 }
 0x190   : > { %4401 = vmatmul.mubr.msk.f32.gmra.mrb[26].mxu1 %vm501_vm1, %v460_v9  ;;  %4432 = vmatmul.mubr.msk.f32.gmra.mrb[24].mxu0 %vm501_vm1, %v1428_v8 }
 0x191   : > { %1672 = vmatprep.mubr.f32.mxu0 %v8102_v0  ;;  %710 = vmatprep.mubr.f32.mxu1 %v8102_v0 }
 0x192   : > { %245 = vperm.xlu1 %4805, %v199_v10  }
 0x193   : > { %v1429_v15 = vpop.trf.xlu1  ;;  %v461_v16 = vpop.trf.xlu0 }
 0x194   : > { %4402 = vmatmul.mubr.msk.f32.gmra.mrb[28].mxu1 %vm501_vm1, %v461_v16  ;;  %4433 = vmatmul.mubr.msk.f32.gmra.mrb[26].mxu0 %vm501_vm1, %v1429_v15 }
 0x195   : > { %220 = vperm.xlu0 %4804, %v194_v13   ;;  %1678 = vmatprep.mubr.f32.mxu0 %v8102_v0 }
 0x196   : > { %716 = vmatprep.mubr.f32.mxu1 %v8102_v0 }
 0x197   : > { %v1430_v19 = vpop.trf.xlu1  ;;  %v462_v20 = vpop.trf.xlu0 }
 0x198   : > { %4403 = vmatmul.mubr.msk.f32.gmra.mrb[30].mxu1 %vm501_vm1, %v462_v20  ;;  %4434 = vmatmul.mubr.msk.f32.gmra.mrb[28].mxu0 %vm501_vm1, %v1430_v19 }
 0x199   : > { %1684 = vmatprep.mubr.f32.mxu0 %v8102_v0  ;;  %722 = vmatprep.mubr.f32.mxu1 %v8102_v0 }
 0x19b   : > { %v1431_v23 = vpop.trf.xlu1  ;;  %v463_v24 = vpop.trf.xlu0 }
 0x19c   : > { %4404 = vmatmul.mubr.msk.f32.gmra.mrb[32].mxu1 %vm501_vm1, %v463_v24  ;;  %4435 = vmatmul.mubr.msk.f32.gmra.mrb[30].mxu0 %vm501_vm1, %v1431_v23 }
 0x19d   : > { %1690 = vmatprep.mubr.f32.mxu0 %v8102_v0  ;;  %728 = vmatprep.mubr.f32.mxu1 %v8102_v0 }
 0x19f   : > { %v1432_v27 = vpop.trf.xlu1  ;;  %v464_v28 = vpop.trf.xlu0 }
 0x1a0   : > { %4405 = vmatmul.mubr.msk.f32.gmra.mrb[34].mxu1 %vm501_vm1, %v464_v28  ;;  %4436 = vmatmul.mubr.msk.f32.gmra.mrb[32].mxu0 %vm501_vm1, %v1432_v27 }
 0x1a1   : > { %1696 = vmatprep.mubr.f32.mxu0 %v8102_v0  ;;  %734 = vmatprep.mubr.f32.mxu1 %v8102_v0 }
 0x1a3   : > { %v1433_v29 = vpop.trf.xlu1  ;;  %v465_v30 = vpop.trf.xlu0 }
 0x1a4   : > { %4406 = vmatmul.mubr.msk.f32.gmra.mrb[36].mxu1 %vm501_vm1, %v465_v30  ;;  %4437 = vmatmul.mubr.msk.f32.gmra.mrb[34].mxu0 %vm501_vm1, %v1433_v29 }
 0x1a5   : > { %1702 = vmatprep.mubr.f32.mxu0 %v8102_v0  ;;  %740 = vmatprep.mubr.f32.mxu1 %v8102_v0 }
 0x1a7   : > { %v1434_v31 = vpop.trf.xlu1  ;;  %v466_v32 = vpop.trf.xlu0 }
 0x1a8   : > { %4407 = vmatmul.mubr.msk.f32.gmra.mrb[38].mxu1 %vm501_vm1, %v466_v32  ;;  %4438 = vmatmul.mubr.msk.f32.gmra.mrb[36].mxu0 %vm501_vm1, %v1434_v31 }
 0x1a9   : > { %1708 = vmatprep.mubr.f32.mxu0 %v8102_v0  ;;  %746 = vmatprep.mubr.f32.mxu1 %v8102_v0 }
 0x1ab   : > { %v1435_v33 = vpop.trf.xlu1  ;;  %v467_v34 = vpop.trf.xlu0 }
 0x1ac   : > { %4408 = vmatmul.mubr.msk.f32.gmra.mrb[40].mxu1 %vm501_vm1, %v467_v34  ;;  %4439 = vmatmul.mubr.msk.f32.gmra.mrb[38].mxu0 %vm501_vm1, %v1435_v33 }
 0x1ad   : > { %1714 = vmatprep.mubr.f32.mxu0 %v8102_v0  ;;  %752 = vmatprep.mubr.f32.mxu1 %v8102_v0 }
 0x1af   : > { %v1436_v35 = vpop.trf.xlu1  ;;  %v468_v36 = vpop.trf.xlu0 }
 0x1b0   : > { %4409 = vmatmul.mubr.msk.f32.gmra.mrb[42].mxu1 %vm501_vm1, %v468_v36  ;;  %4440 = vmatmul.mubr.msk.f32.gmra.mrb[40].mxu0 %vm501_vm1, %v1436_v35 }
 0x1b1   : > { %1720 = vmatprep.mubr.f32.mxu0 %v8102_v0  ;;  %758 = vmatprep.mubr.f32.mxu1 %v8102_v0 }
 0x1b3   : > { %v1437_v37 = vpop.trf.xlu1  ;;  %v485_v41 = vpop.trf.xlu0 }
 0x1b4   : > { %4410 = vmatmul.mubr.msk.f32.gmra.mrb[44].mxu1 %vm501_vm1, %v485_v41  ;;  %4441 = vmatmul.mubr.msk.f32.gmra.mrb[42].mxu0 %vm501_vm1, %v1437_v37 }
 0x1b5   : > { %1726 = vmatprep.mubr.f32.mxu0 %v8102_v0  ;;  %764 = vmatprep.mubr.f32.mxu1 %v8102_v0 }
 0x1b7   : > { %v1454_v43 = vpop.trf.xlu1  ;;  %v486_v44 = vpop.trf.xlu0 }
 0x1b8   : > { %4411 = vmatmul.mubr.msk.f32.gmra.mrb[46].mxu1 %vm501_vm1, %v486_v44  ;;  %4442 = vmatmul.mubr.msk.f32.gmra.mrb[44].mxu0 %vm501_vm1, %v1454_v43 }
 0x1b9   : > { %1732 = vmatprep.mubr.f32.mxu0 %v8102_v0  ;;  %770 = vmatprep.mubr.f32.mxu1 %v8102_v0 }
 0x1bb   : > { %v1455_v45 = vpop.trf.xlu1  ;;  %v487_v46 = vpop.trf.xlu0 }
 0x1bc   : > { %4412 = vmatmul.mubr.msk.f32.gmra.mrb[48].mxu1 %vm501_vm1, %v487_v46  ;;  %4443 = vmatmul.mubr.msk.f32.gmra.mrb[46].mxu0 %vm501_vm1, %v1455_v45 }
 0x1bd   : > { %1738 = vmatprep.mubr.f32.mxu0 %v8102_v0  ;;  %776 = vmatprep.mubr.f32.mxu1 %v8102_v0 }
 0x1bf   : > { %v1456_v47 = vpop.trf.xlu1  ;;  %v488_v48 = vpop.trf.xlu0 }
 0x1c0   : > { %4413 = vmatmul.mubr.msk.f32.gmra.mrb[50].mxu1 %vm501_vm1, %v488_v48  ;;  %4444 = vmatmul.mubr.msk.f32.gmra.mrb[48].mxu0 %vm501_vm1, %v1456_v47 }
 0x1c1   : > { %1744 = vmatprep.mubr.f32.mxu0 %v8102_v0  ;;  %782 = vmatprep.mubr.f32.mxu1 %v8102_v0 }
 0x1c3   : > { %v1457_v49 = vpop.trf.xlu1  ;;  %v489_v50 = vpop.trf.xlu0 }
 0x1c4   : > { %4414 = vmatmul.mubr.msk.f32.gmra.mrb[52].mxu1 %vm501_vm1, %v489_v50  ;;  %4445 = vmatmul.mubr.msk.f32.gmra.mrb[50].mxu0 %vm501_vm1, %v1457_v49 }
 0x1c5   : > { %1750 = vmatprep.mubr.f32.mxu0 %v8102_v0  ;;  %788 = vmatprep.mubr.f32.mxu1 %v8102_v0 }
 0x1c7   : > { %v1458_v51 = vpop.trf.xlu1  ;;  %v490_v52 = vpop.trf.xlu0 }
 0x1c8   : > { %4415 = vmatmul.mubr.msk.f32.gmra.mrb[54].mxu1 %vm501_vm1, %v490_v52  ;;  %4446 = vmatmul.mubr.msk.f32.gmra.mrb[52].mxu0 %vm501_vm1, %v1458_v51 }
 0x1c9   : > { %1756 = vmatprep.mubr.f32.mxu0 %v8102_v0  ;;  %794 = vmatprep.mubr.f32.mxu1 %v8102_v0 }
 0x1cb   : > { %v1459_v53 = vpop.trf.xlu1  ;;  %v491_v54 = vpop.trf.xlu0 }
 0x1cc   : > { %4416 = vmatmul.mubr.msk.f32.gmra.mrb[56].mxu1 %vm501_vm1, %v491_v54  ;;  %4447 = vmatmul.mubr.msk.f32.gmra.mrb[54].mxu0 %vm501_vm1, %v1459_v53 }
 0x1cd   : > { %1762 = vmatprep.mubr.f32.mxu0 %v8102_v0  ;;  %800 = vmatprep.mubr.f32.mxu1 %v8102_v0 }
 0x1cf   : > { %v1460_v55 = vpop.trf.xlu1  ;;  %v492_v56 = vpop.trf.xlu0 }
 0x1d0   : > { %4417 = vmatmul.mubr.msk.f32.gmra.mrb[58].mxu1 %vm501_vm1, %v492_v56  ;;  %4448 = vmatmul.mubr.msk.f32.gmra.mrb[56].mxu0 %vm501_vm1, %v1460_v55 }
 0x1d1   : > { %1768 = vmatprep.mubr.f32.mxu0 %v8102_v0  ;;  %806 = vmatprep.mubr.f32.mxu1 %v8102_v0 }
 0x1d3   : > { %v1461_v57 = vpop.trf.xlu1  ;;  %v493_v58 = vpop.trf.xlu0 }
 0x1d4   : > { %4418 = vmatmul.mubr.msk.f32.gmra.mrb[60].mxu1 %vm501_vm1, %v493_v58  ;;  %4449 = vmatmul.mubr.msk.f32.gmra.mrb[58].mxu0 %vm501_vm1, %v1461_v57 }
 0x1d5   : > { %1774 = vmatprep.mubr.f32.mxu0 %v8102_v0  ;;  %812 = vmatprep.mubr.f32.mxu1 %v8102_v0 }
 0x1d7   : > { %v1462_v59 = vpop.trf.xlu1  ;;  %v494_v60 = vpop.trf.xlu0 }
 0x1d8   : > { %4419 = vmatmul.mubr.msk.f32.gmra.mrb[62].mxu1 %vm501_vm1, %v494_v60  ;;  %4450 = vmatmul.mubr.msk.f32.gmra.mrb[60].mxu0 %vm501_vm1, %v1462_v59 }
 0x1d9   : > { %1780 = vmatprep.mubr.f32.mxu0 %v8102_v0  ;;  %818 = vmatprep.mubr.f32.mxu1 %v8102_v0 }
 0x1db   : > { %v1463_v61 = vpop.trf.xlu1  ;;  %v495_v62 = vpop.trf.xlu0 }
 0x1dc   : > { %4420 = vmatmul.mubr.msk.f32.gmra.mrb[64].mxu1 %vm501_vm1, %v495_v62  ;;  %4451 = vmatmul.mubr.msk.f32.gmra.mrb[62].mxu0 %vm501_vm1, %v1463_v61 }
 0x1dd   : > { %1786 = vmatprep.mubr.f32.mxu0 %v8102_v0  ;;  %824 = vmatprep.mubr.f32.mxu1 %v8102_v0 }
 0x1df   : > { %v1464_v63 = vpop.trf.xlu1  ;;  %v496_v1 = vpop.trf.xlu0 }
 0x1e0   : > { %4421 = vmatmul.mubr.msk.f32.gmra.mrb[66].mxu1 %vm501_vm1, %v496_v1  ;;  %4452 = vmatmul.mubr.msk.f32.gmra.mrb[64].mxu0 %vm501_vm1, %v1464_v63 }
 0x1e1   : > { %1792 = vmatprep.mubr.f32.mxu0 %v8102_v0  ;;  %830 = vmatprep.mubr.f32.mxu1 %v8102_v0 }
 0x1e3   : > { %v1465_v4 = vpop.trf.xlu1  ;;  %v497_v5 = vpop.trf.xlu0 }
 0x1e4   : > { %4422 = vmatmul.mubr.msk.f32.gmra.mrb[68].mxu1 %vm501_vm1, %v497_v5  ;;  %4453 = vmatmul.mubr.msk.f32.gmra.mrb[66].mxu0 %vm501_vm1, %v1465_v4 }
 0x1e5   : > { %1798 = vmatprep.mubr.f32.mxu0 %v8102_v0  ;;  %836 = vmatprep.mubr.f32.mxu1 %v8102_v0 }
 0x1e7   : > { %v1466_v6 = vpop.trf.xlu1  ;;  %v498_v8 = vpop.trf.xlu0 }
 0x1e8   : > { %4423 = vmatmul.mubr.msk.f32.gmra.mrb[70].mxu1 %vm501_vm1, %v498_v8  ;;  %4454 = vmatmul.mubr.msk.f32.gmra.mrb[68].mxu0 %vm501_vm1, %v1466_v6 }
 0x1e9   : > { %1804 = vmatprep.mubr.f32.mxu0 %v8102_v0  ;;  %842 = vmatprep.mubr.f32.mxu1 %v8102_v0 }
 0x1eb   : > { %v1467_v9 = vpop.trf.xlu1  ;;  %v499_v10 = vpop.trf.xlu0 }
 0x1ec   : > { %4424 = vmatmul.mubr.msk.f32.gmra.mrb[72].mxu1 %vm501_vm1, %v499_v10  ;;  %4455 = vmatmul.mubr.msk.f32.gmra.mrb[70].mxu0 %vm501_vm1, %v1467_v9 }
 0x1ed   : > { %1810 = vmatprep.mubr.f32.mxu0 %v8102_v0  ;;  %848 = vmatprep.mubr.f32.mxu1 %v8102_v0 }
 0x1ef   : > { %v1468_v13 = vpop.trf.xlu1  ;;  %v500_v15 = vpop.trf.xlu0 }
 0x1f0   : > { %4425 = vmatmul.mubr.msk.f32.gmra.mrb[74].mxu1 %vm501_vm1, %v500_v15  ;;  %4456 = vmatmul.mubr.msk.f32.gmra.mrb[72].mxu0 %vm501_vm1, %v1468_v13 }
 0x1f1   : > { %1816 = vmatprep.mubr.f32.mxu0 %v8102_v0 }
 0x1f3   : > { %v1469_v16 = vpop.trf.xlu1 }
 0x1f4   : > { %4457 = vmatmul.mubr.msk.f32.gmra.mrb[74].mxu0 %vm501_vm1, %v1469_v16 }
 0x20d   : > { %v5861_v19 = vpop.permute.xlu1 %215 }
 0x20e   : > { %8437 = vst [vmem:[#allocation17_spill] sm:$0xff] %v5861_v19 }
 0x211   : > { %v5863_v20 = vpop.permute.xlu1 %245 }
 0x212   : > { %8438 = vst [vmem:[#allocation18_spill] sm:$0xff] %v5863_v20  ;;  %v417_v23 = vadd.f32 %v5751_v14, %v5863_v20 }
 0x214   : > { %1399 = vmatprep.mubr.f32.mxu1 %v417_v23 }
 0x247   : > { %v5867_v24 = vpop.f32.mrb[12].mxu1 }
 0x248   : > { %v5869_v27 = vpop.f32.mrb[13].mxu1 }
 0x249   : > { %v855_v28 = vmax.f32 %v5867_v24, %v5869_v27 }
 0x24b   : > { %v5873_v29 = vpop.f32.mrb[12].mxu0  ;;  %856 = vmax.xlane.f32.xlu0 %v855_v28  ;;  %v5875_v30 = vpop.f32.mrb[14].mxu1 }
 0x24c   : > { %v5877_v31 = vpop.f32.mrb[15].mxu1  ;;  %v5879_v32 = vpop.f32.mrb[13].mxu0 }
 0x24d   : > { %v1823_v14 = vmax.f32 %v5873_v29, %v5879_v32  ;;  %v858_v33 = vmax.f32 %v5875_v30, %v5877_v31 }
 0x24f   : > { %v5885_v34 = vpop.f32.mrb[14].mxu0  ;;  %1824 = vmax.xlane.f32.xlu0 %v1823_v14  ;;  %859 = vmax.xlane.f32.xlu1 %v858_v33  ;;  %v5887_v35 = vpop.f32.mrb[16].mxu1 }
 0x250   : > { %v5889_v36 = vpop.f32.mrb[17].mxu1  ;;  %v5891_v37 = vpop.f32.mrb[15].mxu0 }
 0x251   : > { %v1826_v41 = vmax.f32 %v5885_v34, %v5891_v37  ;;  %v861_v43 = vmax.f32 %v5887_v35, %v5889_v36 }
 0x253   : > { %v5897_v44 = vpop.f32.mrb[16].mxu0  ;;  %1827 = vmax.xlane.f32.xlu0 %v1826_v41  ;;  %862 = vmax.xlane.f32.xlu1 %v861_v43  ;;  %v5899_v45 = vpop.f32.mrb[18].mxu1 }
 0x254   : > { %v5901_v46 = vpop.f32.mrb[19].mxu1  ;;  %v5903_v47 = vpop.f32.mrb[17].mxu0 }
 0x255   : > { %v1829_v48 = vmax.f32 %v5897_v44, %v5903_v47  ;;  %v864_v49 = vmax.f32 %v5899_v45, %v5901_v46 }
 0x257   : > { %v5909_v50 = vpop.f32.mrb[18].mxu0  ;;  %1830 = vmax.xlane.f32.xlu1 %v1829_v48  ;;  %865 = vmax.xlane.f32.xlu0 %v864_v49  ;;  %v5911_v51 = vpop.f32.mrb[20].mxu1 }
 0x258   : > { %v5913_v52 = vpop.f32.mrb[21].mxu1  ;;  %v5915_v53 = vpop.f32.mrb[19].mxu0 }
 0x259   : > { %v1832_v54 = vmax.f32 %v5909_v50, %v5915_v53  ;;  %v867_v55 = vmax.f32 %v5911_v51, %v5913_v52 }
 0x25b   : > { %v5921_v56 = vpop.f32.mrb[20].mxu0  ;;  %1833 = vmax.xlane.f32.xlu0 %v1832_v54  ;;  %868 = vmax.xlane.f32.xlu1 %v867_v55  ;;  %v5923_v57 = vpop.f32.mrb[22].mxu1 }
 0x25c   : > { %v5925_v58 = vpop.f32.mrb[23].mxu1  ;;  %v5927_v59 = vpop.f32.mrb[21].mxu0 }
 0x25d   : > { %v1835_v60 = vmax.f32 %v5921_v56, %v5927_v59  ;;  %v870_v61 = vmax.f32 %v5923_v57, %v5925_v58 }
 0x25f   : > { %v5933_v62 = vpop.f32.mrb[22].mxu0  ;;  %1836 = vmax.xlane.f32.xlu1 %v1835_v60  ;;  %871 = vmax.xlane.f32.xlu0 %v870_v61  ;;  %v5935_v63 = vpop.f32.mrb[24].mxu1 }
 0x260   : > { %v5937_v1 = vpop.f32.mrb[25].mxu1  ;;  %v5939_v4 = vpop.f32.mrb[23].mxu0 }
 0x261   : > { %v1838_v5 = vmax.f32 %v5933_v62, %v5939_v4  ;;  %v873_v6 = vmax.f32 %v5935_v63, %v5937_v1 }
 0x263   : > { %v5945_v8 = vpop.f32.mrb[24].mxu0  ;;  %1839 = vmax.xlane.f32.xlu0 %v1838_v5  ;;  %874 = vmax.xlane.f32.xlu1 %v873_v6  ;;  %v5947_v9 = vpop.f32.mrb[26].mxu1 }
 0x264   : > { %v5949_v10 = vpop.f32.mrb[27].mxu1  ;;  %v5951_v13 = vpop.f32.mrb[25].mxu0 }
 0x265   : > { %v1841_v15 = vmax.f32 %v5945_v8, %v5951_v13  ;;  %v876_v16 = vmax.f32 %v5947_v9, %v5949_v10 }
 0x267   : > { %v5957_v23 = vpop.f32.mrb[26].mxu0  ;;  %1842 = vmax.xlane.f32.xlu1 %v1841_v15  ;;  %877 = vmax.xlane.f32.xlu0 %v876_v16  ;;  %v5959_v28 = vpop.f32.mrb[28].mxu1 }
 0x268   : > { %v5961_v14 = vpop.f32.mrb[29].mxu1  ;;  %v5963_v33 = vpop.f32.mrb[27].mxu0 }
 0x269   : > { %v1844_v41 = vmax.f32 %v5957_v23, %v5963_v33  ;;  %v879_v43 = vmax.f32 %v5959_v28, %v5961_v14 }
 0x26b   : > { %v5969_v48 = vpop.f32.mrb[28].mxu0  ;;  %1845 = vmax.xlane.f32.xlu0 %v1844_v41  ;;  %880 = vmax.xlane.f32.xlu1 %v879_v43  ;;  %v5971_v49 = vpop.f32.mrb[30].mxu1 }
 0x26c   : > { %v5973_v54 = vpop.f32.mrb[31].mxu1  ;;  %v5975_v55 = vpop.f32.mrb[29].mxu0 }
 0x26d   : > { %v1847_v60 = vmax.f32 %v5969_v48, %v5975_v55  ;;  %v882_v61 = vmax.f32 %v5971_v49, %v5973_v54 }
 0x26f   : > { %v5981_v5 = vpop.f32.mrb[30].mxu0  ;;  %1848 = vmax.xlane.f32.xlu1 %v1847_v60  ;;  %883 = vmax.xlane.f32.xlu0 %v882_v61  ;;  %v5983_v6 = vpop.f32.mrb[32].mxu1 }
 0x270   : > { %v5985_v15 = vpop.f32.mrb[33].mxu1  ;;  %v5987_v16 = vpop.f32.mrb[31].mxu0 }
 0x271   : > { %v1850_v41 = vmax.f32 %v5981_v5, %v5987_v16  ;;  %v885_v43 = vmax.f32 %v5983_v6, %v5985_v15 }
 0x273   : > { %v5993_v0 = vpop.f32.mrb[32].mxu0  ;;  %1851 = vmax.xlane.f32.xlu0 %v1850_v41  ;;  %886 = vmax.xlane.f32.xlu1 %v885_v43  ;;  %v5995_v25 = vpop.f32.mrb[34].mxu1 }
 0x274   : > { %v5997_v60 = vpop.f32.mrb[35].mxu1  ;;  %v5999_v61 = vpop.f32.mrb[33].mxu0 }
 0x275   : > { %v1853_v21 = vmax.f32 %v5993_v0, %v5999_v61  ;;  %v888_v26 = vmax.f32 %v5995_v25, %v5997_v60 }
 0x277   : > { %v6005_v22 = vpop.f32.mrb[34].mxu0  ;;  %1854 = vmax.xlane.f32.xlu1 %v1853_v21  ;;  %889 = vmax.xlane.f32.xlu0 %v888_v26  ;;  %v6007_v7 = vpop.f32.mrb[36].mxu1 }
 0x278   : > { %v6009_v41 = vpop.f32.mrb[37].mxu1  ;;  %v6011_v43 = vpop.f32.mrb[35].mxu0 }
 0x279   : > { %8439 = vst [vmem:[#allocation19_spill] sm:$0xff] %v6011_v43  ;;  %v1856_v17 = vmax.f32 %v6005_v22, %v6011_v43  ;;  %v891_v2 = vmax.f32 %v6007_v7, %v6009_v41 }
 0x27b   : > { %v6017_v12 = vpop.f32.mrb[36].mxu0  ;;  %1857 = vmax.xlane.f32.xlu0 %v1856_v17  ;;  %892 = vmax.xlane.f32.xlu1 %v891_v2  ;;  %v6019_v20 = vpop.f32.mrb[38].mxu1 }
 0x27c   : > { %8440 = vst [vmem:[#allocation20_spill] sm:$0xff] %v6017_v12  ;;  %8441 = vst [vmem:[#allocation21_spill] sm:$0xff] %v6019_v20  ;;  %v6021_v21 = vpop.f32.mrb[39].mxu1  ;;  %v6023_v26 = vpop.f32.mrb[37].mxu0 }
 0x27d   : > { %8442 = vst [vmem:[#allocation22_spill] sm:$0xff] %v6021_v21  ;;  %8443 = vst [vmem:[#allocation23_spill] sm:$0xff] %v6023_v26  ;;  %v1859_v11 = vmax.f32 %v6017_v12, %v6023_v26  ;;  %v894_v3 = vmax.f32 %v6019_v20, %v6021_v21 }
 0x27f   : > { %v6029_v18 = vpop.f32.mrb[38].mxu0  ;;  %1860 = vmax.xlane.f32.xlu1 %v1859_v11  ;;  %895 = vmax.xlane.f32.xlu0 %v894_v3  ;;  %v6031_v42 = vpop.f32.mrb[40].mxu1 }
 0x280   : > { %8444 = vst [vmem:[#allocation24_spill] sm:$0xff] %v6029_v18  ;;  %8445 = vst [vmem:[#allocation25_spill] sm:$0xff] %v6031_v42  ;;  %v6033_v17 = vpop.f32.mrb[41].mxu1  ;;  %v6035_v2 = vpop.f32.mrb[39].mxu0 }
 0x281   : > { %8446 = vst [vmem:[#allocation26_spill] sm:$0xff] %v6033_v17  ;;  %8447 = vst [vmem:[#allocation27_spill] sm:$0xff] %v6035_v2  ;;  %v897_v39 = vmax.f32 %v6031_v42, %v6033_v17  ;;  %v1862_v40 = vmax.f32 %v6029_v18, %v6035_v2 }
 0x283   : > { %v6041_v38 = vpop.f32.mrb[40].mxu0  ;;  %1863 = vmax.xlane.f32.xlu0 %v1862_v40  ;;  %898 = vmax.xlane.f32.xlu1 %v897_v39  ;;  %v6043_v19 = vpop.f32.mrb[42].mxu1 }
 0x284   : > { %8448 = vst [vmem:[#allocation28_spill] sm:$0xff] %v6041_v38  ;;  %8449 = vst [vmem:[#allocation29_spill] sm:$0xff] %v6043_v19  ;;  %v6045_v11 = vpop.f32.mrb[43].mxu1  ;;  %v6047_v3 = vpop.f32.mrb[41].mxu0 }
 0x285   : > { %8450 = vst [vmem:[#allocation30_spill] sm:$0xff] %v6045_v11  ;;  %8451 = vst [vmem:[#allocation31_spill] sm:$0xff] %v6047_v3  ;;  %v900_v21 = vmax.f32 %v6043_v19, %v6045_v11  ;;  %v1865_v20 = vmax.f32 %v6041_v38, %v6047_v3 }
 0x287   : > { %v6053_v17 = vpop.f32.mrb[42].mxu0  ;;  %1866 = vmax.xlane.f32.xlu1 %v1865_v20  ;;  %901 = vmax.xlane.f32.xlu0 %v900_v21  ;;  %v6055_v2 = vpop.f32.mrb[44].mxu1 }
 0x288   : > { %8452 = vst [vmem:[#allocation32_spill] sm:$0xff] %v6053_v17  ;;  %8453 = vst [vmem:[#allocation33_spill] sm:$0xff] %v6055_v2  ;;  %v6057_v40 = vpop.f32.mrb[45].mxu1  ;;  %v6059_v39 = vpop.f32.mrb[43].mxu0 }
 0x289   : > { %8454 = vst [vmem:[#allocation34_spill] sm:$0xff] %v6057_v40  ;;  %8455 = vst [vmem:[#allocation35_spill] sm:$0xff] %v6059_v39  ;;  %v903_v18 = vmax.f32 %v6055_v2, %v6057_v40  ;;  %v1868_v42 = vmax.f32 %v6053_v17, %v6059_v39 }
 0x28b   : > { %v6065_v11 = vpop.f32.mrb[44].mxu0  ;;  %1869 = vmax.xlane.f32.xlu0 %v1868_v42  ;;  %904 = vmax.xlane.f32.xlu1 %v903_v18  ;;  %v6067_v19 = vpop.f32.mrb[46].mxu1 }
 0x28c   : > { %8456 = vst [vmem:[#allocation36_spill] sm:$0xff] %v6065_v11  ;;  %8457 = vst [vmem:[#allocation37_spill] sm:$0xff] %v6067_v19  ;;  %v6069_v20 = vpop.f32.mrb[47].mxu1  ;;  %v6071_v21 = vpop.f32.mrb[45].mxu0 }
 0x28d   : > { %8458 = vst [vmem:[#allocation38_spill] sm:$0xff] %v6069_v20  ;;  %8459 = vst [vmem:[#allocation39_spill] sm:$0xff] %v6071_v21  ;;  %v906_v3 = vmax.f32 %v6067_v19, %v6069_v20  ;;  %v1871_v38 = vmax.f32 %v6065_v11, %v6071_v21 }
 0x28f   : > { %v6077_v40 = vpop.f32.mrb[46].mxu0  ;;  %1872 = vmax.xlane.f32.xlu1 %v1871_v38  ;;  %907 = vmax.xlane.f32.xlu0 %v906_v3  ;;  %v6079_v39 = vpop.f32.mrb[48].mxu1 }
 0x290   : > { %8460 = vst [vmem:[#allocation40_spill] sm:$0xff] %v6077_v40  ;;  %8461 = vst [vmem:[#allocation41_spill] sm:$0xff] %v6079_v39  ;;  %v6081_v42 = vpop.f32.mrb[49].mxu1  ;;  %v6083_v18 = vpop.f32.mrb[47].mxu0 }
 0x291   : > { %8462 = vst [vmem:[#allocation42_spill] sm:$0xff] %v6081_v42  ;;  %8463 = vst [vmem:[#allocation43_spill] sm:$0xff] %v6083_v18  ;;  %v909_v17 = vmax.f32 %v6079_v39, %v6081_v42  ;;  %v1874_v2 = vmax.f32 %v6077_v40, %v6083_v18 }
 0x293   : > { %v6089_v20 = vpop.f32.mrb[48].mxu0  ;;  %1875 = vmax.xlane.f32.xlu0 %v1874_v2  ;;  %910 = vmax.xlane.f32.xlu1 %v909_v17  ;;  %v6091_v19 = vpop.f32.mrb[50].mxu1 }
 0x294   : > { %8464 = vst [vmem:[#allocation44_spill] sm:$0xff] %v6089_v20  ;;  %8465 = vst [vmem:[#allocation45_spill] sm:$0xff] %v6091_v19  ;;  %v6093_v38 = vpop.f32.mrb[51].mxu1  ;;  %v6095_v3 = vpop.f32.mrb[49].mxu0 }
 0x295   : > { %8466 = vst [vmem:[#allocation46_spill] sm:$0xff] %v6093_v38  ;;  %8467 = vst [vmem:[#allocation47_spill] sm:$0xff] %v6095_v3  ;;  %v912_v21 = vmax.f32 %v6091_v19, %v6093_v38  ;;  %v1877_v11 = vmax.f32 %v6089_v20, %v6095_v3 }
 0x297   : > { %v6101_v42 = vpop.f32.mrb[50].mxu0  ;;  %1878 = vmax.xlane.f32.xlu1 %v1877_v11  ;;  %913 = vmax.xlane.f32.xlu0 %v912_v21  ;;  %v6103_v18 = vpop.f32.mrb[52].mxu1 }
 0x298   : > { %8468 = vst [vmem:[#allocation48_spill] sm:$0xff] %v6101_v42  ;;  %8469 = vst [vmem:[#allocation49_spill] sm:$0xff] %v6103_v18  ;;  %v6105_v2 = vpop.f32.mrb[53].mxu1  ;;  %v6107_v17 = vpop.f32.mrb[51].mxu0 }
 0x299   : > { %8470 = vst [vmem:[#allocation50_spill] sm:$0xff] %v6105_v2  ;;  %8471 = vst [vmem:[#allocation51_spill] sm:$0xff] %v6107_v17  ;;  %v915_v40 = vmax.f32 %v6103_v18, %v6105_v2  ;;  %v1880_v39 = vmax.f32 %v6101_v42, %v6107_v17 }
 0x29b   : > { %v6113_v38 = vpop.f32.mrb[52].mxu0  ;;  %1881 = vmax.xlane.f32.xlu0 %v1880_v39  ;;  %916 = vmax.xlane.f32.xlu1 %v915_v40  ;;  %v6115_v19 = vpop.f32.mrb[54].mxu1 }
 0x29c   : > { %8472 = vst [vmem:[#allocation52_spill] sm:$0xff] %v6113_v38  ;;  %8473 = vst [vmem:[#allocation53_spill] sm:$0xff] %v6115_v19  ;;  %v6117_v11 = vpop.f32.mrb[55].mxu1  ;;  %v6119_v21 = vpop.f32.mrb[53].mxu0 }
 0x29d   : > { %8474 = vst [vmem:[#allocation54_spill] sm:$0xff] %v6117_v11  ;;  %8475 = vst [vmem:[#allocation55_spill] sm:$0xff] %v6119_v21  ;;  %v918_v3 = vmax.f32 %v6115_v19, %v6117_v11  ;;  %v1883_v20 = vmax.f32 %v6113_v38, %v6119_v21 }
 0x29f   : > { %v6125_v2 = vpop.f32.mrb[54].mxu0  ;;  %1884 = vmax.xlane.f32.xlu1 %v1883_v20  ;;  %919 = vmax.xlane.f32.xlu0 %v918_v3  ;;  %v6127_v17 = vpop.f32.mrb[56].mxu1 }
 0x2a0   : > { %8476 = vst [vmem:[#allocation56_spill] sm:$0xff] %v6125_v2  ;;  %8477 = vst [vmem:[#allocation57_spill] sm:$0xff] %v6127_v17  ;;  %v6129_v39 = vpop.f32.mrb[57].mxu1  ;;  %v6131_v40 = vpop.f32.mrb[55].mxu0 }
 0x2a1   : > { %8478 = vst [vmem:[#allocation58_spill] sm:$0xff] %v6129_v39  ;;  %8479 = vst [vmem:[#allocation59_spill] sm:$0xff] %v6131_v40  ;;  %v921_v42 = vmax.f32 %v6127_v17, %v6129_v39  ;;  %v1886_v18 = vmax.f32 %v6125_v2, %v6131_v40 }
 0x2a3   : > { %v6137_v11 = vpop.f32.mrb[56].mxu0  ;;  %1887 = vmax.xlane.f32.xlu0 %v1886_v18  ;;  %922 = vmax.xlane.f32.xlu1 %v921_v42  ;;  %v6139_v19 = vpop.f32.mrb[58].mxu1 }
 0x2a4   : > { %8480 = vst [vmem:[#allocation60_spill] sm:$0xff] %v6137_v11  ;;  %8481 = vst [vmem:[#allocation61_spill] sm:$0xff] %v6139_v19  ;;  %v6141_v20 = vpop.f32.mrb[59].mxu1  ;;  %v6143_v3 = vpop.f32.mrb[57].mxu0 }
 0x2a5   : > { %8482 = vst [vmem:[#allocation62_spill] sm:$0xff] %v6141_v20  ;;  %8483 = vst [vmem:[#allocation63_spill] sm:$0xff] %v6143_v3  ;;  %v924_v21 = vmax.f32 %v6139_v19, %v6141_v20  ;;  %v1889_v38 = vmax.f32 %v6137_v11, %v6143_v3 }
 0x2a7   : > { %v6149_v39 = vpop.f32.mrb[58].mxu0  ;;  %1890 = vmax.xlane.f32.xlu1 %v1889_v38  ;;  %925 = vmax.xlane.f32.xlu0 %v924_v21  ;;  %v6151_v40 = vpop.f32.mrb[60].mxu1 }
 0x2a8   : > { %8484 = vst [vmem:[#allocation64_spill] sm:$0xff] %v6149_v39  ;;  %8485 = vst [vmem:[#allocation65_spill] sm:$0xff] %v6151_v40  ;;  %v6153_v18 = vpop.f32.mrb[61].mxu1  ;;  %v6155_v42 = vpop.f32.mrb[59].mxu0 }
 0x2a9   : > { %8486 = vst [vmem:[#allocation66_spill] sm:$0xff] %v6153_v18  ;;  %8487 = vst [vmem:[#allocation67_spill] sm:$0xff] %v6155_v42  ;;  %v927_v2 = vmax.f32 %v6151_v40, %v6153_v18  ;;  %v1892_v17 = vmax.f32 %v6149_v39, %v6155_v42 }
 0x2ab   : > { %v6161_v20 = vpop.f32.mrb[60].mxu0  ;;  %1893 = vmax.xlane.f32.xlu0 %v1892_v17  ;;  %928 = vmax.xlane.f32.xlu1 %v927_v2  ;;  %v6163_v19 = vpop.f32.mrb[62].mxu1 }
 0x2ac   : > { %8488 = vst [vmem:[#allocation68_spill] sm:$0xff] %v6161_v20  ;;  %8489 = vst [vmem:[#allocation69_spill] sm:$0xff] %v6163_v19  ;;  %v6165_v38 = vpop.f32.mrb[63].mxu1  ;;  %v6167_v21 = vpop.f32.mrb[61].mxu0 }
 0x2ad   : > { %8490 = vst [vmem:[#allocation70_spill] sm:$0xff] %v6165_v38  ;;  %8491 = vst [vmem:[#allocation71_spill] sm:$0xff] %v6167_v21  ;;  %v930_v3 = vmax.f32 %v6163_v19, %v6165_v38  ;;  %v1895_v11 = vmax.f32 %v6161_v20, %v6167_v21 }
 0x2af   : > { %v6173_v18 = vpop.f32.mrb[62].mxu0  ;;  %1896 = vmax.xlane.f32.xlu1 %v1895_v11  ;;  %931 = vmax.xlane.f32.xlu0 %v930_v3  ;;  %v6175_v42 = vpop.f32.mrb[64].mxu1 }
 0x2b0   : > { %8492 = vst [vmem:[#allocation72_spill] sm:$0xff] %v6173_v18  ;;  %8493 = vst [vmem:[#allocation73_spill] sm:$0xff] %v6175_v42  ;;  %v6177_v17 = vpop.f32.mrb[65].mxu1  ;;  %v6179_v2 = vpop.f32.mrb[63].mxu0 }
 0x2b1   : > { %8494 = vst [vmem:[#allocation74_spill] sm:$0xff] %v6177_v17  ;;  %8495 = vst [vmem:[#allocation75_spill] sm:$0xff] %v6179_v2  ;;  %v933_v39 = vmax.f32 %v6175_v42, %v6177_v17  ;;  %v1898_v40 = vmax.f32 %v6173_v18, %v6179_v2 }
 0x2b3   : > { %v6185_v38 = vpop.f32.mrb[64].mxu0  ;;  %1899 = vmax.xlane.f32.xlu0 %v1898_v40  ;;  %934 = vmax.xlane.f32.xlu1 %v933_v39  ;;  %v6187_v19 = vpop.f32.mrb[66].mxu1 }
 0x2b4   : > { %8496 = vst [vmem:[#allocation76_spill] sm:$0xff] %v6185_v38  ;;  %8497 = vst [vmem:[#allocation77_spill] sm:$0xff] %v6187_v19  ;;  %v6189_v11 = vpop.f32.mrb[67].mxu1  ;;  %v6191_v3 = vpop.f32.mrb[65].mxu0 }
 0x2b5   : > { %8498 = vst [vmem:[#allocation78_spill] sm:$0xff] %v6189_v11  ;;  %8499 = vst [vmem:[#allocation79_spill] sm:$0xff] %v6191_v3  ;;  %v936_v21 = vmax.f32 %v6187_v19, %v6189_v11  ;;  %v1901_v20 = vmax.f32 %v6185_v38, %v6191_v3 }
 0x2b7   : > { %v6197_v17 = vpop.f32.mrb[66].mxu0  ;;  %1902 = vmax.xlane.f32.xlu1 %v1901_v20  ;;  %937 = vmax.xlane.f32.xlu0 %v936_v21  ;;  %v6199_v2 = vpop.f32.mrb[68].mxu1 }
 0x2b8   : > { %8500 = vst [vmem:[#allocation80_spill] sm:$0xff] %v6197_v17  ;;  %8501 = vst [vmem:[#allocation81_spill] sm:$0xff] %v6199_v2  ;;  %v6201_v40 = vpop.f32.mrb[69].mxu1  ;;  %v6203_v39 = vpop.f32.mrb[67].mxu0 }
 0x2b9   : > { %8502 = vst [vmem:[#allocation82_spill] sm:$0xff] %v6201_v40  ;;  %8503 = vst [vmem:[#allocation83_spill] sm:$0xff] %v6203_v39  ;;  %v939_v18 = vmax.f32 %v6199_v2, %v6201_v40  ;;  %v1904_v42 = vmax.f32 %v6197_v17, %v6203_v39 }
 0x2bb   : > { %v6209_v11 = vpop.f32.mrb[68].mxu0  ;;  %1905 = vmax.xlane.f32.xlu0 %v1904_v42  ;;  %940 = vmax.xlane.f32.xlu1 %v939_v18  ;;  %v6211_v19 = vpop.f32.mrb[70].mxu1 }
 0x2bc   : > { %8504 = vst [vmem:[#allocation84_spill] sm:$0xff] %v6209_v11  ;;  %8505 = vst [vmem:[#allocation85_spill] sm:$0xff] %v6211_v19  ;;  %v6213_v20 = vpop.f32.mrb[71].mxu1  ;;  %v6215_v21 = vpop.f32.mrb[69].mxu0 }
 0x2bd   : > { %8506 = vst [vmem:[#allocation86_spill] sm:$0xff] %v6213_v20  ;;  %8507 = vst [vmem:[#allocation87_spill] sm:$0xff] %v6215_v21  ;;  %v942_v3 = vmax.f32 %v6211_v19, %v6213_v20  ;;  %v1907_v38 = vmax.f32 %v6209_v11, %v6215_v21 }
 0x2bf   : > { %v6221_v40 = vpop.f32.mrb[70].mxu0  ;;  %1908 = vmax.xlane.f32.xlu1 %v1907_v38  ;;  %943 = vmax.xlane.f32.xlu0 %v942_v3  ;;  %v6223_v39 = vpop.f32.mrb[72].mxu1 }
 0x2c0   : > { %8508 = vst [vmem:[#allocation88_spill] sm:$0xff] %v6221_v40  ;;  %8509 = vst [vmem:[#allocation89_spill] sm:$0xff] %v6223_v39  ;;  %v6225_v42 = vpop.f32.mrb[73].mxu1  ;;  %v6227_v18 = vpop.f32.mrb[71].mxu0 }
 0x2c1   : > { %8510 = vst [vmem:[#allocation90_spill] sm:$0xff] %v6225_v42  ;;  %8511 = vst [vmem:[#allocation91_spill] sm:$0xff] %v6227_v18  ;;  %v945_v17 = vmax.f32 %v6223_v39, %v6225_v42  ;;  %v1910_v2 = vmax.f32 %v6221_v40, %v6227_v18 }
 0x2c3   : > { %v6233_v20 = vpop.f32.mrb[72].mxu0  ;;  %1911 = vmax.xlane.f32.xlu0 %v1910_v2  ;;  %946 = vmax.xlane.f32.xlu1 %v945_v17  ;;  %v6235_v19 = vpop.f32.mrb[74].mxu1 }
 0x2c4   : > { %8512 = vst [vmem:[#allocation92_spill] sm:$0xff] %v6233_v20  ;;  %8513 = vst [vmem:[#allocation93_spill] sm:$0xff] %v6235_v19  ;;  %v6237_v38 = vpop.f32.mrb[75].mxu1  ;;  %v6239_v3 = vpop.f32.mrb[73].mxu0 }
 0x2c5   : > { %8514 = vst [vmem:[#allocation94_spill] sm:$0xff] %v6237_v38  ;;  %8515 = vst [vmem:[#allocation95_spill] sm:$0xff] %v6239_v3  ;;  %v948_v21 = vmax.f32 %v6235_v19, %v6237_v38  ;;  %v1913_v11 = vmax.f32 %v6233_v20, %v6239_v3  ;;  %v6251_v2 = vpop.permute.xlu0 %220 }
 0x2c6   : > { %8518 = vst [vmem:[#allocation98_spill] sm:$0xff] %v6251_v2 }
 0x2c7   : > { %v6245_v42 = vpop.f32.mrb[74].mxu0  ;;  %1914 = vmax.xlane.f32.xlu1 %v1913_v11  ;;  %949 = vmax.xlane.f32.xlu0 %v948_v21 }
 0x2c8   : > { %8516 = vst [vmem:[#allocation96_spill] sm:$0xff] %v6245_v42  ;;  %v6247_v18 = vpop.f32.mrb[75].mxu0 }
 0x2c9   : > { %8517 = vst [vmem:[#allocation97_spill] sm:$0xff] %v6247_v18  ;;  %v1916_v17 = vmax.f32 %v6245_v42, %v6247_v18 }
 0x2cb   : > { %1917 = vmax.xlane.f32.xlu0 %v1916_v17 }
 0x2d8   : > { %v857_v40 = vpop.xlane.xlu0 %856 }
 0x2d9   : > { %v951_v39 = vsub.f32 %v5867_v24, %v857_v40  ;;  %v952_v38 = vsub.f32 %v5869_v27, %v857_v40 }
 0x2db   : > { %v1015_v19 = vmul.f32 1.442695, %v951_v39  ;;  %v1017_v26 = vmul.f32 1.442695, %v952_v38 }
 0x2dc   : > { %v860_v3 = vpop.xlane.xlu1 %859  ;;  %v1825_v20 = vpop.xlane.xlu0 %1824 }
 0x2dd   : > { %4806 = vpow2.f32 %v1015_v19  ;;  %v953_v11 = vsub.f32 %v5875_v30, %v860_v3  ;;  %v954_v21 = vsub.f32 %v5877_v31, %v860_v3  ;;  %v1919_v12 = vsub.f32 %v5873_v29, %v1825_v20 }
 0x2de   : > { %4808 = vpow2.f32 %v1017_v26  ;;  %v1920_v17 = vsub.f32 %v5879_v32, %v1825_v20 }
 0x2df   : > { %v1019_v2 = vmul.f32 1.442695, %v953_v11  ;;  %v1021_v18 = vmul.f32 1.442695, %v954_v21  ;;  %v1983_v42 = vmul.f32 1.442695, %v1919_v12 }
 0x2e0   : > { %v1985_v24 = vmul.f32 1.442695, %v1920_v17  ;;  %v863_v43 = vpop.xlane.xlu1 %862  ;;  %v1828_v27 = vpop.xlane.xlu0 %1827 }
 0x2e1   : > { %4810 = vpow2.f32 %v1019_v2  ;;  %v955_v40 = vsub.f32 %v5887_v35, %v863_v43  ;;  %v956_v19 = vsub.f32 %v5889_v36, %v863_v43  ;;  %v1921_v30 = vsub.f32 %v5885_v34, %v1828_v27 }
 0x2e2   : > { %4812 = vpow2.f32 %v1021_v18  ;;  %v1922_v31 = vsub.f32 %v5891_v37, %v1828_v27 }
 0x2e3   : > { %4814 = vpow2.f32 %v1983_v42  ;;  %v1023_v29 = vmul.f32 1.442695, %v955_v40  ;;  %v1025_v26 = vmul.f32 1.442695, %v956_v19  ;;  %v1987_v32 = vmul.f32 1.442695, %v1921_v30 }
 0x2e4   : > { %4816 = vpow2.f32 %v1985_v24  ;;  %v1989_v39 = vmul.f32 1.442695, %v1922_v31  ;;  %v1831_v12 = vpop.xlane.xlu1 %1830  ;;  %v866_v20 = vpop.xlane.xlu0 %865 }
 0x2e5   : > { %4818 = vpow2.f32 %v1023_v29  ;;  %v1923_v38 = vsub.f32 %v5897_v44, %v1831_v12  ;;  %v1924_v35 = vsub.f32 %v5903_v47, %v1831_v12  ;;  %v957_v36 = vsub.f32 %v5899_v45, %v866_v20 }
 0x2e6   : > { %4820 = vpow2.f32 %v1025_v26  ;;  %v958_v34 = vsub.f32 %v5901_v46, %v866_v20 }
 0x2e7   : > { %v6267_v43 = vpop.eup %4806  ;;  %4822 = vpow2.f32 %v1987_v32  ;;  %v1991_v37 = vmul.f32 1.442695, %v1923_v38  ;;  %v1993_v42 = vmul.f32 1.442695, %v1924_v35  ;;  %v1027_v18 = vmul.f32 1.442695, %v957_v36 }
 0x2e8   : > { %v6269_v3 = vpop.eup %4808  ;;  %4824 = vpow2.f32 %v1989_v39  ;;  %v1029_v2 = vmul.f32 1.442695, %v958_v34  ;;  %v869_v11 = vpop.xlane.xlu1 %868 }
 0x2e9   : > { %v1834_v21 = vpop.xlane.xlu0 %1833  ;;  %4826 = vpow2.f32 %v1991_v37  ;;  %v959_v44 = vsub.f32 %v5911_v51, %v869_v11  ;;  %v960_v45 = vsub.f32 %v5913_v52, %v869_v11  ;;  %v1143_v17 = vadd.f32 %v6269_v3, %v6267_v43 }
 0x2ea   : > { %v1925_v47 = vsub.f32 %v5909_v50, %v1834_v21  ;;  %4828 = vpow2.f32 %v1993_v42  ;;  %v1926_v46 = vsub.f32 %v5915_v53, %v1834_v21 }
 0x2eb   : > { %v6277_v24 = vpop.eup %4810  ;;  %4830 = vpow2.f32 %v1027_v18  ;;  %v1031_v27 = vmul.f32 1.442695, %v959_v44  ;;  %v1033_v40 = vmul.f32 1.442695, %v960_v45  ;;  %1144 = vadd.xlane.f32.xlu1 %v1143_v17 }
 0x2ec   : > { %v1995_v19 = vmul.f32 1.442695, %v1925_v47  ;;  %v6279_v30 = vpop.eup %4812  ;;  %4832 = vpow2.f32 %v1029_v2  ;;  %v1997_v51 = vmul.f32 1.442695, %v1926_v46  ;;  %v1837_v52 = vpop.xlane.xlu1 %1836 }
 0x2ed   : > { %v872_v31 = vpop.xlane.xlu0 %871  ;;  %v6281_v50 = vpop.eup %4814  ;;  %4834 = vpow2.f32 %v1031_v27  ;;  %v1927_v53 = vsub.f32 %v5921_v56, %v1837_v52  ;;  %v1928_v29 = vsub.f32 %v5927_v59, %v1837_v52  ;;  %v1146_v12 = vadd.f32 %v6279_v30, %v6277_v24 }
 0x2ee   : > { %v961_v26 = vsub.f32 %v5923_v57, %v872_v31  ;;  %v6286_v32 = vpop.eup %4816  ;;  %4836 = vpow2.f32 %v1033_v40  ;;  %v962_v39 = vsub.f32 %v5925_v58, %v872_v31 }
 0x2ef   : > { %v6291_v20 = vpop.eup %4818  ;;  %4838 = vpow2.f32 %v1995_v19  ;;  %v1999_v38 = vmul.f32 1.442695, %v1927_v53  ;;  %v2001_v35 = vmul.f32 1.442695, %v1928_v29  ;;  %1147 = vadd.xlane.f32.xlu0 %v1146_v12  ;;  %v2111_v57 = vadd.f32 %v6286_v32, %v6281_v50 }
 0x2f0   : > { %v1035_v36 = vmul.f32 1.442695, %v961_v26  ;;  %v6293_v34 = vpop.eup %4820  ;;  %4840 = vpow2.f32 %v1997_v51  ;;  %v1037_v56 = vmul.f32 1.442695, %v962_v39  ;;  %v875_v59 = vpop.xlane.xlu1 %874 }
 0x2f1   : > { %v1840_v37 = vpop.xlane.xlu0 %1839  ;;  %v6297_v58 = vpop.eup %4822  ;;  %4842 = vpow2.f32 %v1999_v38  ;;  %v963_v42 = vsub.f32 %v5935_v63, %v875_v59  ;;  %v964_v18 = vsub.f32 %v5937_v1, %v875_v59  ;;  %2112 = vadd.xlane.f32.xlu1 %v2111_v57  ;;  %v1149_v44 = vadd.f32 %v6293_v34, %v6291_v20 }
 0x2f2   : > { %v1929_v2 = vsub.f32 %v5933_v62, %v1840_v37  ;;  %v6302_v11 = vpop.eup %4824  ;;  %4844 = vpow2.f32 %v2001_v35  ;;  %v1930_v21 = vsub.f32 %v5939_v4, %v1840_v37 }
 0x2f3   : > { %v6307_v45 = vpop.eup %4826  ;;  %4846 = vpow2.f32 %v1035_v36  ;;  %v1039_v47 = vmul.f32 1.442695, %v963_v42  ;;  %v1041_v46 = vmul.f32 1.442695, %v964_v18  ;;  %v2114_v62 = vadd.f32 %v6302_v11, %v6297_v58 }
 0x2f4   : > { %v2003_v17 = vmul.f32 1.442695, %v1929_v2  ;;  %v6309_v63 = vpop.eup %4828  ;;  %4848 = vpow2.f32 %v1037_v56  ;;  %v2005_v1 = vmul.f32 1.442695, %v1930_v21  ;;  %v1843_v27 = vpop.xlane.xlu1 %1842 }
 0x2f5   : > { %v878_v40 = vpop.xlane.xlu0 %877  ;;  %v6313_v19 = vpop.eup %4830  ;;  %4850 = vpow2.f32 %v1039_v47  ;;  %v1931_v4 = vsub.f32 %v5945_v8, %v1843_v27  ;;  %v1932_v51 = vsub.f32 %v5951_v13, %v1843_v27  ;;  %1150 = vadd.xlane.f32.xlu1 %v1149_v44  ;;  %2115 = vadd.xlane.f32.xlu0 %v2114_v62  ;;  %v2117_v29 = vadd.f32 %v6309_v63, %v6307_v45 }
 0x2f6   : > { %v965_v52 = vsub.f32 %v5947_v9, %v878_v40  ;;  %v6318_v31 = vpop.eup %4832  ;;  %4852 = vpow2.f32 %v1041_v46  ;;  %v966_v53 = vsub.f32 %v5949_v10, %v878_v40 }
 0x2f7   : > { %v6323_v26 = vpop.eup %4834  ;;  %4854 = vpow2.f32 %v2003_v17  ;;  %v2007_v39 = vmul.f32 1.442695, %v1931_v4  ;;  %v2009_v12 = vmul.f32 1.442695, %v1932_v51  ;;  %v1152_v13 = vadd.f32 %v6318_v31, %v6313_v19 }
 0x2f8   : > { %v1043_v8 = vmul.f32 1.442695, %v965_v52  ;;  %v6325_v38 = vpop.eup %4836  ;;  %4856 = vpow2.f32 %v2005_v1  ;;  %v1045_v9 = vmul.f32 1.442695, %v966_v53  ;;  %v881_v35 = vpop.xlane.xlu1 %880 }
 0x2f9   : > { %v1846_v36 = vpop.xlane.xlu0 %1845  ;;  %v6329_v56 = vpop.eup %4838  ;;  %4858 = vpow2.f32 %v2007_v39  ;;  %v967_v10 = vsub.f32 %v5959_v28, %v881_v35  ;;  %v968_v57 = vsub.f32 %v5961_v14, %v881_v35  ;;  %2118 = vadd.xlane.f32.xlu1 %v2117_v29  ;;  %1153 = vadd.xlane.f32.xlu0 %v1152_v13  ;;  %v1155_v18 = vadd.f32 %v6325_v38, %v6323_v26 }
 0x2fa   : > { %v1933_v59 = vsub.f32 %v5957_v23, %v1846_v36  ;;  %v6334_v37 = vpop.eup %4840  ;;  %4860 = vpow2.f32 %v2009_v12  ;;  %v1934_v42 = vsub.f32 %v5963_v33, %v1846_v36 }
 0x2fb   : > { %v6339_v2 = vpop.eup %4842  ;;  %4862 = vpow2.f32 %v1043_v8  ;;  %v1047_v21 = vmul.f32 1.442695, %v967_v10  ;;  %v1049_v44 = vmul.f32 1.442695, %v968_v57  ;;  %v2120_v14 = vadd.f32 %v6334_v37, %v6329_v56 }
 0x2fc   : > { %v2011_v28 = vmul.f32 1.442695, %v1933_v59  ;;  %v6341_v47 = vpop.eup %4844  ;;  %4864 = vpow2.f32 %v1045_v9  ;;  %v2013_v23 = vmul.f32 1.442695, %v1934_v42  ;;  %v1849_v46 = vpop.xlane.xlu1 %1848 }
 0x2fd   : > { %v884_v17 = vpop.xlane.xlu0 %883  ;;  %v6345_v1 = vpop.eup %4846  ;;  %4866 = vpow2.f32 %v1047_v21  ;;  %v1935_v33 = vsub.f32 %v5969_v48, %v1849_v46  ;;  %v1936_v62 = vsub.f32 %v5975_v55, %v1849_v46  ;;  %1156 = vadd.xlane.f32.xlu1 %v1155_v18  ;;  %2121 = vadd.xlane.f32.xlu0 %v2120_v14  ;;  %v2123_v51 = vadd.f32 %v6341_v47, %v6339_v2 }
 0x2fe   : > { %v969_v27 = vsub.f32 %v5971_v49, %v884_v17  ;;  %v6350_v40 = vpop.eup %4848  ;;  %4868 = vpow2.f32 %v1049_v44  ;;  %v970_v4 = vsub.f32 %v5973_v54, %v884_v17 }
 0x2ff   : > { %v6355_v52 = vpop.eup %4850  ;;  %4870 = vpow2.f32 %v2011_v28  ;;  %v2015_v53 = vmul.f32 1.442695, %v1935_v33  ;;  %v2017_v29 = vmul.f32 1.442695, %v1936_v62  ;;  %v1158_v55 = vadd.f32 %v6350_v40, %v6345_v1 }
 0x300   : > { %v1051_v48 = vmul.f32 1.442695, %v969_v27  ;;  %v6357_v39 = vpop.eup %4852  ;;  %4872 = vpow2.f32 %v2013_v23  ;;  %v1053_v49 = vmul.f32 1.442695, %v970_v4  ;;  %v887_v12 = vpop.xlane.xlu1 %886 }
 0x301   : > { %v1852_v8 = vpop.xlane.xlu0 %1851  ;;  %v6361_v9 = vpop.eup %4854  ;;  %4874 = vpow2.f32 %v2015_v53  ;;  %v971_v54 = vsub.f32 %v5983_v6, %v887_v12  ;;  %v972_v13 = vsub.f32 %v5985_v15, %v887_v12  ;;  %2124 = vadd.xlane.f32.xlu1 %v2123_v51  ;;  %1159 = vadd.xlane.f32.xlu0 %v1158_v55  ;;  %v1161_v57 = vadd.f32 %v6357_v39, %v6355_v52 }
 0x302   : > { %v1937_v35 = vsub.f32 %v5981_v5, %v1852_v8  ;;  %v6366_v36 = vpop.eup %4856  ;;  %4876 = vpow2.f32 %v2017_v29  ;;  %v1938_v10 = vsub.f32 %v5987_v16, %v1852_v8 }
 0x303   : > { %v6371_v59 = vpop.eup %4858  ;;  %4878 = vpow2.f32 %v1051_v48  ;;  %v1055_v42 = vmul.f32 1.442695, %v971_v54  ;;  %v1057_v18 = vmul.f32 1.442695, %v972_v13  ;;  %v2126_v15 = vadd.f32 %v6366_v36, %v6361_v9  ;;  %v8519_v54 = vld [vmem:[#allocation19_spill] sm:$0xff] }
 0x304   : > { %v2019_v6 = vmul.f32 1.442695, %v1937_v35  ;;  %v6373_v21 = vpop.eup %4860  ;;  %4880 = vpow2.f32 %v1053_v49  ;;  %v2021_v5 = vmul.f32 1.442695, %v1938_v10  ;;  %v1855_v44 = vpop.xlane.xlu1 %1854 }
 0x305   : > { %v890_v28 = vpop.xlane.xlu0 %889  ;;  %v6377_v23 = vpop.eup %4862  ;;  %4882 = vpow2.f32 %v1055_v42  ;;  %v1939_v16 = vsub.f32 %v5993_v0, %v1855_v44  ;;  %v1940_v14 = vsub.f32 %v5999_v61, %v1855_v44  ;;  %1162 = vadd.xlane.f32.xlu1 %v1161_v57  ;;  %2127 = vadd.xlane.f32.xlu0 %v2126_v15  ;;  %v2129_v62 = vadd.f32 %v6373_v21, %v6371_v59  ;;  %v8520_v44 = vld [vmem:[#allocation20_spill] sm:$0xff] }
 0x306   : > { %v973_v46 = vsub.f32 %v5995_v25, %v890_v28  ;;  %v6382_v17 = vpop.eup %4864  ;;  %4884 = vpow2.f32 %v1057_v18  ;;  %v974_v33 = vsub.f32 %v5997_v60, %v890_v28 }
 0x307   : > { %v6387_v27 = vpop.eup %4866  ;;  %4886 = vpow2.f32 %v2019_v6  ;;  %v2023_v4 = vmul.f32 1.442695, %v1939_v16  ;;  %v2025_v51 = vmul.f32 1.442695, %v1940_v14  ;;  %v1164_v61 = vadd.f32 %v6382_v17, %v6377_v23  ;;  %v8521_v16 = vld [vmem:[#allocation23_spill] sm:$0xff] }
 0x308   : > { %v1059_v0 = vmul.f32 1.442695, %v973_v46  ;;  %v6389_v53 = vpop.eup %4868  ;;  %4888 = vpow2.f32 %v2021_v5  ;;  %v1061_v25 = vmul.f32 1.442695, %v974_v33  ;;  %v893_v29 = vpop.xlane.xlu1 %892  ;;  %v8522_v46 = vld [vmem:[#allocation21_spill] sm:$0xff] }
 0x309   : > { %v1858_v48 = vpop.xlane.xlu0 %1857  ;;  %v6393_v49 = vpop.eup %4870  ;;  %4890 = vpow2.f32 %v2023_v4  ;;  %v975_v60 = vsub.f32 %v6007_v7, %v893_v29  ;;  %v976_v55 = vsub.f32 %v6009_v41, %v893_v29  ;;  %2130 = vadd.xlane.f32.xlu1 %v2129_v62  ;;  %1165 = vadd.xlane.f32.xlu0 %v1164_v61  ;;  %v1167_v35 = vadd.f32 %v6389_v53, %v6387_v27  ;;  %v8523_v4 = vld [vmem:[#allocation22_spill] sm:$0xff] }
 0x30a   : > { %v1941_v12 = vsub.f32 %v6005_v22, %v1858_v48  ;;  %v6398_v8 = vpop.eup %4872  ;;  %4892 = vpow2.f32 %v2025_v51  ;;  %v1942_v13 = vsub.f32 %v8519_v54, %v1858_v48 }
 0x30b   : > { %v6403_v10 = vpop.eup %4874  ;;  %4894 = vpow2.f32 %v1059_v0  ;;  %v1063_v57 = vmul.f32 1.442695, %v975_v60  ;;  %v1065_v42 = vmul.f32 1.442695, %v976_v55  ;;  %v2132_v41 = vadd.f32 %v6398_v8, %v6393_v49 }
 0x30c   : > { %v2027_v7 = vmul.f32 1.442695, %v1941_v12  ;;  %v6405_v18 = vpop.eup %4876  ;;  %4896 = vpow2.f32 %v1061_v25  ;;  %v2029_v22 = vmul.f32 1.442695, %v1942_v13  ;;  %v1861_v6 = vpop.xlane.xlu1 %1860 }
 0x30d   : > { %v896_v5 = vpop.xlane.xlu0 %895  ;;  %v6409_v15 = vpop.eup %4878  ;;  %4898 = vpow2.f32 %v1063_v57  ;;  %v1943_v28 = vsub.f32 %v8520_v44, %v1861_v6  ;;  %v1944_v14 = vsub.f32 %v8521_v16, %v1861_v6  ;;  %1168 = vadd.xlane.f32.xlu1 %v1167_v35  ;;  %2133 = vadd.xlane.f32.xlu0 %v2132_v41  ;;  %v2135_v0 = vadd.f32 %v6405_v18, %v6403_v10  ;;  %v8526_v57 = vld [vmem:[#allocation25_spill] sm:$0xff]  ;;  %v8527_v41 = vld [vmem:[#allocation26_spill] sm:$0xff] }
 0x30e   : > { %v977_v33 = vsub.f32 %v8522_v46, %v896_v5  ;;  %v6414_v62 = vpop.eup %4880  ;;  %4900 = vpow2.f32 %v1065_v42  ;;  %v978_v51 = vsub.f32 %v8523_v4, %v896_v5 }
 0x30f   : > { %v6419_v25 = vpop.eup %4882  ;;  %4902 = vpow2.f32 %v2027_v7  ;;  %v2031_v61 = vmul.f32 1.442695, %v1943_v28  ;;  %v2033_v29 = vmul.f32 1.442695, %v1944_v14  ;;  %v1170_v12 = vadd.f32 %v6414_v62, %v6409_v15  ;;  %v8528_v7 = vld [vmem:[#allocation24_spill] sm:$0xff] }
 0x310   : > { %8524 = vst [vmem:[#allocation19_spill] sm:$0xff] %v6419_v25  ;;  %v1067_v48 = vmul.f32 1.442695, %v977_v33  ;;  %v6421_v60 = vpop.eup %4884  ;;  %4904 = vpow2.f32 %v2029_v22  ;;  %v1069_v55 = vmul.f32 1.442695, %v978_v51  ;;  %v899_v54 = vpop.xlane.xlu1 %898  ;;  %v8529_v22 = vld [vmem:[#allocation27_spill] sm:$0xff] }
 0x311   : > { %8525 = vst [vmem:[#allocation20_spill] sm:$0xff] %v6421_v60  ;;  %v1864_v13 = vpop.xlane.xlu0 %1863  ;;  %v6425_v35 = vpop.eup %4886  ;;  %4906 = vpow2.f32 %v2031_v61  ;;  %v979_v42 = vsub.f32 %v8526_v57, %v899_v54  ;;  %v980_v6 = vsub.f32 %v8527_v41, %v899_v54  ;;  %2136 = vadd.xlane.f32.xlu1 %v2135_v0  ;;  %1171 = vadd.xlane.f32.xlu0 %v1170_v12  ;;  %v8534_v41 = vld [vmem:[#allocation31_spill] sm:$0xff] }
 0x312   : > { %v1945_v5 = vsub.f32 %v8528_v7, %v1864_v13  ;;  %v6430_v44 = vpop.eup %4888  ;;  %4908 = vpow2.f32 %v2033_v29  ;;  %v1946_v28 = vsub.f32 %v8529_v22, %v1864_v13  ;;  %v1173_v16 = vadd.f32 %v6421_v60, %v6419_v25  ;;  %v8533_v13 = vld [vmem:[#allocation28_spill] sm:$0xff] }
 0x313   : > { %v6435_v14 = vpop.eup %4890  ;;  %4910 = vpow2.f32 %v1067_v48  ;;  %v1071_v46 = vmul.f32 1.442695, %v979_v42  ;;  %v1073_v33 = vmul.f32 1.442695, %v980_v6  ;;  %v2138_v29 = vadd.f32 %v6430_v44, %v6425_v35  ;;  %v8535_v48 = vld [vmem:[#allocation29_spill] sm:$0xff] }
 0x314   : > { %8530 = vst [vmem:[#allocation23_spill] sm:$0xff] %v6435_v14  ;;  %v2035_v4 = vmul.f32 1.442695, %v1945_v5  ;;  %v6437_v51 = vpop.eup %4892  ;;  %4912 = vpow2.f32 %v1069_v55  ;;  %v2037_v61 = vmul.f32 1.442695, %v1946_v28  ;;  %v1867_v0 = vpop.xlane.xlu1 %1866  ;;  %v8537_v55 = vld [vmem:[#allocation30_spill] sm:$0xff] }
 0x315   : > { %8531 = vst [vmem:[#allocation21_spill] sm:$0xff] %v6437_v51  ;;  %v902_v12 = vpop.xlane.xlu0 %901  ;;  %v6441_v54 = vpop.eup %4894  ;;  %4914 = vpow2.f32 %v1071_v46  ;;  %v1947_v57 = vsub.f32 %v8533_v13, %v1867_v0  ;;  %v1948_v7 = vsub.f32 %v8534_v41, %v1867_v0  ;;  %1174 = vadd.xlane.f32.xlu1 %v1173_v16  ;;  %2139 = vadd.xlane.f32.xlu0 %v2138_v29 }
 0x316   : > { %8532 = vst [vmem:[#allocation22_spill] sm:$0xff] %v6441_v54  ;;  %v981_v42 = vsub.f32 %v8535_v48, %v902_v12  ;;  %v6446_v6 = vpop.eup %4896  ;;  %4916 = vpow2.f32 %v1073_v33  ;;  %v982_v5 = vsub.f32 %v8537_v55, %v902_v12  ;;  %v2141_v22 = vadd.f32 %v6437_v51, %v6435_v14  ;;  %v8541_v12 = vld [vmem:[#allocation33_spill] sm:$0xff]  ;;  %v8542_v55 = vld [vmem:[#allocation34_spill] sm:$0xff] }
 0x317   : > { %8536 = vst [vmem:[#allocation25_spill] sm:$0xff] %v6446_v6  ;;  %v6451_v28 = vpop.eup %4898  ;;  %4918 = vpow2.f32 %v2035_v4  ;;  %v2039_v46 = vmul.f32 1.442695, %v1947_v57  ;;  %v2041_v25 = vmul.f32 1.442695, %v1948_v7  ;;  %v1176_v33 = vadd.f32 %v6446_v6, %v6441_v54  ;;  %v8543_v4 = vld [vmem:[#allocation32_spill] sm:$0xff] }
 0x318   : > { %8538 = vst [vmem:[#allocation26_spill] sm:$0xff] %v6451_v28  ;;  %v1075_v13 = vmul.f32 1.442695, %v981_v42  ;;  %v6453_v60 = vpop.eup %4900  ;;  %4920 = vpow2.f32 %v2037_v61  ;;  %v1077_v0 = vmul.f32 1.442695, %v982_v5  ;;  %v905_v16 = vpop.xlane.xlu1 %904  ;;  %v8545_v61 = vld [vmem:[#allocation35_spill] sm:$0xff] }
 0x319   : > { %8539 = vst [vmem:[#allocation24_spill] sm:$0xff] %v6453_v60  ;;  %v1870_v29 = vpop.xlane.xlu0 %1869  ;;  %v6457_v41 = vpop.eup %4902  ;;  %4922 = vpow2.f32 %v2039_v46  ;;  %v983_v48 = vsub.f32 %v8541_v12, %v905_v16  ;;  %v984_v14 = vsub.f32 %v8542_v55, %v905_v16  ;;  %2142 = vadd.xlane.f32.xlu1 %v2141_v22  ;;  %1177 = vadd.xlane.f32.xlu0 %v1176_v33 }
 0x31a   : > { %8540 = vst [vmem:[#allocation27_spill] sm:$0xff] %v6457_v41  ;;  %v1949_v57 = vsub.f32 %v8543_v4, %v1870_v29  ;;  %v6462_v7 = vpop.eup %4904  ;;  %4924 = vpow2.f32 %v2041_v25  ;;  %v1950_v42 = vsub.f32 %v8545_v61, %v1870_v29  ;;  %v1179_v5 = vadd.f32 %v6453_v60, %v6451_v28  ;;  %v8549_v29 = vld [vmem:[#allocation36_spill] sm:$0xff]  ;;  %v8550_v61 = vld [vmem:[#allocation39_spill] sm:$0xff] }
 0x31b   : > { %8544 = vst [vmem:[#allocation28_spill] sm:$0xff] %v6462_v7  ;;  %v6467_v51 = vpop.eup %4906  ;;  %4926 = vpow2.f32 %v1075_v13  ;;  %v1079_v46 = vmul.f32 1.442695, %v983_v48  ;;  %v1081_v54 = vmul.f32 1.442695, %v984_v14  ;;  %v2144_v25 = vadd.f32 %v6462_v7, %v6457_v41  ;;  %v8551_v13 = vld [vmem:[#allocation37_spill] sm:$0xff] }
 0x31c   : > { %8546 = vst [vmem:[#allocation31_spill] sm:$0xff] %v6467_v51  ;;  %v2043_v12 = vmul.f32 1.442695, %v1949_v57  ;;  %v6469_v6 = vpop.eup %4908  ;;  %4928 = vpow2.f32 %v1077_v0  ;;  %v2045_v16 = vmul.f32 1.442695, %v1950_v42  ;;  %v1873_v22 = vpop.xlane.xlu1 %1872  ;;  %v8553_v0 = vld [vmem:[#allocation38_spill] sm:$0xff] }
 0x31d   : > { %8547 = vst [vmem:[#allocation29_spill] sm:$0xff] %v6469_v6  ;;  %v908_v33 = vpop.xlane.xlu0 %907  ;;  %v6473_v55 = vpop.eup %4910  ;;  %4930 = vpow2.f32 %v1079_v46  ;;  %v1951_v4 = vsub.f32 %v8549_v29, %v1873_v22  ;;  %v1952_v28 = vsub.f32 %v8550_v61, %v1873_v22  ;;  %1180 = vadd.xlane.f32.xlu1 %v1179_v5  ;;  %2145 = vadd.xlane.f32.xlu0 %v2144_v25 }
 0x31e   : > { %8548 = vst [vmem:[#allocation30_spill] sm:$0xff] %v6473_v55  ;;  %v985_v48 = vsub.f32 %v8551_v13, %v908_v33  ;;  %v6478_v14 = vpop.eup %4912  ;;  %4932 = vpow2.f32 %v1081_v54  ;;  %v986_v57 = vsub.f32 %v8553_v0, %v908_v33  ;;  %v2147_v42 = vadd.f32 %v6469_v6, %v6467_v51  ;;  %v8557_v33 = vld [vmem:[#allocation41_spill] sm:$0xff]  ;;  %v8558_v0 = vld [vmem:[#allocation42_spill] sm:$0xff] }
 0x31f   : > { %8552 = vst [vmem:[#allocation33_spill] sm:$0xff] %v6478_v14  ;;  %v6483_v60 = vpop.eup %4914  ;;  %4934 = vpow2.f32 %v2043_v12  ;;  %v2047_v46 = vmul.f32 1.442695, %v1951_v4  ;;  %v2049_v41 = vmul.f32 1.442695, %v1952_v28  ;;  %v1182_v54 = vadd.f32 %v6478_v14, %v6473_v55  ;;  %v8559_v12 = vld [vmem:[#allocation40_spill] sm:$0xff] }
 0x320   : > { %8554 = vst [vmem:[#allocation34_spill] sm:$0xff] %v6483_v60  ;;  %v1083_v29 = vmul.f32 1.442695, %v985_v48  ;;  %v6485_v7 = vpop.eup %4916  ;;  %4936 = vpow2.f32 %v2045_v16  ;;  %v1085_v22 = vmul.f32 1.442695, %v986_v57  ;;  %v911_v5 = vpop.xlane.xlu1 %910  ;;  %v8561_v16 = vld [vmem:[#allocation43_spill] sm:$0xff] }
 0x321   : > { %8555 = vst [vmem:[#allocation32_spill] sm:$0xff] %v6485_v7  ;;  %v1876_v25 = vpop.xlane.xlu0 %1875  ;;  %v6489_v61 = vpop.eup %4918  ;;  %4938 = vpow2.f32 %v2047_v46  ;;  %v987_v13 = vsub.f32 %v8557_v33, %v911_v5  ;;  %v988_v51 = vsub.f32 %v8558_v0, %v911_v5  ;;  %2148 = vadd.xlane.f32.xlu1 %v2147_v42  ;;  %1183 = vadd.xlane.f32.xlu0 %v1182_v54 }
 0x322   : > { %8556 = vst [vmem:[#allocation35_spill] sm:$0xff] %v6489_v61  ;;  %v1953_v4 = vsub.f32 %v8559_v12, %v1876_v25  ;;  %v6494_v28 = vpop.eup %4920  ;;  %4940 = vpow2.f32 %v2049_v41  ;;  %v1954_v48 = vsub.f32 %v8561_v16, %v1876_v25  ;;  %v1185_v57 = vadd.f32 %v6485_v7, %v6483_v60  ;;  %v8565_v25 = vld [vmem:[#allocation44_spill] sm:$0xff]  ;;  %v8566_v16 = vld [vmem:[#allocation47_spill] sm:$0xff] }
 0x323   : > { %8560 = vst [vmem:[#allocation36_spill] sm:$0xff] %v6494_v28  ;;  %v6499_v6 = vpop.eup %4922  ;;  %4942 = vpow2.f32 %v1083_v29  ;;  %v1087_v46 = vmul.f32 1.442695, %v987_v13  ;;  %v1089_v55 = vmul.f32 1.442695, %v988_v51  ;;  %v2150_v41 = vadd.f32 %v6494_v28, %v6489_v61  ;;  %v8567_v29 = vld [vmem:[#allocation45_spill] sm:$0xff] }
 0x324   : > { %8562 = vst [vmem:[#allocation39_spill] sm:$0xff] %v6499_v6  ;;  %v2051_v33 = vmul.f32 1.442695, %v1953_v4  ;;  %v6501_v14 = vpop.eup %4924  ;;  %4944 = vpow2.f32 %v1085_v22  ;;  %v2053_v5 = vmul.f32 1.442695, %v1954_v48  ;;  %v1879_v42 = vpop.xlane.xlu1 %1878  ;;  %v8569_v22 = vld [vmem:[#allocation46_spill] sm:$0xff] }
 0x325   : > { %8563 = vst [vmem:[#allocation37_spill] sm:$0xff] %v6501_v14  ;;  %v914_v54 = vpop.xlane.xlu0 %913  ;;  %v6505_v0 = vpop.eup %4926  ;;  %4946 = vpow2.f32 %v1087_v46  ;;  %v1955_v12 = vsub.f32 %v8565_v25, %v1879_v42  ;;  %v1956_v60 = vsub.f32 %v8566_v16, %v1879_v42  ;;  %1186 = vadd.xlane.f32.xlu1 %v1185_v57  ;;  %2151 = vadd.xlane.f32.xlu0 %v2150_v41 }
 0x326   : > { %8564 = vst [vmem:[#allocation38_spill] sm:$0xff] %v6505_v0  ;;  %v989_v13 = vsub.f32 %v8567_v29, %v914_v54  ;;  %v6510_v51 = vpop.eup %4928  ;;  %4948 = vpow2.f32 %v1089_v55  ;;  %v990_v4 = vsub.f32 %v8569_v22, %v914_v54  ;;  %v2153_v48 = vadd.f32 %v6501_v14, %v6499_v6  ;;  %v8573_v54 = vld [vmem:[#allocation49_spill] sm:$0xff]  ;;  %v8574_v22 = vld [vmem:[#allocation50_spill] sm:$0xff] }
 0x327   : > { %8568 = vst [vmem:[#allocation41_spill] sm:$0xff] %v6510_v51  ;;  %v6515_v7 = vpop.eup %4930  ;;  %4950 = vpow2.f32 %v2051_v33  ;;  %v2055_v46 = vmul.f32 1.442695, %v1955_v12  ;;  %v2057_v61 = vmul.f32 1.442695, %v1956_v60  ;;  %v1188_v55 = vadd.f32 %v6510_v51, %v6505_v0  ;;  %v8575_v33 = vld [vmem:[#allocation48_spill] sm:$0xff] }
 0x328   : > { %8570 = vst [vmem:[#allocation42_spill] sm:$0xff] %v6515_v7  ;;  %v1091_v25 = vmul.f32 1.442695, %v989_v13  ;;  %v6517_v28 = vpop.eup %4932  ;;  %4952 = vpow2.f32 %v2053_v5  ;;  %v1093_v42 = vmul.f32 1.442695, %v990_v4  ;;  %v917_v57 = vpop.xlane.xlu1 %916  ;;  %v8577_v5 = vld [vmem:[#allocation51_spill] sm:$0xff] }
 0x329   : > { %8571 = vst [vmem:[#allocation40_spill] sm:$0xff] %v6517_v28  ;;  %v1882_v41 = vpop.xlane.xlu0 %1881  ;;  %v6521_v16 = vpop.eup %4934  ;;  %4954 = vpow2.f32 %v2055_v46  ;;  %v991_v29 = vsub.f32 %v8573_v54, %v917_v57  ;;  %v992_v6 = vsub.f32 %v8574_v22, %v917_v57  ;;  %2154 = vadd.xlane.f32.xlu1 %v2153_v48  ;;  %1189 = vadd.xlane.f32.xlu0 %v1188_v55 }
 0x32a   : > { %8572 = vst [vmem:[#allocation43_spill] sm:$0xff] %v6521_v16  ;;  %v1957_v12 = vsub.f32 %v8575_v33, %v1882_v41  ;;  %v6526_v60 = vpop.eup %4936  ;;  %4956 = vpow2.f32 %v2057_v61  ;;  %v1958_v13 = vsub.f32 %v8577_v5, %v1882_v41  ;;  %v1191_v4 = vadd.f32 %v6517_v28, %v6515_v7  ;;  %v8581_v41 = vld [vmem:[#allocation52_spill] sm:$0xff]  ;;  %v8582_v5 = vld [vmem:[#allocation55_spill] sm:$0xff] }
 0x32b   : > { %8576 = vst [vmem:[#allocation44_spill] sm:$0xff] %v6526_v60  ;;  %v6531_v14 = vpop.eup %4938  ;;  %4958 = vpow2.f32 %v1091_v25  ;;  %v1095_v46 = vmul.f32 1.442695, %v991_v29  ;;  %v1097_v0 = vmul.f32 1.442695, %v992_v6  ;;  %v2156_v61 = vadd.f32 %v6526_v60, %v6521_v16  ;;  %v8583_v25 = vld [vmem:[#allocation53_spill] sm:$0xff] }
 0x32c   : > { %8578 = vst [vmem:[#allocation47_spill] sm:$0xff] %v6531_v14  ;;  %v2059_v54 = vmul.f32 1.442695, %v1957_v12  ;;  %v6533_v51 = vpop.eup %4940  ;;  %4960 = vpow2.f32 %v1093_v42  ;;  %v2061_v57 = vmul.f32 1.442695, %v1958_v13  ;;  %v1885_v48 = vpop.xlane.xlu1 %1884  ;;  %v8585_v42 = vld [vmem:[#allocation54_spill] sm:$0xff] }
 0x32d   : > { %8579 = vst [vmem:[#allocation45_spill] sm:$0xff] %v6533_v51  ;;  %v920_v55 = vpop.xlane.xlu0 %919  ;;  %v6537_v22 = vpop.eup %4942  ;;  %4962 = vpow2.f32 %v1095_v46  ;;  %v1959_v33 = vsub.f32 %v8581_v41, %v1885_v48  ;;  %v1960_v7 = vsub.f32 %v8582_v5, %v1885_v48  ;;  %1192 = vadd.xlane.f32.xlu1 %v1191_v4  ;;  %2157 = vadd.xlane.f32.xlu0 %v2156_v61 }
 0x32e   : > { %8580 = vst [vmem:[#allocation46_spill] sm:$0xff] %v6537_v22  ;;  %v993_v29 = vsub.f32 %v8583_v25, %v920_v55  ;;  %v6542_v6 = vpop.eup %4944  ;;  %4964 = vpow2.f32 %v1097_v0  ;;  %v994_v12 = vsub.f32 %v8585_v42, %v920_v55  ;;  %v2159_v13 = vadd.f32 %v6533_v51, %v6531_v14  ;;  %v8589_v55 = vld [vmem:[#allocation57_spill] sm:$0xff]  ;;  %v8590_v42 = vld [vmem:[#allocation58_spill] sm:$0xff] }
 0x32f   : > { %8584 = vst [vmem:[#allocation49_spill] sm:$0xff] %v6542_v6  ;;  %v6547_v28 = vpop.eup %4946  ;;  %4966 = vpow2.f32 %v2059_v54  ;;  %v2063_v46 = vmul.f32 1.442695, %v1959_v33  ;;  %v2065_v16 = vmul.f32 1.442695, %v1960_v7  ;;  %v1194_v0 = vadd.f32 %v6542_v6, %v6537_v22  ;;  %v8591_v54 = vld [vmem:[#allocation56_spill] sm:$0xff] }
 0x330   : > { %8586 = vst [vmem:[#allocation50_spill] sm:$0xff] %v6547_v28  ;;  %v1099_v41 = vmul.f32 1.442695, %v993_v29  ;;  %v6549_v60 = vpop.eup %4948  ;;  %4968 = vpow2.f32 %v2061_v57  ;;  %v1101_v48 = vmul.f32 1.442695, %v994_v12  ;;  %v923_v4 = vpop.xlane.xlu1 %922  ;;  %v8593_v57 = vld [vmem:[#allocation59_spill] sm:$0xff] }
 0x331   : > { %8587 = vst [vmem:[#allocation48_spill] sm:$0xff] %v6549_v60  ;;  %v1888_v61 = vpop.xlane.xlu0 %1887  ;;  %v6553_v5 = vpop.eup %4950  ;;  %4970 = vpow2.f32 %v2063_v46  ;;  %v995_v25 = vsub.f32 %v8589_v55, %v923_v4  ;;  %v996_v14 = vsub.f32 %v8590_v42, %v923_v4  ;;  %2160 = vadd.xlane.f32.xlu1 %v2159_v13  ;;  %1195 = vadd.xlane.f32.xlu0 %v1194_v0 }
 0x332   : > { %8588 = vst [vmem:[#allocation51_spill] sm:$0xff] %v6553_v5  ;;  %v1961_v33 = vsub.f32 %v8591_v54, %v1888_v61  ;;  %v6558_v7 = vpop.eup %4952  ;;  %4972 = vpow2.f32 %v2065_v16  ;;  %v1962_v29 = vsub.f32 %v8593_v57, %v1888_v61  ;;  %v1197_v12 = vadd.f32 %v6549_v60, %v6547_v28  ;;  %v8597_v61 = vld [vmem:[#allocation60_spill] sm:$0xff]  ;;  %v8598_v57 = vld [vmem:[#allocation63_spill] sm:$0xff] }
 0x333   : > { %8592 = vst [vmem:[#allocation52_spill] sm:$0xff] %v6558_v7  ;;  %v6563_v51 = vpop.eup %4954  ;;  %4974 = vpow2.f32 %v1099_v41  ;;  %v1103_v46 = vmul.f32 1.442695, %v995_v25  ;;  %v1105_v22 = vmul.f32 1.442695, %v996_v14  ;;  %v2162_v16 = vadd.f32 %v6558_v7, %v6553_v5  ;;  %v8599_v41 = vld [vmem:[#allocation61_spill] sm:$0xff] }
 0x334   : > { %8594 = vst [vmem:[#allocation55_spill] sm:$0xff] %v6563_v51  ;;  %v2067_v55 = vmul.f32 1.442695, %v1961_v33  ;;  %v6565_v6 = vpop.eup %4956  ;;  %4976 = vpow2.f32 %v1101_v48  ;;  %v2069_v4 = vmul.f32 1.442695, %v1962_v29  ;;  %v1891_v13 = vpop.xlane.xlu1 %1890  ;;  %v8601_v48 = vld [vmem:[#allocation62_spill] sm:$0xff] }
 0x335   : > { %8595 = vst [vmem:[#allocation53_spill] sm:$0xff] %v6565_v6  ;;  %v926_v0 = vpop.xlane.xlu0 %925  ;;  %v6569_v42 = vpop.eup %4958  ;;  %4978 = vpow2.f32 %v1103_v46  ;;  %v1963_v54 = vsub.f32 %v8597_v61, %v1891_v13  ;;  %v1964_v28 = vsub.f32 %v8598_v57, %v1891_v13  ;;  %1198 = vadd.xlane.f32.xlu1 %v1197_v12  ;;  %2163 = vadd.xlane.f32.xlu0 %v2162_v16 }
 0x336   : > { %8596 = vst [vmem:[#allocation54_spill] sm:$0xff] %v6569_v42  ;;  %v997_v25 = vsub.f32 %v8599_v41, %v926_v0  ;;  %v6574_v14 = vpop.eup %4960  ;;  %4980 = vpow2.f32 %v1105_v22  ;;  %v998_v33 = vsub.f32 %v8601_v48, %v926_v0  ;;  %v2165_v29 = vadd.f32 %v6565_v6, %v6563_v51  ;;  %v8605_v0 = vld [vmem:[#allocation65_spill] sm:$0xff]  ;;  %v8606_v48 = vld [vmem:[#allocation66_spill] sm:$0xff] }
 0x337   : > { %8600 = vst [vmem:[#allocation57_spill] sm:$0xff] %v6574_v14  ;;  %v6579_v60 = vpop.eup %4962  ;;  %4982 = vpow2.f32 %v2067_v55  ;;  %v2071_v46 = vmul.f32 1.442695, %v1963_v54  ;;  %v2073_v5 = vmul.f32 1.442695, %v1964_v28  ;;  %v1200_v22 = vadd.f32 %v6574_v14, %v6569_v42  ;;  %v8607_v55 = vld [vmem:[#allocation64_spill] sm:$0xff] }
 0x338   : > { %8602 = vst [vmem:[#allocation58_spill] sm:$0xff] %v6579_v60  ;;  %v1107_v61 = vmul.f32 1.442695, %v997_v25  ;;  %v6581_v7 = vpop.eup %4964  ;;  %4984 = vpow2.f32 %v2069_v4  ;;  %v1109_v13 = vmul.f32 1.442695, %v998_v33  ;;  %v929_v12 = vpop.xlane.xlu1 %928  ;;  %v8609_v4 = vld [vmem:[#allocation67_spill] sm:$0xff] }
 0x339   : > { %8603 = vst [vmem:[#allocation56_spill] sm:$0xff] %v6581_v7  ;;  %v1894_v16 = vpop.xlane.xlu0 %1893  ;;  %v6585_v57 = vpop.eup %4966  ;;  %4986 = vpow2.f32 %v2071_v46  ;;  %v999_v41 = vsub.f32 %v8605_v0, %v929_v12  ;;  %v1000_v51 = vsub.f32 %v8606_v48, %v929_v12  ;;  %2166 = vadd.xlane.f32.xlu1 %v2165_v29  ;;  %1201 = vadd.xlane.f32.xlu0 %v1200_v22 }
 0x33a   : > { %8604 = vst [vmem:[#allocation59_spill] sm:$0xff] %v6585_v57  ;;  %v1965_v54 = vsub.f32 %v8607_v55, %v1894_v16  ;;  %v6590_v28 = vpop.eup %4968  ;;  %4988 = vpow2.f32 %v2073_v5  ;;  %v1966_v25 = vsub.f32 %v8609_v4, %v1894_v16  ;;  %v1203_v33 = vadd.f32 %v6581_v7, %v6579_v60  ;;  %v8613_v16 = vld [vmem:[#allocation68_spill] sm:$0xff]  ;;  %v8614_v4 = vld [vmem:[#allocation71_spill] sm:$0xff] }
 0x33b   : > { %8608 = vst [vmem:[#allocation60_spill] sm:$0xff] %v6590_v28  ;;  %v6595_v6 = vpop.eup %4970  ;;  %4990 = vpow2.f32 %v1107_v61  ;;  %v1111_v46 = vmul.f32 1.442695, %v999_v41  ;;  %v1113_v42 = vmul.f32 1.442695, %v1000_v51  ;;  %v2168_v5 = vadd.f32 %v6590_v28, %v6585_v57  ;;  %v8615_v61 = vld [vmem:[#allocation69_spill] sm:$0xff] }
 0x33c   : > { %8610 = vst [vmem:[#allocation63_spill] sm:$0xff] %v6595_v6  ;;  %v2075_v0 = vmul.f32 1.442695, %v1965_v54  ;;  %v6597_v14 = vpop.eup %4972  ;;  %4992 = vpow2.f32 %v1109_v13  ;;  %v2077_v12 = vmul.f32 1.442695, %v1966_v25  ;;  %v1897_v29 = vpop.xlane.xlu1 %1896  ;;  %v8617_v13 = vld [vmem:[#allocation70_spill] sm:$0xff] }
 0x33d   : > { %8611 = vst [vmem:[#allocation61_spill] sm:$0xff] %v6597_v14  ;;  %v932_v22 = vpop.xlane.xlu0 %931  ;;  %v6601_v48 = vpop.eup %4974  ;;  %4994 = vpow2.f32 %v1111_v46  ;;  %v1967_v55 = vsub.f32 %v8613_v16, %v1897_v29  ;;  %v1968_v60 = vsub.f32 %v8614_v4, %v1897_v29  ;;  %1204 = vadd.xlane.f32.xlu1 %v1203_v33  ;;  %2169 = vadd.xlane.f32.xlu0 %v2168_v5 }
 0x33e   : > { %8612 = vst [vmem:[#allocation62_spill] sm:$0xff] %v6601_v48  ;;  %v1001_v41 = vsub.f32 %v8615_v61, %v932_v22  ;;  %v6606_v51 = vpop.eup %4976  ;;  %4996 = vpow2.f32 %v1113_v42  ;;  %v1002_v54 = vsub.f32 %v8617_v13, %v932_v22  ;;  %v2171_v25 = vadd.f32 %v6597_v14, %v6595_v6  ;;  %v8621_v22 = vld [vmem:[#allocation73_spill] sm:$0xff]  ;;  %v8622_v13 = vld [vmem:[#allocation74_spill] sm:$0xff] }
 0x33f   : > { %8616 = vst [vmem:[#allocation65_spill] sm:$0xff] %v6606_v51  ;;  %v6611_v7 = vpop.eup %4978  ;;  %4998 = vpow2.f32 %v2075_v0  ;;  %v2079_v46 = vmul.f32 1.442695, %v1967_v55  ;;  %v2081_v57 = vmul.f32 1.442695, %v1968_v60  ;;  %v1206_v42 = vadd.f32 %v6606_v51, %v6601_v48  ;;  %v8623_v0 = vld [vmem:[#allocation72_spill] sm:$0xff] }
 0x340   : > { %8618 = vst [vmem:[#allocation66_spill] sm:$0xff] %v6611_v7  ;;  %v1115_v16 = vmul.f32 1.442695, %v1001_v41  ;;  %v6613_v28 = vpop.eup %4980  ;;  %5000 = vpow2.f32 %v2077_v12  ;;  %v1117_v29 = vmul.f32 1.442695, %v1002_v54  ;;  %v935_v33 = vpop.xlane.xlu1 %934  ;;  %v8625_v12 = vld [vmem:[#allocation75_spill] sm:$0xff] }
 0x341   : > { %8619 = vst [vmem:[#allocation64_spill] sm:$0xff] %v6613_v28  ;;  %v1900_v5 = vpop.xlane.xlu0 %1899  ;;  %v6617_v4 = vpop.eup %4982  ;;  %5002 = vpow2.f32 %v2079_v46  ;;  %v1003_v61 = vsub.f32 %v8621_v22, %v935_v33  ;;  %v1004_v6 = vsub.f32 %v8622_v13, %v935_v33  ;;  %2172 = vadd.xlane.f32.xlu1 %v2171_v25  ;;  %1207 = vadd.xlane.f32.xlu0 %v1206_v42 }
 0x342   : > { %8620 = vst [vmem:[#allocation67_spill] sm:$0xff] %v6617_v4  ;;  %v1969_v55 = vsub.f32 %v8623_v0, %v1900_v5  ;;  %v6622_v60 = vpop.eup %4984  ;;  %5004 = vpow2.f32 %v2081_v57  ;;  %v1970_v41 = vsub.f32 %v8625_v12, %v1900_v5  ;;  %v1209_v54 = vadd.f32 %v6613_v28, %v6611_v7  ;;  %v8629_v5 = vld [vmem:[#allocation76_spill] sm:$0xff]  ;;  %v8630_v12 = vld [vmem:[#allocation79_spill] sm:$0xff] }
 0x343   : > { %8624 = vst [vmem:[#allocation68_spill] sm:$0xff] %v6622_v60  ;;  %v6627_v14 = vpop.eup %4986  ;;  %5006 = vpow2.f32 %v1115_v16  ;;  %v1119_v46 = vmul.f32 1.442695, %v1003_v61  ;;  %v1121_v48 = vmul.f32 1.442695, %v1004_v6  ;;  %v2174_v57 = vadd.f32 %v6622_v60, %v6617_v4  ;;  %v8631_v16 = vld [vmem:[#allocation77_spill] sm:$0xff] }
 0x344   : > { %8626 = vst [vmem:[#allocation71_spill] sm:$0xff] %v6627_v14  ;;  %v2083_v22 = vmul.f32 1.442695, %v1969_v55  ;;  %v6629_v51 = vpop.eup %4988  ;;  %5008 = vpow2.f32 %v1117_v29  ;;  %v2085_v33 = vmul.f32 1.442695, %v1970_v41  ;;  %v1903_v25 = vpop.xlane.xlu1 %1902  ;;  %v8633_v29 = vld [vmem:[#allocation78_spill] sm:$0xff] }
 0x345   : > { %8627 = vst [vmem:[#allocation69_spill] sm:$0xff] %v6629_v51  ;;  %v938_v42 = vpop.xlane.xlu0 %937  ;;  %v6633_v13 = vpop.eup %4990  ;;  %5010 = vpow2.f32 %v1119_v46  ;;  %v1971_v0 = vsub.f32 %v8629_v5, %v1903_v25  ;;  %v1972_v7 = vsub.f32 %v8630_v12, %v1903_v25  ;;  %1210 = vadd.xlane.f32.xlu1 %v1209_v54  ;;  %2175 = vadd.xlane.f32.xlu0 %v2174_v57 }
 0x346   : > { %8628 = vst [vmem:[#allocation70_spill] sm:$0xff] %v6633_v13  ;;  %v1005_v61 = vsub.f32 %v8631_v16, %v938_v42  ;;  %v6638_v6 = vpop.eup %4992  ;;  %5012 = vpow2.f32 %v1121_v48  ;;  %v1006_v55 = vsub.f32 %v8633_v29, %v938_v42  ;;  %v2177_v41 = vadd.f32 %v6629_v51, %v6627_v14  ;;  %v8637_v42 = vld [vmem:[#allocation81_spill] sm:$0xff]  ;;  %v8638_v29 = vld [vmem:[#allocation82_spill] sm:$0xff] }
 0x347   : > { %8632 = vst [vmem:[#allocation73_spill] sm:$0xff] %v6638_v6  ;;  %v6643_v28 = vpop.eup %4994  ;;  %5014 = vpow2.f32 %v2083_v22  ;;  %v2087_v46 = vmul.f32 1.442695, %v1971_v0  ;;  %v2089_v4 = vmul.f32 1.442695, %v1972_v7  ;;  %v1212_v48 = vadd.f32 %v6638_v6, %v6633_v13  ;;  %v8639_v22 = vld [vmem:[#allocation80_spill] sm:$0xff] }
 0x348   : > { %8634 = vst [vmem:[#allocation74_spill] sm:$0xff] %v6643_v28  ;;  %v1123_v5 = vmul.f32 1.442695, %v1005_v61  ;;  %v6645_v60 = vpop.eup %4996  ;;  %5016 = vpow2.f32 %v2085_v33  ;;  %v1125_v25 = vmul.f32 1.442695, %v1006_v55  ;;  %v941_v54 = vpop.xlane.xlu1 %940  ;;  %v8641_v33 = vld [vmem:[#allocation83_spill] sm:$0xff] }
 0x349   : > { %8635 = vst [vmem:[#allocation72_spill] sm:$0xff] %v6645_v60  ;;  %v1906_v57 = vpop.xlane.xlu0 %1905  ;;  %v6649_v12 = vpop.eup %4998  ;;  %5018 = vpow2.f32 %v2087_v46  ;;  %v1007_v16 = vsub.f32 %v8637_v42, %v941_v54  ;;  %v1008_v14 = vsub.f32 %v8638_v29, %v941_v54  ;;  %2178 = vadd.xlane.f32.xlu1 %v2177_v41  ;;  %1213 = vadd.xlane.f32.xlu0 %v1212_v48 }
 0x34a   : > { %8636 = vst [vmem:[#allocation75_spill] sm:$0xff] %v6649_v12  ;;  %v1973_v0 = vsub.f32 %v8639_v22, %v1906_v57  ;;  %v6654_v7 = vpop.eup %5000  ;;  %5020 = vpow2.f32 %v2089_v4  ;;  %v1974_v61 = vsub.f32 %v8641_v33, %v1906_v57  ;;  %v1215_v55 = vadd.f32 %v6645_v60, %v6643_v28  ;;  %v8645_v57 = vld [vmem:[#allocation84_spill] sm:$0xff]  ;;  %v8646_v33 = vld [vmem:[#allocation87_spill] sm:$0xff] }
 0x34b   : > { %8640 = vst [vmem:[#allocation76_spill] sm:$0xff] %v6654_v7  ;;  %v6659_v51 = vpop.eup %5002  ;;  %5022 = vpow2.f32 %v1123_v5  ;;  %v1127_v46 = vmul.f32 1.442695, %v1007_v16  ;;  %v1129_v13 = vmul.f32 1.442695, %v1008_v14  ;;  %v2180_v4 = vadd.f32 %v6654_v7, %v6649_v12  ;;  %v8647_v5 = vld [vmem:[#allocation85_spill] sm:$0xff] }
 0x34c   : > { %8642 = vst [vmem:[#allocation79_spill] sm:$0xff] %v6659_v51  ;;  %v2091_v42 = vmul.f32 1.442695, %v1973_v0  ;;  %v6661_v6 = vpop.eup %5004  ;;  %5024 = vpow2.f32 %v1125_v25  ;;  %v2093_v54 = vmul.f32 1.442695, %v1974_v61  ;;  %v1909_v41 = vpop.xlane.xlu1 %1908  ;;  %v8649_v25 = vld [vmem:[#allocation86_spill] sm:$0xff] }
 0x34d   : > { %8643 = vst [vmem:[#allocation77_spill] sm:$0xff] %v6661_v6  ;;  %v944_v48 = vpop.xlane.xlu0 %943  ;;  %v6665_v29 = vpop.eup %5006  ;;  %5026 = vpow2.f32 %v1127_v46  ;;  %v1975_v22 = vsub.f32 %v8645_v57, %v1909_v41  ;;  %v1976_v28 = vsub.f32 %v8646_v33, %v1909_v41  ;;  %1216 = vadd.xlane.f32.xlu1 %v1215_v55  ;;  %2181 = vadd.xlane.f32.xlu0 %v2180_v4 }
 0x34e   : > { %8644 = vst [vmem:[#allocation78_spill] sm:$0xff] %v6665_v29  ;;  %v1009_v16 = vsub.f32 %v8647_v5, %v944_v48  ;;  %v6670_v14 = vpop.eup %5008  ;;  %5028 = vpow2.f32 %v1129_v13  ;;  %v1010_v0 = vsub.f32 %v8649_v25, %v944_v48  ;;  %v2183_v61 = vadd.f32 %v6661_v6, %v6659_v51  ;;  %v8653_v48 = vld [vmem:[#allocation89_spill] sm:$0xff]  ;;  %v8654_v25 = vld [vmem:[#allocation90_spill] sm:$0xff] }
 0x34f   : > { %8648 = vst [vmem:[#allocation81_spill] sm:$0xff] %v6670_v14  ;;  %v6675_v60 = vpop.eup %5010  ;;  %5030 = vpow2.f32 %v2091_v42  ;;  %v2095_v46 = vmul.f32 1.442695, %v1975_v22  ;;  %v2097_v12 = vmul.f32 1.442695, %v1976_v28  ;;  %v1218_v13 = vadd.f32 %v6670_v14, %v6665_v29  ;;  %v8655_v42 = vld [vmem:[#allocation88_spill] sm:$0xff] }
 0x350   : > { %8650 = vst [vmem:[#allocation82_spill] sm:$0xff] %v6675_v60  ;;  %v1131_v57 = vmul.f32 1.442695, %v1009_v16  ;;  %v6677_v7 = vpop.eup %5012  ;;  %5032 = vpow2.f32 %v2093_v54  ;;  %v1133_v41 = vmul.f32 1.442695, %v1010_v0  ;;  %v947_v55 = vpop.xlane.xlu1 %946  ;;  %v8657_v54 = vld [vmem:[#allocation91_spill] sm:$0xff] }
 0x351   : > { %8651 = vst [vmem:[#allocation80_spill] sm:$0xff] %v6677_v7  ;;  %v1912_v4 = vpop.xlane.xlu0 %1911  ;;  %v6681_v33 = vpop.eup %5014  ;;  %5034 = vpow2.f32 %v2095_v46  ;;  %v1011_v5 = vsub.f32 %v8653_v48, %v947_v55  ;;  %v1012_v51 = vsub.f32 %v8654_v25, %v947_v55  ;;  %2184 = vadd.xlane.f32.xlu1 %v2183_v61  ;;  %1219 = vadd.xlane.f32.xlu0 %v1218_v13 }
 0x352   : > { %8652 = vst [vmem:[#allocation83_spill] sm:$0xff] %v6681_v33  ;;  %v1977_v22 = vsub.f32 %v8655_v42, %v1912_v4  ;;  %v6686_v28 = vpop.eup %5016  ;;  %5036 = vpow2.f32 %v2097_v12  ;;  %v1978_v16 = vsub.f32 %v8657_v54, %v1912_v4  ;;  %v1221_v0 = vadd.f32 %v6677_v7, %v6675_v60  ;;  %v8659_v4 = vld [vmem:[#allocation92_spill] sm:$0xff]  ;;  %v8660_v54 = vld [vmem:[#allocation95_spill] sm:$0xff] }
 0x353   : > { %8656 = vst [vmem:[#allocation84_spill] sm:$0xff] %v6686_v28  ;;  %v6691_v6 = vpop.eup %5018  ;;  %5038 = vpow2.f32 %v1131_v57  ;;  %v1135_v46 = vmul.f32 1.442695, %v1011_v5  ;;  %v1137_v29 = vmul.f32 1.442695, %v1012_v51  ;;  %v2186_v12 = vadd.f32 %v6686_v28, %v6681_v33  ;;  %v8661_v57 = vld [vmem:[#allocation93_spill] sm:$0xff] }
 0x354   : > { %8658 = vst [vmem:[#allocation87_spill] sm:$0xff] %v6691_v6  ;;  %v2099_v48 = vmul.f32 1.442695, %v1977_v22  ;;  %v6693_v14 = vpop.eup %5020  ;;  %5040 = vpow2.f32 %v1133_v41  ;;  %v2101_v55 = vmul.f32 1.442695, %v1978_v16  ;;  %v1915_v61 = vpop.xlane.xlu1 %1914  ;;  %v8662_v41 = vld [vmem:[#allocation94_spill] sm:$0xff] }
 0x355   : > { %v950_v13 = vpop.xlane.xlu0 %949  ;;  %v6697_v25 = vpop.eup %5022  ;;  %5042 = vpow2.f32 %v1135_v46  ;;  %v1979_v42 = vsub.f32 %v8659_v4, %v1915_v61  ;;  %v1980_v60 = vsub.f32 %v8660_v54, %v1915_v61  ;;  %1222 = vadd.xlane.f32.xlu1 %v1221_v0  ;;  %2187 = vadd.xlane.f32.xlu0 %v2186_v12  ;;  %v2189_v16 = vadd.f32 %v6693_v14, %v6691_v6 }
 0x356   : > { %v1013_v5 = vsub.f32 %v8661_v57, %v950_v13  ;;  %v6702_v51 = vpop.eup %5024  ;;  %5044 = vpow2.f32 %v1137_v29  ;;  %v1014_v22 = vsub.f32 %v8662_v41, %v950_v13  ;;  %v8663_v13 = vld [vmem:[#allocation96_spill] sm:$0xff]  ;;  %v8664_v57 = vld [vmem:[#allocation97_spill] sm:$0xff] }
 0x357   : > { %v6707_v7 = vpop.eup %5026  ;;  %5046 = vpow2.f32 %v2099_v48  ;;  %v2103_v46 = vmul.f32 1.442695, %v1979_v42  ;;  %v2105_v33 = vmul.f32 1.442695, %v1980_v60  ;;  %v1224_v29 = vadd.f32 %v6702_v51, %v6697_v25 }
 0x358   : > { %v1139_v4 = vmul.f32 1.442695, %v1013_v5  ;;  %v6709_v28 = vpop.eup %5028  ;;  %5048 = vpow2.f32 %v2101_v55  ;;  %v1141_v61 = vmul.f32 1.442695, %v1014_v22 }
 0x359   : > { %v1918_v0 = vpop.xlane.xlu0 %1917  ;;  %v6713_v12 = vpop.eup %5030  ;;  %5050 = vpow2.f32 %v2103_v46  ;;  %2190 = vadd.xlane.f32.xlu1 %v2189_v16  ;;  %1225 = vadd.xlane.f32.xlu0 %v1224_v29  ;;  %v1227_v60 = vadd.f32 %v6709_v28, %v6707_v7 }
 0x35a   : > { %v1981_v54 = vsub.f32 %v8663_v13, %v1918_v0  ;;  %v1982_v41 = vsub.f32 %v8664_v57, %v1918_v0  ;;  %v6717_v6 = vpop.eup %5032  ;;  %5052 = vpow2.f32 %v2105_v33 }
 0x35b   : > { %v6721_v48 = vpop.eup %5034  ;;  %5054 = vpow2.f32 %v1139_v4  ;;  %v2192_v5 = vadd.f32 %v6717_v6, %v6713_v12 }
 0x35c   : > { %8665 = vst [vmem:[#allocation85_spill] sm:$0xff] %v6721_v48  ;;  %v2107_v55 = vmul.f32 1.442695, %v1981_v54  ;;  %v2109_v42 = vmul.f32 1.442695, %v1982_v41  ;;  %v6725_v22 = vpop.eup %5036  ;;  %5056 = vpow2.f32 %v1141_v61 }
 0x35d   : > { %8666 = vst [vmem:[#allocation86_spill] sm:$0xff] %v6725_v22  ;;  %v6727_v46 = vpop.eup %5038  ;;  %1228 = vadd.xlane.f32.xlu1 %v1227_v60  ;;  %2193 = vadd.xlane.f32.xlu0 %v2192_v5  ;;  %v2195_v16 = vadd.f32 %v6725_v22, %v6721_v48 }
 0x35e   : > { %5058 = vpow2.f32 %v2107_v55  ;;  %v6729_v33 = vpop.eup %5040 }
 0x35f   : > { %5060 = vpow2.f32 %v2109_v42  ;;  %v6733_v4 = vpop.eup %5042  ;;  %v1230_v29 = vadd.f32 %v6729_v33, %v6727_v46 }
 0x360   : > { %8667 = vst [vmem:[#allocation89_spill] sm:$0xff] %v6733_v4  ;;  %v6737_v0 = vpop.eup %5044 }
 0x361   : > { %8668 = vst [vmem:[#allocation90_spill] sm:$0xff] %v6737_v0  ;;  %v6739_v13 = vpop.eup %5046  ;;  %2196 = vadd.xlane.f32.xlu1 %v2195_v16  ;;  %1231 = vadd.xlane.f32.xlu0 %v1230_v29  ;;  %v1233_v54 = vadd.f32 %v6737_v0, %v6733_v4 }
 0x362   : > { %8669 = vst [vmem:[#allocation88_spill] sm:$0xff] %v6739_v13  ;;  %v6741_v61 = vpop.eup %5048 }
 0x363   : > { %8670 = vst [vmem:[#allocation91_spill] sm:$0xff] %v6741_v61  ;;  %v6745_v57 = vpop.eup %5050  ;;  %v2198_v41 = vadd.f32 %v6741_v61, %v6739_v13 }
 0x364   : > { %8671 = vst [vmem:[#allocation92_spill] sm:$0xff] %v6745_v57  ;;  %v6749_v60 = vpop.eup %5052 }
 0x365   : > { %8672 = vst [vmem:[#allocation95_spill] sm:$0xff] %v6749_v60  ;;  %v6751_v55 = vpop.eup %5054  ;;  %1234 = vadd.xlane.f32.xlu1 %v1233_v54  ;;  %2199 = vadd.xlane.f32.xlu0 %v2198_v41  ;;  %v2201_v5 = vadd.f32 %v6749_v60, %v6745_v57  ;;  %v197_v54 = vld [vmem:[%s8100_s2 + $0x30] sm:$0xff]  ;;  %v198_v57 = vld [vmem:[%s8100_s2 + $0x38] sm:$0xff] }
 0x366   : > { %8673 = vst [vmem:[#allocation93_spill] sm:$0xff] %v6751_v55  ;;  %v6753_v42 = vpop.eup %5056 }
 0x367   : > { %8674 = vst [vmem:[#allocation94_spill] sm:$0xff] %v6753_v42  ;;  %v1236_v29 = vadd.f32 %v6753_v42, %v6751_v55 }
 0x368   : > { %v6757_v16 = vpop.eup %5058 }
 0x369   : > { %8675 = vst [vmem:[#allocation96_spill] sm:$0xff] %v6757_v16  ;;  %v6761_v4 = vpop.eup %5060  ;;  %2202 = vadd.xlane.f32.xlu1 %v2201_v5  ;;  %1237 = vadd.xlane.f32.xlu0 %v1236_v29  ;;  %v200_v29 = vld [vmem:[%s8100_s2 + $0x48] sm:$0xff] }
 0x36a   : > { %8676 = vst [vmem:[#allocation97_spill] sm:$0xff] %v6761_v4  ;;  %v2204_v0 = vadd.f32 %v6761_v4, %v6757_v16 }
 0x36d   : > { %2205 = vadd.xlane.f32.xlu0 %v2204_v0 }
 0x378   : > { %v1145_v41 = vpop.xlane.xlu1 %1144 }
 0x379   : > { %5062 = vrcp.f32 %v1145_v41 }
 0x37a   : > { %235 = vperm.xlu1 %4805, %v197_v54  }
 0x37c   : > { %v1148_v60 = vpop.xlane.xlu0 %1147 }
 0x37d   : > { %5064 = vrcp.f32 %v1148_v60 }
 0x37e   : > { %240 = vperm.xlu1 %4805, %v198_v57   ;;  %v2113_v5 = vpop.xlane.xlu1 %2112 }
 0x37f   : > { %5066 = vrcp.f32 %v2113_v5 }
 0x382   : > { %v1151_v0 = vpop.xlane.xlu1 %1150  ;;  %v2116_v16 = vpop.xlane.xlu0 %2115 }
 0x383   : > { %250 = vperm.xlu0 %4804, %v200_v29   ;;  %v5063_v4 = vpop.eup %5062  ;;  %5068 = vrcp.f32 %v2116_v16 }
 0x384   : > { %5070 = vrcp.f32 %v1151_v0  ;;  %v1272_v42 = vmul.f32 %v5063_v4, %v6269_v3  ;;  %v1271_v60 = vmul.f32 %v5063_v4, %v6267_v43 }
 0x386   : > { %v2119_v54 = vpop.xlane.xlu1 %2118  ;;  %v1154_v41 = vpop.xlane.xlu0 %1153 }
 0x387   : > { %v5065_v55 = vpop.eup %5064  ;;  %5072 = vrcp.f32 %v1154_v41 }
 0x388   : > { %v1274_v57 = vmul.f32 %v5065_v55, %v6279_v30  ;;  %v1273_v13 = vmul.f32 %v5065_v55, %v6277_v24  ;;  %5074 = vrcp.f32 %v2119_v54 }
 0x389   : > { %v5067_v22 = vpop.eup %5066 }
 0x38a   : > { %v1157_v5 = vpop.xlane.xlu1 %1156  ;;  %v2122_v48 = vpop.xlane.xlu0 %2121  ;;  %v4534_v61 = vpack.c.bf16 %v1274_v57, %v1272_v42  ;;  %v4536_v29 = vpack.c.bf16 %v1273_v13, %v1271_v60  ;;  %v2240_v41 = vmul.f32 %v5067_v22, %v6286_v32  ;;  %v2239_v43 = vmul.f32 %v5067_v22, %v6281_v50 }
 0x38b   : > { %5076 = vrcp.f32 %v2122_v48 }
 0x38c   : > { %4535 = vmatprep.subr.bf16.mxu1 %v4534_v61  ;;  %5078 = vrcp.f32 %v1157_v5 }
 0x38d   : > { %4537 = vmatpush1.bf16.xpose.msra.mxu1 %v4536_v29  ;;  %v5069_v16 = vpop.eup %5068 }
 0x38e   : > { %v2125_v0 = vpop.xlane.xlu1 %2124  ;;  %v1160_v3 = vpop.xlane.xlu0 %1159  ;;  %v2242_v30 = vmul.f32 %v5069_v16, %v6302_v11  ;;  %v2241_v24 = vmul.f32 %v5069_v16, %v6297_v58 }
 0x38f   : > { %v5071_v4 = vpop.eup %5070  ;;  %5080 = vrcp.f32 %v1160_v3 }
 0x390   : > { %v4598_v55 = vpack.c.bf16 %v2242_v30, %v2240_v41  ;;  %v4600_v13 = vpack.c.bf16 %v2241_v24, %v2239_v43  ;;  %5082 = vrcp.f32 %v2125_v0  ;;  %v1276_v54 = vmul.f32 %v5071_v4, %v6293_v34 }
 0x391   : > { %v5073_v42 = vpop.eup %5072  ;;  %v1275_v32 = vmul.f32 %v5071_v4, %v6291_v20 }
 0x392   : > { %v1163_v48 = vpop.xlane.xlu1 %1162  ;;  %v2128_v61 = vpop.xlane.xlu0 %2127  ;;  %4599 = vmatprep.subr.bf16.mxu0 %v4598_v55  ;;  %v1278_v57 = vmul.f32 %v5073_v42, %v6318_v31  ;;  %v1277_v11 = vmul.f32 %v5073_v42, %v6313_v19  ;;  %v8677_v42 = vld [vmem:[#allocation17_spill] sm:$0xff] }
 0x393   : > { %v5075_v50 = vpop.eup %5074  ;;  %5084 = vrcp.f32 %v2128_v61  ;;  %4601 = vmatpush1.bf16.xpose.msra.mxu0 %v4600_v13 }
 0x394   : > { %v4538_v58 = vpack.c.bf16 %v1278_v57, %v1276_v54  ;;  %v4540_v22 = vpack.c.bf16 %v1277_v11, %v1275_v32  ;;  %5086 = vrcp.f32 %v1163_v48  ;;  %v2244_v16 = vmul.f32 %v5075_v50, %v6309_v63  ;;  %v8678_v48 = vld [vmem:[#allocation2_spill] sm:$0xff] }
 0x395   : > { %v5077_v60 = vpop.eup %5076  ;;  %v2243_v31 = vmul.f32 %v5075_v50, %v6307_v45  ;;  %v379_v61 = vadd.f32 %v8678_v48, %v8677_v42 }
 0x396   : > { %v2131_v5 = vpop.xlane.xlu1 %2130  ;;  %v1166_v29 = vpop.xlane.xlu0 %1165  ;;  %4539 = vmatprep.subr.bf16.mxu1 %v4538_v58  ;;  %v2246_v34 = vmul.f32 %v5077_v60, %v6334_v37  ;;  %v2245_v20 = vmul.f32 %v5077_v60, %v6329_v56 }
 0x397   : > { %v5079_v0 = vpop.eup %5078  ;;  %5088 = vrcp.f32 %v1166_v29  ;;  %4541 = vmatpush1.bf16.xpose.msra.mxu1 %v4540_v22  ;;  %v8679_v29 = vld [vmem:[#allocation98_spill] sm:$0xff] }
 0x398   : > { %5090 = vrcp.f32 %v2131_v5  ;;  %v4602_v19 = vpack.c.bf16 %v2246_v34, %v2244_v16  ;;  %v4604_v3 = vpack.c.bf16 %v2245_v20, %v2243_v31  ;;  %v1280_v24 = vmul.f32 %v5079_v0, %v6325_v38  ;;  %v8680_v16 = vld [vmem:[#allocation4_spill] sm:$0xff] }
 0x399   : > { %v5081_v41 = vpop.eup %5080  ;;  %v1279_v37 = vmul.f32 %v5079_v0, %v6323_v26  ;;  %v385_v34 = vadd.f32 %v8680_v16, %v8679_v29  ;;  %v8686_v16 = vld [vmem:[#allocation28_spill] sm:$0xff] }
 0x39a   : > { %v1169_v30 = vpop.xlane.xlu1 %1168  ;;  %v2134_v43 = vpop.xlane.xlu0 %2133  ;;  %4603 = vmatprep.subr.bf16.mxu0 %v4602_v19  ;;  %v1282_v63 = vmul.f32 %v5081_v41, %v6350_v40  ;;  %v1281_v45 = vmul.f32 %v5081_v41, %v6345_v1 }
 0x39b   : > { %v5083_v4 = vpop.eup %5082  ;;  %5092 = vrcp.f32 %v2134_v43  ;;  %4605 = vmatpush1.bf16.xpose.msra.mxu0 %v4604_v3 }
 0x39c   : > { %v4542_v56 = vpack.c.bf16 %v1282_v63, %v1280_v24  ;;  %v4544_v55 = vpack.c.bf16 %v1281_v45, %v1279_v37  ;;  %5094 = vrcp.f32 %v1169_v30  ;;  %v2248_v38 = vmul.f32 %v5083_v4, %v6341_v47 }
 0x39d   : > { %v5085_v13 = vpop.eup %5084  ;;  %v2247_v26 = vmul.f32 %v5083_v4, %v6339_v2 }
 0x39e   : > { %v2137_v54 = vpop.xlane.xlu1 %2136  ;;  %v1172_v57 = vpop.xlane.xlu0 %1171  ;;  %4543 = vmatprep.subr.bf16.mxu1 %v4542_v56  ;;  %v2250_v40 = vmul.f32 %v5085_v13, %v6366_v36  ;;  %v2249_v1 = vmul.f32 %v5085_v13, %v6361_v9 }
 0x39f   : > { %v5087_v32 = vpop.eup %5086  ;;  %5096 = vrcp.f32 %v1172_v57  ;;  %4545 = vmatpush1.bf16.xpose.msra.mxu1 %v4544_v55 }
 0x3a0   : > { %v4606_v11 = vpack.c.bf16 %v2250_v40, %v2248_v38  ;;  %v4608_v50 = vpack.c.bf16 %v2249_v1, %v2247_v26  ;;  %5098 = vrcp.f32 %v2137_v54  ;;  %v1284_v47 = vmul.f32 %v5087_v32, %v6357_v39  ;;  %v8681_v1 = vld [vmem:[#allocation20_spill] sm:$0xff] }
 0x3a1   : > { %2374 = vxpose.xlu0.b32.start.end [1/1] (short) %v379_v61, 128  ;;  %v5089_v58 = vpop.eup %5088  ;;  %v1283_v2 = vmul.f32 %v5087_v32, %v6355_v52 }
 0x3a2   : > { %v1175_v22 = vpop.xlane.xlu1 %1174  ;;  %v2140_v60 = vpop.xlane.xlu0 %2139  ;;  %4607 = vmatprep.subr.bf16.mxu0 %v4606_v11  ;;  %v1286_v36 = vmul.f32 %v5089_v58, %v6382_v17  ;;  %v1285_v9 = vmul.f32 %v5089_v58, %v6377_v23  ;;  %v8682_v11 = vld [vmem:[#allocation25_spill] sm:$0xff]  ;;  %v8684_v58 = vld [vmem:[#allocation22_spill] sm:$0xff] }
 0x3a3   : > { %v5091_v5 = vpop.eup %5090  ;;  %5100 = vrcp.f32 %v2140_v60  ;;  %4609 = vmatpush1.bf16.xpose.msra.mxu0 %v4608_v50  ;;  %v8683_v50 = vld [vmem:[#allocation19_spill] sm:$0xff] }
 0x3a4   : > { %v4546_v31 = vpack.c.bf16 %v1286_v36, %v1284_v47  ;;  %v4548_v20 = vpack.c.bf16 %v1285_v9, %v1283_v2  ;;  %5102 = vrcp.f32 %v1175_v22  ;;  %v2252_v41 = vmul.f32 %v5091_v5, %v6373_v21  ;;  %v8685_v2 = vld [vmem:[#allocation21_spill] sm:$0xff] }
 0x3a5   : > { %v5093_v0 = vpop.eup %5092  ;;  %v2251_v52 = vmul.f32 %v5091_v5, %v6371_v59 }
 0x3a6   : > { %v2143_v19 = vpop.xlane.xlu1 %2142  ;;  %v1178_v3 = vpop.xlane.xlu0 %1177  ;;  %4547 = vmatprep.subr.bf16.mxu1 %v4546_v31  ;;  %v2254_v39 = vmul.f32 %v5093_v0, %v6398_v8  ;;  %v2253_v23 = vmul.f32 %v5093_v0, %v6393_v49  ;;  %v8687_v31 = vld [vmem:[#allocation23_spill] sm:$0xff] }
 0x3a7   : > { %3342 = vxpose.xlu1.b32.start.end [1/1] (short) %v385_v34, 128  ;;  %v5095_v17 = vpop.eup %5094  ;;  %5104 = vrcp.f32 %v1178_v3  ;;  %4549 = vmatpush1.bf16.xpose.msra.mxu1 %v4548_v20  ;;  %v8688_v0 = vld [vmem:[#allocation27_spill] sm:$0xff] }
 0x3a8   : > { %v4610_v30 = vpack.c.bf16 %v2254_v39, %v2252_v41  ;;  %v4612_v43 = vpack.c.bf16 %v2253_v23, %v2251_v52  ;;  %5106 = vrcp.f32 %v2143_v19  ;;  %v1288_v21 = vmul.f32 %v5095_v17, %v6389_v53 }
 0x3a9   : > { %v5097_v24 = vpop.eup %5096  ;;  %v1287_v8 = vmul.f32 %v5095_v17, %v6387_v27 }
 0x3aa   : > { %v1181_v63 = vpop.xlane.xlu1 %1180  ;;  %v2146_v37 = vpop.xlane.xlu0 %2145  ;;  %4611 = vmatprep.subr.bf16.mxu0 %v4610_v30  ;;  %v1290_v45 = vmul.f32 %v5097_v24, %v6414_v62  ;;  %v1289_v59 = vmul.f32 %v5097_v24, %v6409_v15  ;;  %v8689_v30 = vld [vmem:[#allocation24_spill] sm:$0xff]  ;;  %v8690_v24 = vld [vmem:[#allocation33_spill] sm:$0xff] }
 0x3ab   : > { %v5099_v4 = vpop.eup %5098  ;;  %5108 = vrcp.f32 %v2146_v37  ;;  %4613 = vmatpush1.bf16.xpose.msra.mxu0 %v4612_v43  ;;  %v8691_v37 = vld [vmem:[#allocation26_spill] sm:$0xff] }
 0x3ac   : > { %v4550_v49 = vpack.c.bf16 %v1290_v45, %v1288_v21  ;;  %v4552_v56 = vpack.c.bf16 %v1289_v59, %v1287_v8  ;;  %5110 = vrcp.f32 %v1181_v63  ;;  %v2256_v61 = vmul.f32 %v5099_v4, %v6405_v18  ;;  %v8692_v45 = vld [vmem:[#allocation30_spill] sm:$0xff] }
 0x3ad   : > { %v5101_v55 = vpop.eup %5100  ;;  %v2255_v62 = vmul.f32 %v5099_v4, %v6403_v10 }
 0x3ae   : > { %v2149_v13 = vpop.xlane.xlu1 %2148  ;;  %v1184_v48 = vpop.xlane.xlu0 %1183  ;;  %4551 = vmatprep.subr.bf16.mxu1 %v4550_v49  ;;  %v2258_v53 = vmul.f32 %v5101_v55, %v6430_v44  ;;  %v2257_v27 = vmul.f32 %v5101_v55, %v6425_v35 }
 0x3af   : > { %v5103_v54 = vpop.eup %5102  ;;  %5112 = vrcp.f32 %v1184_v48  ;;  %4553 = vmatpush1.bf16.xpose.msra.mxu1 %v4552_v56  ;;  %v8693_v48 = vld [vmem:[#allocation29_spill] sm:$0xff] }
 0x3b0   : > { %v4614_v15 = vpack.c.bf16 %v2258_v53, %v2256_v61  ;;  %v4616_v57 = vpack.c.bf16 %v2257_v27, %v2255_v62  ;;  %5114 = vrcp.f32 %v2149_v13  ;;  %v1292_v32 = vmul.f32 %v5103_v54, %v8681_v1  ;;  %v8694_v53 = vld [vmem:[#allocation36_spill] sm:$0xff]  ;;  %v8695_v27 = vld [vmem:[#allocation31_spill] sm:$0xff] }
 0x3b1   : > { %v5105_v38 = vpop.eup %5104  ;;  %v1291_v44 = vmul.f32 %v5103_v54, %v8683_v50 }
 0x3b2   : > { %v1187_v40 = vpop.xlane.xlu1 %1186  ;;  %v2152_v26 = vpop.xlane.xlu0 %2151  ;;  %4615 = vmatprep.subr.bf16.mxu0 %v4614_v15  ;;  %v1294_v18 = vmul.f32 %v5105_v38, %v8682_v11  ;;  %v1293_v10 = vmul.f32 %v5105_v38, %v8684_v58  ;;  %v8696_v15 = vld [vmem:[#allocation35_spill] sm:$0xff] }
 0x3b3   : > { %v5107_v22 = vpop.eup %5106  ;;  %5116 = vrcp.f32 %v2152_v26  ;;  %4617 = vmatpush1.bf16.xpose.msra.mxu0 %v4616_v57 }
 0x3b4   : > { %v4554_v35 = vpack.c.bf16 %v1294_v18, %v1292_v32  ;;  %v4556_v60 = vpack.c.bf16 %v1293_v10, %v1291_v44  ;;  %5118 = vrcp.f32 %v1187_v40  ;;  %v2260_v9 = vmul.f32 %v5107_v22, %v8685_v2  ;;  %v8697_v18 = vld [vmem:[#allocation32_spill] sm:$0xff]  ;;  %v8698_v44 = vld [vmem:[#allocation41_spill] sm:$0xff]  ;;  %v8699_v10 = vld [vmem:[#allocation34_spill] sm:$0xff] }
 0x3b5   : > { %v5109_v5 = vpop.eup %5108  ;;  %v2259_v20 = vmul.f32 %v5107_v22, %v8687_v31 }
 0x3b6   : > { %v2155_v47 = vpop.xlane.xlu1 %2154  ;;  %v1190_v36 = vpop.xlane.xlu0 %1189  ;;  %4555 = vmatprep.subr.bf16.mxu1 %v4554_v35  ;;  %v2262_v34 = vmul.f32 %v5109_v5, %v8686_v16  ;;  %v2261_v19 = vmul.f32 %v5109_v5, %v8688_v0  ;;  %v8700_v35 = vld [vmem:[#allocation38_spill] sm:$0xff] }
 0x3b7   : > { %v5111_v3 = vpop.eup %5110  ;;  %5120 = vrcp.f32 %v1190_v36  ;;  %4557 = vmatpush1.bf16.xpose.msra.mxu1 %v4556_v60 }
 0x3b8   : > { %v4618_v41 = vpack.c.bf16 %v2262_v34, %v2260_v9  ;;  %v4620_v39 = vpack.c.bf16 %v2261_v19, %v2259_v20  ;;  %5122 = vrcp.f32 %v2155_v47  ;;  %v1296_v43 = vmul.f32 %v5111_v3, %v8689_v30  ;;  %v8701_v34 = vld [vmem:[#allocation37_spill] sm:$0xff]  ;;  %v8702_v20 = vld [vmem:[#allocation44_spill] sm:$0xff]  ;;  %v8703_v19 = vld [vmem:[#allocation39_spill] sm:$0xff] }
 0x3b9   : > { %v5113_v52 = vpop.eup %5112  ;;  %v1295_v21 = vmul.f32 %v5111_v3, %v8691_v37 }
 0x3ba   : > { %v1193_v23 = vpop.xlane.xlu1 %1192  ;;  %v2158_v17 = vpop.xlane.xlu0 %2157  ;;  %4619 = vmatprep.subr.bf16.mxu0 %v4618_v41  ;;  %v1298_v63 = vmul.f32 %v5113_v52, %v8690_v24  ;;  %v1297_v8 = vmul.f32 %v5113_v52, %v8692_v45  ;;  %v8704_v41 = vld [vmem:[#allocation43_spill] sm:$0xff] }
 0x3bb   : > { %v5115_v59 = vpop.eup %5114  ;;  %5124 = vrcp.f32 %v2158_v17  ;;  %4621 = vmatpush1.bf16.xpose.msra.mxu0 %v4620_v39 }
 0x3bc   : > { %v4558_v4 = vpack.c.bf16 %v1298_v63, %v1296_v43  ;;  %v4560_v49 = vpack.c.bf16 %v1297_v8, %v1295_v21  ;;  %5126 = vrcp.f32 %v1193_v23  ;;  %v2264_v61 = vmul.f32 %v5115_v59, %v8693_v48  ;;  %v8705_v63 = vld [vmem:[#allocation40_spill] sm:$0xff]  ;;  %v8706_v21 = vld [vmem:[#allocation49_spill] sm:$0xff]  ;;  %v8707_v8 = vld [vmem:[#allocation42_spill] sm:$0xff] }
 0x3bd   : > { %v5117_v56 = vpop.eup %5116  ;;  %v2263_v54 = vmul.f32 %v5115_v59, %v8695_v27 }
 0x3be   : > { %v2161_v55 = vpop.xlane.xlu1 %2160  ;;  %v1196_v13 = vpop.xlane.xlu0 %1195  ;;  %4559 = vmatprep.subr.bf16.mxu1 %v4558_v4  ;;  %v2266_v62 = vmul.f32 %v5117_v56, %v8694_v53  ;;  %v2265_v57 = vmul.f32 %v5117_v56, %v8696_v15  ;;  %v8708_v4 = vld [vmem:[#allocation46_spill] sm:$0xff] }
 0x3bf   : > { %v5119_v38 = vpop.eup %5118  ;;  %5128 = vrcp.f32 %v1196_v13  ;;  %4561 = vmatpush1.bf16.xpose.msra.mxu1 %v4560_v49 }
 0x3c0   : > { %v4622_v40 = vpack.c.bf16 %v2266_v62, %v2264_v61  ;;  %v4624_v26 = vpack.c.bf16 %v2265_v57, %v2263_v54  ;;  %5130 = vrcp.f32 %v2161_v55  ;;  %v1300_v50 = vmul.f32 %v5119_v38, %v8697_v18  ;;  %v8709_v62 = vld [vmem:[#allocation45_spill] sm:$0xff]  ;;  %v8710_v54 = vld [vmem:[#allocation52_spill] sm:$0xff]  ;;  %v8711_v57 = vld [vmem:[#allocation47_spill] sm:$0xff] }
 0x3c1   : > { %v5121_v1 = vpop.eup %5120  ;;  %v1299_v22 = vmul.f32 %v5119_v38, %v8699_v10 }
 0x3c2   : > { %v1199_v32 = vpop.xlane.xlu1 %1198  ;;  %v2164_v11 = vpop.xlane.xlu0 %2163  ;;  %4623 = vmatprep.subr.bf16.mxu0 %v4622_v40  ;;  %v1302_v58 = vmul.f32 %v5121_v1, %v8698_v44  ;;  %v1301_v60 = vmul.f32 %v5121_v1, %v8700_v35  ;;  %v8712_v40 = vld [vmem:[#allocation51_spill] sm:$0xff] }
 0x3c3   : > { %v5123_v5 = vpop.eup %5122  ;;  %5132 = vrcp.f32 %v2164_v11  ;;  %4625 = vmatpush1.bf16.xpose.msra.mxu0 %v4624_v26 }
 0x3c4   : > { %v4562_v47 = vpack.c.bf16 %v1302_v58, %v1300_v50  ;;  %v4564_v36 = vpack.c.bf16 %v1301_v60, %v1299_v22  ;;  %5134 = vrcp.f32 %v1199_v32  ;;  %v2268_v31 = vmul.f32 %v5123_v5, %v8701_v34  ;;  %v8713_v58 = vld [vmem:[#allocation48_spill] sm:$0xff]  ;;  %v8714_v22 = vld [vmem:[#allocation57_spill] sm:$0xff]  ;;  %v8715_v60 = vld [vmem:[#allocation50_spill] sm:$0xff] }
 0x3c5   : > { %v5125_v2 = vpop.eup %5124  ;;  %v2267_v3 = vmul.f32 %v5123_v5, %v8703_v19 }
 0x3c6   : > { %v2167_v9 = vpop.xlane.xlu1 %2166  ;;  %v1202_v16 = vpop.xlane.xlu0 %1201  ;;  %4563 = vmatprep.subr.bf16.mxu1 %v4562_v47  ;;  %v2270_v0 = vmul.f32 %v5125_v2, %v8702_v20  ;;  %v2269_v39 = vmul.f32 %v5125_v2, %v8704_v41  ;;  %v8716_v47 = vld [vmem:[#allocation54_spill] sm:$0xff] }
 0x3c7   : > { %v5127_v52 = vpop.eup %5126  ;;  %5136 = vrcp.f32 %v1202_v16  ;;  %4565 = vmatpush1.bf16.xpose.msra.mxu1 %v4564_v36 }
 0x3c8   : > { %v4626_v23 = vpack.c.bf16 %v2270_v0, %v2268_v31  ;;  %v4628_v17 = vpack.c.bf16 %v2269_v39, %v2267_v3  ;;  %5138 = vrcp.f32 %v2167_v9  ;;  %v1304_v37 = vmul.f32 %v5127_v52, %v8705_v63  ;;  %v8717_v0 = vld [vmem:[#allocation53_spill] sm:$0xff]  ;;  %v8718_v3 = vld [vmem:[#allocation60_spill] sm:$0xff]  ;;  %v8719_v39 = vld [vmem:[#allocation55_spill] sm:$0xff] }
 0x3c9   : > { %v5129_v30 = vpop.eup %5128  ;;  %v1303_v59 = vmul.f32 %v5127_v52, %v8707_v8 }
 0x3ca   : > { %v1205_v43 = vpop.xlane.xlu1 %1204  ;;  %v2170_v24 = vpop.xlane.xlu0 %2169  ;;  %4627 = vmatprep.subr.bf16.mxu0 %v4626_v23  ;;  %v1306_v45 = vmul.f32 %v5129_v30, %v8706_v21  ;;  %v1305_v49 = vmul.f32 %v5129_v30, %v8708_v4  ;;  %v8720_v23 = vld [vmem:[#allocation59_spill] sm:$0xff] }
 0x3cb   : > { %v5131_v56 = vpop.eup %5130  ;;  %5140 = vrcp.f32 %v2170_v24  ;;  %4629 = vmatpush1.bf16.xpose.msra.mxu0 %v4628_v17 }
 0x3cc   : > { %v4566_v55 = vpack.c.bf16 %v1306_v45, %v1304_v37  ;;  %v4568_v13 = vpack.c.bf16 %v1305_v49, %v1303_v59  ;;  %5142 = vrcp.f32 %v1205_v43  ;;  %v2272_v27 = vmul.f32 %v5131_v56, %v8709_v62  ;;  %v8721_v45 = vld [vmem:[#allocation56_spill] sm:$0xff]  ;;  %v8722_v59 = vld [vmem:[#allocation65_spill] sm:$0xff]  ;;  %v8723_v49 = vld [vmem:[#allocation58_spill] sm:$0xff] }
 0x3cd   : > { %v5133_v48 = vpop.eup %5132  ;;  %v2271_v38 = vmul.f32 %v5131_v56, %v8711_v57 }
 0x3ce   : > { %v2173_v61 = vpop.xlane.xlu1 %2172  ;;  %v1208_v53 = vpop.xlane.xlu0 %1207  ;;  %4567 = vmatprep.subr.bf16.mxu1 %v4566_v55  ;;  %v2274_v15 = vmul.f32 %v5133_v48, %v8710_v54  ;;  %v2273_v26 = vmul.f32 %v5133_v48, %v8712_v40  ;;  %v8724_v55 = vld [vmem:[#allocation62_spill] sm:$0xff] }
 0x3cf   : > { %v5135_v1 = vpop.eup %5134  ;;  %5144 = vrcp.f32 %v1208_v53  ;;  %4569 = vmatpush1.bf16.xpose.msra.mxu1 %v4568_v13 }
 0x3d0   : > { %v4630_v32 = vpack.c.bf16 %v2274_v15, %v2272_v27  ;;  %v4632_v11 = vpack.c.bf16 %v2273_v26, %v2271_v38  ;;  %5146 = vrcp.f32 %v2173_v61  ;;  %v1308_v10 = vmul.f32 %v5135_v1, %v8713_v58  ;;  %v8725_v61 = vld [vmem:[#allocation3_spill] sm:$0xff]  ;;  %v8726_v38 = vld [vmem:[#allocation61_spill] sm:$0xff]  ;;  %v8727_v26 = vld [vmem:[#allocation68_spill] sm:$0xff] }
 0x3d1   : > { %v5137_v18 = vpop.eup %5136  ;;  %v1307_v5 = vmul.f32 %v5135_v1, %v8715_v60  ;;  %v381_v53 = vadd.f32 %v8725_v61, %v8677_v42  ;;  %v8741_v61 = vld [vmem:[#allocation74_spill] sm:$0xff] }
 0x3d2   : > { %v1211_v50 = vpop.xlane.xlu1 %1210  ;;  %v2176_v44 = vpop.xlane.xlu0 %2175  ;;  %4631 = vmatprep.subr.bf16.mxu0 %v4630_v32  ;;  %v1310_v35 = vmul.f32 %v5137_v18, %v8714_v22  ;;  %v1309_v36 = vmul.f32 %v5137_v18, %v8716_v47  ;;  %v8728_v32 = vld [vmem:[#allocation63_spill] sm:$0xff]  ;;  %v8730_v22 = vld [vmem:[#allocation5_spill] sm:$0xff]  ;;  %v8731_v47 = vld [vmem:[#allocation64_spill] sm:$0xff] }
 0x3d3   : > { %v5139_v2 = vpop.eup %5138  ;;  %5148 = vrcp.f32 %v2176_v44  ;;  %4633 = vmatpush1.bf16.xpose.msra.mxu0 %v4632_v11  ;;  %v8729_v18 = vld [vmem:[#allocation67_spill] sm:$0xff] }
 0x3d4   : > { %v4570_v9 = vpack.c.bf16 %v1310_v35, %v1308_v10  ;;  %v4572_v16 = vpack.c.bf16 %v1309_v36, %v1307_v5  ;;  %5150 = vrcp.f32 %v1211_v50  ;;  %v2276_v19 = vmul.f32 %v5139_v2, %v8717_v0 }
 0x3d5   : > { %v5141_v34 = vpop.eup %5140  ;;  %v2275_v52 = vmul.f32 %v5139_v2, %v8719_v39  ;;  %v387_v35 = vadd.f32 %v8730_v22, %v8679_v29  ;;  %v8732_v2 = vld [vmem:[#allocation73_spill] sm:$0xff] }
 0x3d6   : > { %v2179_v31 = vpop.xlane.xlu1 %2178  ;;  %v1214_v20 = vpop.xlane.xlu0 %1213  ;;  %4571 = vmatprep.subr.bf16.mxu1 %v4570_v9  ;;  %v2278_v41 = vmul.f32 %v5141_v34, %v8718_v3  ;;  %v2277_v17 = vmul.f32 %v5141_v34, %v8720_v23 }
 0x3d7   : > { %v5143_v30 = vpop.eup %5142  ;;  %5152 = vrcp.f32 %v1214_v20  ;;  %4573 = vmatpush1.bf16.xpose.msra.mxu1 %v4572_v16  ;;  %v8733_v16 = vld [vmem:[#allocation66_spill] sm:$0xff] }
 0x3d8   : > { %v4634_v43 = vpack.c.bf16 %v2278_v41, %v2276_v19  ;;  %v4636_v24 = vpack.c.bf16 %v2277_v17, %v2275_v52  ;;  %5154 = vrcp.f32 %v2179_v31  ;;  %v1312_v8 = vmul.f32 %v5143_v30, %v8721_v45  ;;  %v8734_v31 = vld [vmem:[#allocation70_spill] sm:$0xff]  ;;  %v8735_v52 = vld [vmem:[#allocation69_spill] sm:$0xff]  ;;  %v8736_v17 = vld [vmem:[#allocation76_spill] sm:$0xff] }
 0x3d9   : > { %v5145_v63 = vpop.eup %5144  ;;  %v1311_v56 = vmul.f32 %v5143_v30, %v8723_v49 }
 0x3da   : > { %v1217_v37 = vpop.xlane.xlu1 %1216  ;;  %v2182_v21 = vpop.xlane.xlu0 %2181  ;;  %4635 = vmatprep.subr.bf16.mxu0 %v4634_v43  ;;  %v1314_v4 = vmul.f32 %v5145_v63, %v8722_v59  ;;  %v1313_v13 = vmul.f32 %v5145_v63, %v8724_v55  ;;  %v8737_v43 = vld [vmem:[#allocation71_spill] sm:$0xff] }
 0x3db   : > { %v5147_v48 = vpop.eup %5146  ;;  %5156 = vrcp.f32 %v2182_v21  ;;  %4637 = vmatpush1.bf16.xpose.msra.mxu0 %v4636_v24  ;;  %v8738_v63 = vld [vmem:[#allocation75_spill] sm:$0xff] }
 0x3dc   : > { %v4574_v62 = vpack.c.bf16 %v1314_v4, %v1312_v8  ;;  %v4576_v27 = vpack.c.bf16 %v1313_v13, %v1311_v56  ;;  %5158 = vrcp.f32 %v1217_v37  ;;  %v2280_v40 = vmul.f32 %v5147_v48, %v8726_v38  ;;  %v8739_v56 = vld [vmem:[#allocation72_spill] sm:$0xff]  ;;  %v8740_v13 = vld [vmem:[#allocation81_spill] sm:$0xff] }
 0x3dd   : > { %v5149_v54 = vpop.eup %5148  ;;  %v2279_v11 = vmul.f32 %v5147_v48, %v8728_v32 }
 0x3de   : > { %v2185_v15 = vpop.xlane.xlu1 %2184  ;;  %2406 = vxpose.xlu0.b32.start.end [1/1] (short) %v381_v53, 128  ;;  %v1220_v57 = vpop.xlane.xlu0 %1219  ;;  %4575 = vmatprep.subr.bf16.mxu1 %v4574_v62  ;;  %v2282_v1 = vmul.f32 %v5149_v54, %v8727_v26  ;;  %v2281_v50 = vmul.f32 %v5149_v54, %v8729_v18  ;;  %v8742_v62 = vld [vmem:[#allocation78_spill] sm:$0xff] }
 0x3df   : > { %v5151_v44 = vpop.eup %5150  ;;  %5160 = vrcp.f32 %v1220_v57  ;;  %4577 = vmatpush1.bf16.xpose.msra.mxu1 %v4576_v27 }
 0x3e0   : > { %v4638_v42 = vpack.c.bf16 %v2282_v1, %v2280_v40  ;;  %v4640_v58 = vpack.c.bf16 %v2281_v50, %v2279_v11  ;;  %5162 = vrcp.f32 %v2185_v15  ;;  %v1316_v36 = vmul.f32 %v5151_v44, %v8731_v47  ;;  %v8743_v1 = vld [vmem:[#allocation77_spill] sm:$0xff]  ;;  %v8744_v11 = vld [vmem:[#allocation84_spill] sm:$0xff]  ;;  %v8745_v50 = vld [vmem:[#allocation79_spill] sm:$0xff] }
 0x3e1   : > { %v5153_v10 = vpop.eup %5152  ;;  %v1315_v34 = vmul.f32 %v5151_v44, %v8733_v16  ;;  %v8748_v16 = vld [vmem:[#allocation82_spill] sm:$0xff] }
 0x3e2   : > { %v1223_v60 = vpop.xlane.xlu1 %1222  ;;  %v2188_v5 = vpop.xlane.xlu0 %2187  ;;  %4639 = vmatprep.subr.bf16.mxu0 %v4638_v42  ;;  %v1318_v9 = vmul.f32 %v5153_v10, %v8732_v2  ;;  %v1317_v20 = vmul.f32 %v5153_v10, %v8734_v31  ;;  %v8746_v42 = vld [vmem:[#allocation83_spill] sm:$0xff] }
 0x3e3   : > { %v5155_v0 = vpop.eup %5154  ;;  %5164 = vrcp.f32 %v2188_v5  ;;  %4641 = vmatpush1.bf16.xpose.msra.mxu0 %v4640_v58 }
 0x3e4   : > { %3374 = vxpose.xlu1.b32.start.end [1/1] (short) %v387_v35, 128  ;;  %v4578_v19 = vpack.c.bf16 %v1318_v9, %v1316_v36  ;;  %v4580_v3 = vpack.c.bf16 %v1317_v20, %v1315_v34  ;;  %5166 = vrcp.f32 %v1223_v60  ;;  %v2284_v23 = vmul.f32 %v5155_v0, %v8735_v52  ;;  %v8747_v36 = vld [vmem:[#allocation80_spill] sm:$0xff] }
 0x3e5   : > { %v5157_v41 = vpop.eup %5156  ;;  %v2283_v24 = vmul.f32 %v5155_v0, %v8737_v43 }
 0x3e6   : > { %v2191_v29 = vpop.xlane.xlu1 %2190  ;;  %v1226_v39 = vpop.xlane.xlu0 %1225  ;;  %4579 = vmatprep.subr.bf16.mxu1 %v4578_v19  ;;  %v2286_v30 = vmul.f32 %v5157_v41, %v8736_v17  ;;  %v2285_v37 = vmul.f32 %v5157_v41, %v8738_v63 }
 0x3e7   : > { %v5159_v21 = vpop.eup %5158  ;;  %5168 = vrcp.f32 %v1226_v39  ;;  %4581 = vmatpush1.bf16.xpose.msra.mxu1 %v4580_v3 }
 0x3e8   : > { %v4642_v45 = vpack.c.bf16 %v2286_v30, %v2284_v23  ;;  %v4644_v8 = vpack.c.bf16 %v2285_v37, %v2283_v24  ;;  %5170 = vrcp.f32 %v2191_v29  ;;  %v1320_v55 = vmul.f32 %v5159_v21, %v8739_v56  ;;  %v8749_v23 = vld [vmem:[#allocation87_spill] sm:$0xff] }
 0x3e9   : > { %v5161_v59 = vpop.eup %5160  ;;  %v1319_v53 = vmul.f32 %v5159_v21, %v8741_v61 }
 0x3ea   : > { %v1229_v4 = vpop.xlane.xlu1 %1228  ;;  %v2194_v49 = vpop.xlane.xlu0 %2193  ;;  %4643 = vmatprep.subr.bf16.mxu0 %v4642_v45  ;;  %v1322_v48 = vmul.f32 %v5161_v59, %v8740_v13  ;;  %v1321_v27 = vmul.f32 %v5161_v59, %v8742_v62 }
 0x3eb   : > { %v5163_v54 = vpop.eup %5162  ;;  %5172 = vrcp.f32 %v2194_v49  ;;  %4645 = vmatpush1.bf16.xpose.msra.mxu0 %v4644_v8  ;;  %v8750_v49 = vld [vmem:[#allocation86_spill] sm:$0xff] }
 0x3ec   : > { %v4582_v15 = vpack.c.bf16 %v1322_v48, %v1320_v55  ;;  %v4584_v57 = vpack.c.bf16 %v1321_v27, %v1319_v53  ;;  %5174 = vrcp.f32 %v1229_v4  ;;  %v2288_v32 = vmul.f32 %v5163_v54, %v8743_v1  ;;  %v8751_v55 = vld [vmem:[#allocation91_spill] sm:$0xff]  ;;  %v8752_v48 = vld [vmem:[#allocation85_spill] sm:$0xff] }
 0x3ed   : > { %v5165_v38 = vpop.eup %5164  ;;  %v2287_v44 = vmul.f32 %v5163_v54, %v8745_v50 }
 0x3ee   : > { %v2197_v40 = vpop.xlane.xlu1 %2196  ;;  %v1232_v26 = vpop.xlane.xlu0 %1231  ;;  %4583 = vmatprep.subr.bf16.mxu1 %v4582_v15  ;;  %v2290_v18 = vmul.f32 %v5165_v38, %v8744_v11  ;;  %v2289_v58 = vmul.f32 %v5165_v38, %v8746_v42  ;;  %v8755_v38 = vld [vmem:[#allocation12_spill] sm:$0xff] }
 0x3ef   : > { %v5167_v10 = vpop.eup %5166  ;;  %5176 = vrcp.f32 %v1232_v26  ;;  %4585 = vmatpush1.bf16.xpose.msra.mxu1 %v4584_v57  ;;  %v8756_v26 = vld [vmem:[#allocation94_spill] sm:$0xff] }
 0x3f0   : > { %v4646_v22 = vpack.c.bf16 %v2290_v18, %v2288_v32  ;;  %v4648_v35 = vpack.c.bf16 %v2289_v58, %v2287_v44  ;;  %5178 = vrcp.f32 %v2197_v40  ;;  %v1324_v2 = vmul.f32 %v5167_v10, %v8747_v36  ;;  %v8757_v32 = vld [vmem:[#allocation89_spill] sm:$0xff]  ;;  %v8762_v36 = vld [vmem:[#allocation96_spill] sm:$0xff] }
 0x3f1   : > { %v5169_v60 = vpop.eup %5168  ;;  %v1323_v34 = vmul.f32 %v5167_v10, %v8748_v16  ;;  %v8758_v18 = vld [vmem:[#allocation93_spill] sm:$0xff]  ;;  %v8759_v10 = vld [vmem:[#allocation95_spill] sm:$0xff] }
 0x3f2   : > { %v1235_v5 = vpop.xlane.xlu1 %1234  ;;  %v2200_v47 = vpop.xlane.xlu0 %2199  ;;  %4647 = vmatprep.subr.bf16.mxu0 %v4646_v22  ;;  %v1326_v9 = vmul.f32 %v5169_v60, %v6702_v51  ;;  %v1325_v31 = vmul.f32 %v5169_v60, %v6697_v25 }
 0x3f3   : > { %v5171_v20 = vpop.eup %5170  ;;  %5180 = vrcp.f32 %v2200_v47  ;;  %4649 = vmatpush1.bf16.xpose.msra.mxu0 %v4648_v35  ;;  %v8760_v35 = vld [vmem:[#allocation97_spill] sm:$0xff] }
 0x3f4   : > { %5182 = vrcp.f32 %v1235_v5  ;;  %v4586_v0 = vpack.c.bf16 %v1326_v9, %v1324_v2  ;;  %v4588_v19 = vpack.c.bf16 %v1325_v31, %v1323_v34  ;;  %v2292_v39 = vmul.f32 %v5171_v20, %v6693_v14  ;;  %v8761_v5 = vld [vmem:[#allocation92_spill] sm:$0xff]  ;;  %v8763_v9 = vld [vmem:[#allocation7_spill] sm:$0xff] }
 0x3f5   : > { %v5173_v3 = vpop.eup %5172  ;;  %v2291_v51 = vmul.f32 %v5171_v20, %v8749_v23  ;;  %v8768_v23 = vmov 0.0  }
 0x3f6   : > { %v2203_v41 = vpop.xlane.xlu1 %2202  ;;  %v1238_v29 = vpop.xlane.xlu0 %1237  ;;  %4587 = vmatprep.subr.bf16.mxu1 %v4586_v0  ;;  %v2294_v52 = vmul.f32 %v5173_v3, %v6717_v6  ;;  %v2293_v17 = vmul.f32 %v5173_v3, %v6713_v12  ;;  %v8764_v0 = vld [vmem:[#allocation9_spill] sm:$0xff]  ;;  %v8765_v3 = vld [vmem:[#allocation18_spill] sm:$0xff] }
 0x3f7   : > { %v5175_v30 = vpop.eup %5174  ;;  %5184 = vrcp.f32 %v1238_v29  ;;  %4589 = vmatpush1.bf16.xpose.msra.mxu1 %v4588_v19 }
 0x3f8   : > { %5186 = vrcp.f32 %v2203_v41  ;;  %v4650_v25 = vpack.c.bf16 %v2294_v52, %v2292_v39  ;;  %v4652_v43 = vpack.c.bf16 %v2293_v17, %v2291_v51  ;;  %v1328_v37 = vmul.f32 %v5175_v30, %v6709_v28  ;;  %v8753_v28 = vld [vmem:[#allocation88_spill] sm:$0xff]  ;;  %v8766_v41 = vld [vmem:[#allocation10_spill] sm:$0xff]  ;;  %v8769_v51 = vld [vmem:[#allocation11_spill] sm:$0xff] }
 0x3f9   : > { %v5177_v24 = vpop.eup %5176  ;;  %v1327_v6 = vmul.f32 %v5175_v30, %v6707_v7  ;;  %v415_v29 = vadd.f32 %v8766_v41, %v8765_v3  ;;  %v8767_v39 = vld [vmem:[#allocation6_spill] sm:$0xff]  ;;  %v8770_v30 = vld [vmem:[#allocation8_spill] sm:$0xff] }
 0x3fa   : > { %v2206_v63 = vpop.xlane.xlu0 %2205  ;;  %4651 = vmatprep.subr.bf16.mxu0 %v4650_v25  ;;  %v1330_v14 = vmul.f32 %v5177_v24, %v6729_v33  ;;  %v5179_v21 = vpop.eup %5178  ;;  %v1329_v12 = vmul.f32 %v5177_v24, %v6727_v46  ;;  %v8754_v46 = vld [vmem:[#allocation90_spill] sm:$0xff] }
 0x3fb   : > { %5188 = vrcp.f32 %v2206_v63  ;;  %4653 = vmatpush1.bf16.xpose.msra.mxu0 %v4652_v43  ;;  %v2296_v56 = vmul.f32 %v5179_v21, %v8750_v49  ;;  %v2295_v61 = vmul.f32 %v5179_v21, %v8752_v48  ;;  %v236_v7 = vpop.permute.xlu1 %235 }
 0x3fc   : > { %v4590_v45 = vpack.c.bf16 %v1330_v14, %v1328_v37  ;;  %v4592_v59 = vpack.c.bf16 %v1329_v12, %v1327_v6  ;;  %v405_v16 = vadd.f32 %v8763_v9, %v236_v7  ;;  %v403_v52 = vadd.f32 %v8767_v39, %v236_v7 }
 0x3fd   : > { %v5181_v8 = vpop.eup %5180 }
 0x3fe   : > { %v5183_v4 = vpop.eup %5182  ;;  %4591 = vmatprep.subr.bf16.mxu1 %v4590_v45  ;;  %v2298_v13 = vmul.f32 %v5181_v8, %v8751_v55  ;;  %v2297_v53 = vmul.f32 %v5181_v8, %v8753_v28 }
 0x3ff   : > { %4593 = vmatpush1.bf16.xpose.msra.mxu1 %v4592_v59  ;;  %v1332_v15 = vmul.f32 %v5183_v4, %v8754_v46  ;;  %v1331_v11 = vmul.f32 %v5183_v4, %v8757_v32  ;;  %v241_v34 = vpop.permute.xlu1 %240 }
 0x400   : > { %v4654_v33 = vpack.c.bf16 %v2298_v13, %v2296_v56  ;;  %v4656_v62 = vpack.c.bf16 %v2297_v53, %v2295_v61  ;;  %v411_v19 = vadd.f32 %v8764_v0, %v241_v34  ;;  %v409_v25 = vadd.f32 %v8770_v30, %v241_v34 }
 0x401   : > { %v5185_v27 = vpop.eup %5184 }
 0x402   : > { %v251_v54 = vpop.permute.xlu0 %250  ;;  %v5187_v57 = vpop.eup %5186  ;;  %4655 = vmatprep.subr.bf16.mxu0 %v4654_v33  ;;  %v1334_v1 = vmul.f32 %v5185_v27, %v8756_v26  ;;  %v1333_v50 = vmul.f32 %v5185_v27, %v8758_v18 }
 0x403   : > { %v423_v40 = vadd.f32 %v8755_v38, %v251_v54  ;;  %4657 = vmatpush1.bf16.xpose.msra.mxu0 %v4656_v62  ;;  %v2300_v22 = vmul.f32 %v5187_v57, %v8759_v10  ;;  %v2299_v47 = vmul.f32 %v5187_v57, %v8761_v5  ;;  %v421_v17 = vadd.f32 %v8769_v51, %v251_v54 }
 0x404   : > { %v4594_v42 = vpack.c.bf16 %v1334_v1, %v1332_v15  ;;  %v4596_v58 = vpack.c.bf16 %v1333_v50, %v1331_v11 }
 0x405   : > { %v5189_v44 = vpop.eup %5188  ;;  %2367 = vmatprep.mubr.f32.mxu0 %v423_v40 }
 0x406   : > { %v2302_v60 = vmul.f32 %v5189_v44, %v8760_v35  ;;  %v2301_v2 = vmul.f32 %v5189_v44, %v8762_v36  ;;  %4595 = vmatprep.subr.bf16.mxu1 %v4594_v42 }
 0x407   : > { %4597 = vmatpush1.bf16.xpose.msra.mxu1 %v4596_v58 }
 0x408   : > { %v4658_v31 = vpack.c.bf16 %v2302_v60, %v2300_v22  ;;  %v4660_v20 = vpack.c.bf16 %v2301_v2, %v2299_v47  ;;  %2534 = vmatprep.subr.mxu1 %v405_v16 }
 0x40a   : > { %4659 = vmatprep.subr.bf16.mxu0 %v4658_v31 }
 0x40b   : > { %4661 = vmatpush1.bf16.xpose.msra.mxu0 %v4660_v20 }
 0x40c   : > { %3502 = vmatprep.subr.mxu0 %v411_v19 }
 0x40e   : > { %1400 = vmatmul.mubr.f32.vlgmr.msra.gmra.mrb[76].mxu1 %v415_v29 }
 0x40f   : > { %2535 = vmatpush1.msra.mxu1 %v403_v52  ;;  %2598 = vmatprep.mubr.f32.mxu1 %v8768_v23 }
 0x412   : > { %2368 = vmatmul.mubr.f32.vlgmr.msra.gmra.mrb[76].mxu0 %v421_v17 }
 0x413   : > { %3503 = vmatpush1.msra.mxu0 %v409_v25  ;;  %3566 = vmatprep.mubr.f32.mxu0 %v8768_v23 }
 0x421   : > { %v2390_v43 = vpop.trf.xlu0 }
 0x422   : > { %4458 = vmatmul.mubr.msk.f32.vlgmr.msra.gmra.mrb[78].mxu1 %vm501_vm1, %v2390_v43 }
 0x423   : > { %2604 = vmatprep.mubr.f32.mxu1 %v8768_v23 }
 0x425   : > { %v2391_v24 = vpop.trf.xlu0 }
 0x426   : > { %4459 = vmatmul.mubr.msk.f32.gmra.mrb[80].mxu1 %vm501_vm1, %v2391_v24 }
 0x427   : > { %v3358_v63 = vpop.trf.xlu1  ;;  %2610 = vmatprep.mubr.f32.mxu1 %v8768_v23 }
 0x428   : > { %4490 = vmatmul.mubr.msk.f32.vlgmr.msra.gmra.mrb[78].mxu0 %vm501_vm1, %v3358_v63 }
 0x429   : > { %v2392_v37 = vpop.trf.xlu0  ;;  %3572 = vmatprep.mubr.f32.mxu0 %v8768_v23 }
 0x42a   : > { %4460 = vmatmul.mubr.msk.f32.gmra.mrb[82].mxu1 %vm501_vm1, %v2392_v37 }
 0x42b   : > { %v3359_v14 = vpop.trf.xlu1  ;;  %2616 = vmatprep.mubr.f32.mxu1 %v8768_v23 }
 0x42c   : > { %4491 = vmatmul.mubr.msk.f32.gmra.mrb[80].mxu0 %vm501_vm1, %v3359_v14 }
 0x42d   : > { %v2393_v21 = vpop.trf.xlu0  ;;  %3578 = vmatprep.mubr.f32.mxu0 %v8768_v23 }
 0x42e   : > { %4461 = vmatmul.mubr.msk.f32.gmra.mrb[84].mxu1 %vm501_vm1, %v2393_v21 }
 0x42f   : > { %v3360_v6 = vpop.trf.xlu1  ;;  %2622 = vmatprep.mubr.f32.mxu1 %v8768_v23 }
 0x430   : > { %4492 = vmatmul.mubr.msk.f32.gmra.mrb[82].mxu0 %vm501_vm1, %v3360_v6 }
 0x431   : > { %v2394_v12 = vpop.trf.xlu0  ;;  %3584 = vmatprep.mubr.f32.mxu0 %v8768_v23 }
 0x432   : > { %4462 = vmatmul.mubr.msk.f32.gmra.mrb[86].mxu1 %vm501_vm1, %v2394_v12 }
 0x433   : > { %v3361_v45 = vpop.trf.xlu1  ;;  %2628 = vmatprep.mubr.f32.mxu1 %v8768_v23 }
 0x434   : > { %4493 = vmatmul.mubr.msk.f32.gmra.mrb[84].mxu0 %vm501_vm1, %v3361_v45 }
 0x435   : > { %v2395_v8 = vpop.trf.xlu0  ;;  %3590 = vmatprep.mubr.f32.mxu0 %v8768_v23 }
 0x436   : > { %4463 = vmatmul.mubr.msk.f32.gmra.mrb[88].mxu1 %vm501_vm1, %v2395_v8 }
 0x437   : > { %v3362_v59 = vpop.trf.xlu1  ;;  %2634 = vmatprep.mubr.f32.mxu1 %v8768_v23 }
 0x438   : > { %4494 = vmatmul.mubr.msk.f32.gmra.mrb[86].mxu0 %vm501_vm1, %v3362_v59 }
 0x439   : > { %v2396_v4 = vpop.trf.xlu0  ;;  %3596 = vmatprep.mubr.f32.mxu0 %v8768_v23 }
 0x43a   : > { %4464 = vmatmul.mubr.msk.f32.gmra.mrb[90].mxu1 %vm501_vm1, %v2396_v4 }
 0x43b   : > { %v3363_v49 = vpop.trf.xlu1  ;;  %2640 = vmatprep.mubr.f32.mxu1 %v8768_v23 }
 0x43c   : > { %4495 = vmatmul.mubr.msk.f32.gmra.mrb[88].mxu0 %vm501_vm1, %v3363_v49 }
 0x43d   : > { %v2397_v56 = vpop.trf.xlu0  ;;  %3602 = vmatprep.mubr.f32.mxu0 %v8768_v23 }
 0x43e   : > { %4465 = vmatmul.mubr.msk.f32.gmra.mrb[92].mxu1 %vm501_vm1, %v2397_v56 }
 0x43f   : > { %v3364_v55 = vpop.trf.xlu1  ;;  %2646 = vmatprep.mubr.f32.mxu1 %v8768_v23 }
 0x440   : > { %4496 = vmatmul.mubr.msk.f32.gmra.mrb[90].mxu0 %vm501_vm1, %v3364_v55 }
 0x441   : > { %v2398_v13 = vpop.trf.xlu0  ;;  %3608 = vmatprep.mubr.f32.mxu0 %v8768_v23 }
 0x442   : > { %4466 = vmatmul.mubr.msk.f32.gmra.mrb[94].mxu1 %vm501_vm1, %v2398_v13 }
 0x443   : > { %v3365_v48 = vpop.trf.xlu1  ;;  %2652 = vmatprep.mubr.f32.mxu1 %v8768_v23 }
 0x444   : > { %4497 = vmatmul.mubr.msk.f32.gmra.mrb[92].mxu0 %vm501_vm1, %v3365_v48 }
 0x445   : > { %v2399_v61 = vpop.trf.xlu0  ;;  %3614 = vmatprep.mubr.f32.mxu0 %v8768_v23 }
 0x446   : > { %4467 = vmatmul.mubr.msk.f32.gmra.mrb[96].mxu1 %vm501_vm1, %v2399_v61 }
 0x447   : > { %v3366_v28 = vpop.trf.xlu1  ;;  %2658 = vmatprep.mubr.f32.mxu1 %v8768_v23 }
 0x448   : > { %4498 = vmatmul.mubr.msk.f32.gmra.mrb[94].mxu0 %vm501_vm1, %v3366_v28 }
 0x449   : > { %v2400_v53 = vpop.trf.xlu0  ;;  %3620 = vmatprep.mubr.f32.mxu0 %v8768_v23 }
 0x44a   : > { %4468 = vmatmul.mubr.msk.f32.gmra.mrb[98].mxu1 %vm501_vm1, %v2400_v53 }
 0x44b   : > { %v3367_v33 = vpop.trf.xlu1  ;;  %2664 = vmatprep.mubr.f32.mxu1 %v8768_v23 }
 0x44c   : > { %4499 = vmatmul.mubr.msk.f32.gmra.mrb[96].mxu0 %vm501_vm1, %v3367_v33 }
 0x44d   : > { %v2401_v62 = vpop.trf.xlu0  ;;  %3626 = vmatprep.mubr.f32.mxu0 %v8768_v23 }
 0x44e   : > { %4469 = vmatmul.mubr.msk.f32.gmra.mrb[100].mxu1 %vm501_vm1, %v2401_v62 }
 0x44f   : > { %v3368_v27 = vpop.trf.xlu1  ;;  %2670 = vmatprep.mubr.f32.mxu1 %v8768_v23 }
 0x450   : > { %4500 = vmatmul.mubr.msk.f32.gmra.mrb[98].mxu0 %vm501_vm1, %v3368_v27 }
 0x451   : > { %v2402_v7 = vpop.trf.xlu0  ;;  %3632 = vmatprep.mubr.f32.mxu0 %v8768_v23 }
 0x452   : > { %4470 = vmatmul.mubr.msk.f32.gmra.mrb[102].mxu1 %vm501_vm1, %v2402_v7 }
 0x453   : > { %v3369_v54 = vpop.trf.xlu1  ;;  %2676 = vmatprep.mubr.f32.mxu1 %v8768_v23 }
 0x454   : > { %4501 = vmatmul.mubr.msk.f32.gmra.mrb[100].mxu0 %vm501_vm1, %v3369_v54 }
 0x455   : > { %v2403_v46 = vpop.trf.xlu0  ;;  %3638 = vmatprep.mubr.f32.mxu0 %v8768_v23 }
 0x456   : > { %4471 = vmatmul.mubr.msk.f32.gmra.mrb[104].mxu1 %vm501_vm1, %v2403_v46 }
 0x457   : > { %v3370_v15 = vpop.trf.xlu1  ;;  %2682 = vmatprep.mubr.f32.mxu1 %v8768_v23 }
 0x458   : > { %4502 = vmatmul.mubr.msk.f32.gmra.mrb[102].mxu0 %vm501_vm1, %v3370_v15 }
 0x459   : > { %v2404_v57 = vpop.trf.xlu0  ;;  %3644 = vmatprep.mubr.f32.mxu0 %v8768_v23 }
 0x45a   : > { %4472 = vmatmul.mubr.msk.f32.gmra.mrb[106].mxu1 %vm501_vm1, %v2404_v57 }
 0x45b   : > { %v3371_v38 = vpop.trf.xlu1  ;;  %2688 = vmatprep.mubr.f32.mxu1 %v8768_v23 }
 0x45c   : > { %4503 = vmatmul.mubr.msk.f32.gmra.mrb[104].mxu0 %vm501_vm1, %v3371_v38 }
 0x45d   : > { %v2405_v40 = vpop.trf.xlu0  ;;  %3650 = vmatprep.mubr.f32.mxu0 %v8768_v23 }
 0x45e   : > { %4473 = vmatmul.mubr.msk.f32.gmra.mrb[108].mxu1 %vm501_vm1, %v2405_v40 }
 0x45f   : > { %v3372_v26 = vpop.trf.xlu1  ;;  %2694 = vmatprep.mubr.f32.mxu1 %v8768_v23 }
 0x460   : > { %4504 = vmatmul.mubr.msk.f32.gmra.mrb[106].mxu0 %vm501_vm1, %v3372_v26 }
 0x461   : > { %v2422_v1 = vpop.trf.xlu0  ;;  %3656 = vmatprep.mubr.f32.mxu0 %v8768_v23 }
 0x462   : > { %4474 = vmatmul.mubr.msk.f32.gmra.mrb[110].mxu1 %vm501_vm1, %v2422_v1 }
 0x463   : > { %v3373_v32 = vpop.trf.xlu1  ;;  %2700 = vmatprep.mubr.f32.mxu1 %v8768_v23 }
 0x464   : > { %4505 = vmatmul.mubr.msk.f32.gmra.mrb[108].mxu0 %vm501_vm1, %v3373_v32 }
 0x465   : > { %v2423_v11 = vpop.trf.xlu0  ;;  %3662 = vmatprep.mubr.f32.mxu0 %v8768_v23 }
 0x466   : > { %4475 = vmatmul.mubr.msk.f32.gmra.mrb[112].mxu1 %vm501_vm1, %v2423_v11 }
 0x467   : > { %v3390_v18 = vpop.trf.xlu1  ;;  %2706 = vmatprep.mubr.f32.mxu1 %v8768_v23 }
 0x468   : > { %4506 = vmatmul.mubr.msk.f32.gmra.mrb[110].mxu0 %vm501_vm1, %v3390_v18 }
 0x469   : > { %v2424_v50 = vpop.trf.xlu0  ;;  %3668 = vmatprep.mubr.f32.mxu0 %v8768_v23 }
 0x46a   : > { %4476 = vmatmul.mubr.msk.f32.gmra.mrb[114].mxu1 %vm501_vm1, %v2424_v50 }
 0x46b   : > { %v3391_v44 = vpop.trf.xlu1  ;;  %2712 = vmatprep.mubr.f32.mxu1 %v8768_v23 }
 0x46c   : > { %4507 = vmatmul.mubr.msk.f32.gmra.mrb[112].mxu0 %vm501_vm1, %v3391_v44 }
 0x46d   : > { %v2425_v42 = vpop.trf.xlu0  ;;  %3674 = vmatprep.mubr.f32.mxu0 %v8768_v23 }
 0x46e   : > { %4477 = vmatmul.mubr.msk.f32.gmra.mrb[116].mxu1 %vm501_vm1, %v2425_v42 }
 0x46f   : > { %v3392_v58 = vpop.trf.xlu1  ;;  %2718 = vmatprep.mubr.f32.mxu1 %v8768_v23 }
 0x470   : > { %4508 = vmatmul.mubr.msk.f32.gmra.mrb[114].mxu0 %vm501_vm1, %v3392_v58 }
 0x471   : > { %v2426_v10 = vpop.trf.xlu0  ;;  %3680 = vmatprep.mubr.f32.mxu0 %v8768_v23 }
 0x472   : > { %4478 = vmatmul.mubr.msk.f32.gmra.mrb[118].mxu1 %vm501_vm1, %v2426_v10 }
 0x473   : > { %v3393_v22 = vpop.trf.xlu1  ;;  %2724 = vmatprep.mubr.f32.mxu1 %v8768_v23 }
 0x474   : > { %4509 = vmatmul.mubr.msk.f32.gmra.mrb[116].mxu0 %vm501_vm1, %v3393_v22 }
 0x475   : > { %v2427_v35 = vpop.trf.xlu0  ;;  %3686 = vmatprep.mubr.f32.mxu0 %v8768_v23 }
 0x476   : > { %4479 = vmatmul.mubr.msk.f32.gmra.mrb[120].mxu1 %vm501_vm1, %v2427_v35 }
 0x477   : > { %v3394_v60 = vpop.trf.xlu1  ;;  %2730 = vmatprep.mubr.f32.mxu1 %v8768_v23 }
 0x478   : > { %4510 = vmatmul.mubr.msk.f32.gmra.mrb[118].mxu0 %vm501_vm1, %v3394_v60 }
 0x479   : > { %v2428_v5 = vpop.trf.xlu0  ;;  %3692 = vmatprep.mubr.f32.mxu0 %v8768_v23 }
 0x47a   : > { %4480 = vmatmul.mubr.msk.f32.gmra.mrb[122].mxu1 %vm501_vm1, %v2428_v5 }
 0x47b   : > { %v3395_v47 = vpop.trf.xlu1  ;;  %2736 = vmatprep.mubr.f32.mxu1 %v8768_v23 }
 0x47c   : > { %4511 = vmatmul.mubr.msk.f32.gmra.mrb[120].mxu0 %vm501_vm1, %v3395_v47 }
 0x47d   : > { %v2429_v36 = vpop.trf.xlu0  ;;  %3698 = vmatprep.mubr.f32.mxu0 %v8768_v23 }
 0x47e   : > { %4481 = vmatmul.mubr.msk.f32.gmra.mrb[124].mxu1 %vm501_vm1, %v2429_v36 }
 0x47f   : > { %v3396_v2 = vpop.trf.xlu1  ;;  %2742 = vmatprep.mubr.f32.mxu1 %v8768_v23 }
 0x480   : > { %4512 = vmatmul.mubr.msk.f32.gmra.mrb[122].mxu0 %vm501_vm1, %v3396_v2 }
 0x481   : > { %v2430_v9 = vpop.trf.xlu0  ;;  %3704 = vmatprep.mubr.f32.mxu0 %v8768_v23 }
 0x482   : > { %4482 = vmatmul.mubr.msk.f32.gmra.mrb[126].mxu1 %vm501_vm1, %v2430_v9 }
 0x483   : > { %v3397_v16 = vpop.trf.xlu1  ;;  %2748 = vmatprep.mubr.f32.mxu1 %v8768_v23 }
 0x484   : > { %4513 = vmatmul.mubr.msk.f32.gmra.mrb[124].mxu0 %vm501_vm1, %v3397_v16 }
 0x485   : > { %v2431_v34 = vpop.trf.xlu0  ;;  %3710 = vmatprep.mubr.f32.mxu0 %v8768_v23 }
 0x486   : > { %4483 = vmatmul.mubr.msk.f32.gmra.mrb[128].mxu1 %vm501_vm1, %v2431_v34 }
 0x487   : > { %v3398_v31 = vpop.trf.xlu1  ;;  %2754 = vmatprep.mubr.f32.mxu1 %v8768_v23 }
 0x488   : > { %4514 = vmatmul.mubr.msk.f32.gmra.mrb[126].mxu0 %vm501_vm1, %v3398_v31 }
 0x489   : > { %v2432_v20 = vpop.trf.xlu0  ;;  %3716 = vmatprep.mubr.f32.mxu0 %v8768_v23 }
 0x48a   : > { %4484 = vmatmul.mubr.msk.f32.gmra.mrb[130].mxu1 %vm501_vm1, %v2432_v20 }
 0x48b   : > { %v3399_v0 = vpop.trf.xlu1  ;;  %2760 = vmatprep.mubr.f32.mxu1 %v8768_v23 }
 0x48c   : > { %4515 = vmatmul.mubr.msk.f32.gmra.mrb[128].mxu0 %vm501_vm1, %v3399_v0 }
 0x48d   : > { %v2433_v19 = vpop.trf.xlu0  ;;  %3722 = vmatprep.mubr.f32.mxu0 %v8768_v23 }
 0x48e   : > { %4485 = vmatmul.mubr.msk.f32.gmra.mrb[132].mxu1 %vm501_vm1, %v2433_v19 }
 0x48f   : > { %v3400_v3 = vpop.trf.xlu1  ;;  %2766 = vmatprep.mubr.f32.mxu1 %v8768_v23 }
 0x490   : > { %4516 = vmatmul.mubr.msk.f32.gmra.mrb[130].mxu0 %vm501_vm1, %v3400_v3 }
 0x491   : > { %v2434_v41 = vpop.trf.xlu0  ;;  %3728 = vmatprep.mubr.f32.mxu0 %v8768_v23 }
 0x492   : > { %4486 = vmatmul.mubr.msk.f32.gmra.mrb[134].mxu1 %vm501_vm1, %v2434_v41 }
 0x493   : > { %v3401_v29 = vpop.trf.xlu1  ;;  %2772 = vmatprep.mubr.f32.mxu1 %v8768_v23 }
 0x494   : > { %4517 = vmatmul.mubr.msk.f32.gmra.mrb[132].mxu0 %vm501_vm1, %v3401_v29 }
 0x495   : > { %v2435_v39 = vpop.trf.xlu0  ;;  %3734 = vmatprep.mubr.f32.mxu0 %v8768_v23 }
 0x496   : > { %4487 = vmatmul.mubr.msk.f32.gmra.mrb[136].mxu1 %vm501_vm1, %v2435_v39 }
 0x497   : > { %v3402_v52 = vpop.trf.xlu1  ;;  %2778 = vmatprep.mubr.f32.mxu1 %v8768_v23 }
 0x498   : > { %4518 = vmatmul.mubr.msk.f32.gmra.mrb[134].mxu0 %vm501_vm1, %v3402_v52 }
 0x499   : > { %v2436_v51 = vpop.trf.xlu0  ;;  %3740 = vmatprep.mubr.f32.mxu0 %v8768_v23 }
 0x49a   : > { %4488 = vmatmul.mubr.msk.f32.gmra.mrb[138].mxu1 %vm501_vm1, %v2436_v51 }
 0x49b   : > { %v3403_v17 = vpop.trf.xlu1  ;;  %2784 = vmatprep.mubr.f32.mxu1 %v8768_v23 }
 0x49c   : > { %4519 = vmatmul.mubr.msk.f32.gmra.mrb[136].mxu0 %vm501_vm1, %v3403_v17 }
 0x49d   : > { %v2437_v30 = vpop.trf.xlu0  ;;  %3746 = vmatprep.mubr.f32.mxu0 %v8768_v23 }
 0x49e   : > { %4489 = vmatmul.mubr.msk.f32.gmra.mrb[140].mxu1 %vm501_vm1, %v2437_v30 }
 0x49f   : > { %v3404_v25 = vpop.trf.xlu1 }
 0x4a0   : > { %4520 = vmatmul.mubr.msk.f32.gmra.mrb[138].mxu0 %vm501_vm1, %v3404_v25 }
 0x4a1   : > { %3752 = vmatprep.mubr.f32.mxu0 %v8768_v23 }
 0x4a3   : > { %v3405_v43 = vpop.trf.xlu1 }
 0x4a4   : > { %4521 = vmatmul.mubr.msk.f32.gmra.mrb[140].mxu0 %vm501_vm1, %v3405_v43 }
 0x4e1   : > { %v1401_v24 = vpop.f32.mrb[76].mxu1 }
 0x4e2   : > { %4310 = vst [vmem:[%s7051_s15] sm:$0xff] %v1401_v24  ;;  %v1403_v63 = vpop.f32.mrb[77].mxu1 }
 0x4e3   : > { %4311 = vst [vmem:[%s7051_s15 + $0x8] sm:$0xff] %v1403_v63 }
 0x4e5   : > { %v2369_v37 = vpop.f32.mrb[76].mxu0 }
 0x4e6   : > { %4312 = vst [vmem:[%s7051_s15 + $0x10] sm:$0xff] %v2369_v37  ;;  %v2371_v23 = vpop.f32.mrb[77].mxu0 }
 0x4e7   : > { %4313 = vst [vmem:[%s7051_s15 + $0x18] sm:$0xff] %v2371_v23 }
 0x4f5   : > { %v7057_v14 = vpop.f32.mrb[78].mxu1 }
 0x4f6   : > { %v7059_v21 = vpop.f32.mrb[79].mxu1 }
 0x4f7   : > { %v2791_v6 = vmax.f32 %v7057_v14, %v7059_v21 }
 0x4f9   : > { %2792 = vmax.xlane.f32.xlu0 %v2791_v6  ;;  %v7063_v12 = vpop.f32.mrb[80].mxu1 }
 0x4fa   : > { %v7065_v45 = vpop.f32.mrb[81].mxu1 }
 0x4fb   : > { %v2794_v8 = vmax.f32 %v7063_v12, %v7065_v45  ;;  %v7069_v59 = vpop.f32.mrb[78].mxu0 }
 0x4fc   : > { %v7071_v4 = vpop.f32.mrb[79].mxu0 }
 0x4fd   : > { %v3759_v49 = vmax.f32 %v7069_v59, %v7071_v4  ;;  %2795 = vmax.xlane.f32.xlu1 %v2794_v8  ;;  %v7075_v56 = vpop.f32.mrb[82].mxu1 }
 0x4fe   : > { %v7077_v55 = vpop.f32.mrb[83].mxu1 }
 0x4ff   : > { %v2797_v13 = vmax.f32 %v7075_v56, %v7077_v55  ;;  %v7081_v48 = vpop.f32.mrb[80].mxu0  ;;  %3760 = vmax.xlane.f32.xlu0 %v3759_v49 }
 0x500   : > { %v7083_v61 = vpop.f32.mrb[81].mxu0 }
 0x501   : > { %v3762_v28 = vmax.f32 %v7081_v48, %v7083_v61  ;;  %2798 = vmax.xlane.f32.xlu1 %v2797_v13  ;;  %v7087_v53 = vpop.f32.mrb[84].mxu1 }
 0x502   : > { %v7089_v33 = vpop.f32.mrb[85].mxu1 }
 0x503   : > { %v7091_v62 = vpop.f32.mrb[82].mxu0  ;;  %3763 = vmax.xlane.f32.xlu0 %v3762_v28  ;;  %v2800_v27 = vmax.f32 %v7087_v53, %v7089_v33 }
 0x504   : > { %v7095_v7 = vpop.f32.mrb[83].mxu0 }
 0x505   : > { %v3765_v54 = vmax.f32 %v7091_v62, %v7095_v7  ;;  %v7099_v46 = vpop.f32.mrb[86].mxu1 }
 0x506   : > { %v7101_v15 = vpop.f32.mrb[87].mxu1 }
 0x507   : > { %v7103_v57 = vpop.f32.mrb[84].mxu0  ;;  %3766 = vmax.xlane.f32.xlu1 %v3765_v54  ;;  %2801 = vmax.xlane.f32.xlu0 %v2800_v27  ;;  %v2803_v38 = vmax.f32 %v7099_v46, %v7101_v15 }
 0x508   : > { %v7107_v40 = vpop.f32.mrb[85].mxu0 }
 0x509   : > { %v3768_v26 = vmax.f32 %v7103_v57, %v7107_v40  ;;  %v7111_v1 = vpop.f32.mrb[88].mxu1 }
 0x50a   : > { %v7113_v32 = vpop.f32.mrb[89].mxu1 }
 0x50b   : > { %v7115_v11 = vpop.f32.mrb[86].mxu0  ;;  %3769 = vmax.xlane.f32.xlu0 %v3768_v26  ;;  %2804 = vmax.xlane.f32.xlu1 %v2803_v38  ;;  %v2806_v18 = vmax.f32 %v7111_v1, %v7113_v32 }
 0x50c   : > { %v7119_v50 = vpop.f32.mrb[87].mxu0 }
 0x50d   : > { %v3771_v44 = vmax.f32 %v7115_v11, %v7119_v50  ;;  %v7123_v42 = vpop.f32.mrb[90].mxu1 }
 0x50e   : > { %v7125_v58 = vpop.f32.mrb[91].mxu1 }
 0x50f   : > { %v7127_v10 = vpop.f32.mrb[88].mxu0  ;;  %3772 = vmax.xlane.f32.xlu1 %v3771_v44  ;;  %2807 = vmax.xlane.f32.xlu0 %v2806_v18  ;;  %v2809_v22 = vmax.f32 %v7123_v42, %v7125_v58 }
 0x510   : > { %v7131_v35 = vpop.f32.mrb[89].mxu0 }
 0x511   : > { %v3774_v60 = vmax.f32 %v7127_v10, %v7131_v35  ;;  %v7135_v5 = vpop.f32.mrb[92].mxu1 }
 0x512   : > { %v7137_v47 = vpop.f32.mrb[93].mxu1 }
 0x513   : > { %v7139_v36 = vpop.f32.mrb[90].mxu0  ;;  %3775 = vmax.xlane.f32.xlu0 %v3774_v60  ;;  %2810 = vmax.xlane.f32.xlu1 %v2809_v22  ;;  %v2812_v2 = vmax.f32 %v7135_v5, %v7137_v47 }
 0x514   : > { %v7143_v9 = vpop.f32.mrb[91].mxu0 }
 0x515   : > { %v3777_v16 = vmax.f32 %v7139_v36, %v7143_v9  ;;  %v7147_v34 = vpop.f32.mrb[94].mxu1 }
 0x516   : > { %v7149_v31 = vpop.f32.mrb[95].mxu1 }
 0x517   : > { %v7151_v20 = vpop.f32.mrb[92].mxu0  ;;  %3778 = vmax.xlane.f32.xlu1 %v3777_v16  ;;  %2813 = vmax.xlane.f32.xlu0 %v2812_v2  ;;  %v2815_v0 = vmax.f32 %v7147_v34, %v7149_v31 }
 0x518   : > { %v7155_v19 = vpop.f32.mrb[93].mxu0 }
 0x519   : > { %v3780_v3 = vmax.f32 %v7151_v20, %v7155_v19  ;;  %v7159_v41 = vpop.f32.mrb[96].mxu1 }
 0x51a   : > { %v7161_v29 = vpop.f32.mrb[97].mxu1 }
 0x51b   : > { %v7163_v39 = vpop.f32.mrb[94].mxu0  ;;  %3781 = vmax.xlane.f32.xlu0 %v3780_v3  ;;  %2816 = vmax.xlane.f32.xlu1 %v2815_v0  ;;  %v2818_v52 = vmax.f32 %v7159_v41, %v7161_v29 }
 0x51c   : > { %v7167_v51 = vpop.f32.mrb[95].mxu0 }
 0x51d   : > { %v3783_v17 = vmax.f32 %v7163_v39, %v7167_v51  ;;  %v7171_v30 = vpop.f32.mrb[98].mxu1 }
 0x51e   : > { %v7173_v25 = vpop.f32.mrb[99].mxu1 }
 0x51f   : > { %v7175_v43 = vpop.f32.mrb[96].mxu0  ;;  %3784 = vmax.xlane.f32.xlu1 %v3783_v17  ;;  %2819 = vmax.xlane.f32.xlu0 %v2818_v52  ;;  %v2821_v24 = vmax.f32 %v7171_v30, %v7173_v25 }
 0x520   : > { %v7179_v63 = vpop.f32.mrb[97].mxu0 }
 0x521   : > { %v3786_v37 = vmax.f32 %v7175_v43, %v7179_v63  ;;  %v7183_v23 = vpop.f32.mrb[100].mxu1 }
 0x522   : > { %v7185_v6 = vpop.f32.mrb[101].mxu1 }
 0x523   : > { %v7187_v8 = vpop.f32.mrb[98].mxu0  ;;  %3787 = vmax.xlane.f32.xlu0 %v3786_v37  ;;  %2822 = vmax.xlane.f32.xlu1 %v2821_v24  ;;  %v2824_v49 = vmax.f32 %v7183_v23, %v7185_v6 }
 0x524   : > { %v7191_v13 = vpop.f32.mrb[99].mxu0 }
 0x525   : > { %v3789_v28 = vmax.f32 %v7187_v8, %v7191_v13  ;;  %v7195_v27 = vpop.f32.mrb[102].mxu1 }
 0x526   : > { %v7197_v54 = vpop.f32.mrb[103].mxu1 }
 0x527   : > { %v7199_v38 = vpop.f32.mrb[100].mxu0  ;;  %3790 = vmax.xlane.f32.xlu1 %v3789_v28  ;;  %2825 = vmax.xlane.f32.xlu0 %v2824_v49  ;;  %v2827_v26 = vmax.f32 %v7195_v27, %v7197_v54 }
 0x528   : > { %v7203_v18 = vpop.f32.mrb[101].mxu0 }
 0x529   : > { %v3792_v44 = vmax.f32 %v7199_v38, %v7203_v18  ;;  %v7207_v22 = vpop.f32.mrb[104].mxu1 }
 0x52a   : > { %8771 = vst [vmem:[#allocation17_spill] sm:$0xff] %v7207_v22  ;;  %v7209_v60 = vpop.f32.mrb[105].mxu1 }
 0x52b   : > { %8772 = vst [vmem:[#allocation2_spill] sm:$0xff] %v7209_v60  ;;  %v7211_v2 = vpop.f32.mrb[102].mxu0  ;;  %3793 = vmax.xlane.f32.xlu0 %v3792_v44  ;;  %2828 = vmax.xlane.f32.xlu1 %v2827_v26  ;;  %v2830_v16 = vmax.f32 %v7207_v22, %v7209_v60 }
 0x52c   : > { %8773 = vst [vmem:[#allocation98_spill] sm:$0xff] %v7211_v2  ;;  %v7215_v0 = vpop.f32.mrb[103].mxu0 }
 0x52d   : > { %8774 = vst [vmem:[#allocation4_spill] sm:$0xff] %v7215_v0  ;;  %v3795_v3 = vmax.f32 %v7211_v2, %v7215_v0  ;;  %v7219_v52 = vpop.f32.mrb[106].mxu1 }
 0x52e   : > { %8775 = vst [vmem:[#allocation20_spill] sm:$0xff] %v7219_v52  ;;  %v7221_v17 = vpop.f32.mrb[107].mxu1 }
 0x52f   : > { %8776 = vst [vmem:[#allocation25_spill] sm:$0xff] %v7221_v17  ;;  %v7223_v24 = vpop.f32.mrb[104].mxu0  ;;  %3796 = vmax.xlane.f32.xlu1 %v3795_v3  ;;  %2831 = vmax.xlane.f32.xlu0 %v2830_v16  ;;  %v2833_v37 = vmax.f32 %v7219_v52, %v7221_v17 }
 0x530   : > { %8777 = vst [vmem:[#allocation19_spill] sm:$0xff] %v7223_v24  ;;  %v7227_v49 = vpop.f32.mrb[105].mxu0 }
 0x531   : > { %8778 = vst [vmem:[#allocation22_spill] sm:$0xff] %v7227_v49  ;;  %v3798_v28 = vmax.f32 %v7223_v24, %v7227_v49  ;;  %v7231_v26 = vpop.f32.mrb[108].mxu1 }
 0x532   : > { %8779 = vst [vmem:[#allocation21_spill] sm:$0xff] %v7231_v26  ;;  %v7233_v44 = vpop.f32.mrb[109].mxu1 }
 0x533   : > { %8780 = vst [vmem:[#allocation28_spill] sm:$0xff] %v7233_v44  ;;  %v7235_v60 = vpop.f32.mrb[106].mxu0  ;;  %3799 = vmax.xlane.f32.xlu0 %v3798_v28  ;;  %2834 = vmax.xlane.f32.xlu1 %v2833_v37  ;;  %v2836_v3 = vmax.f32 %v7231_v26, %v7233_v44 }
 0x534   : > { %8781 = vst [vmem:[#allocation23_spill] sm:$0xff] %v7235_v60  ;;  %v7239_v16 = vpop.f32.mrb[107].mxu0 }
 0x535   : > { %8782 = vst [vmem:[#allocation27_spill] sm:$0xff] %v7239_v16  ;;  %v3801_v17 = vmax.f32 %v7235_v60, %v7239_v16  ;;  %v7243_v52 = vpop.f32.mrb[110].mxu1 }
 0x536   : > { %8783 = vst [vmem:[#allocation24_spill] sm:$0xff] %v7243_v52  ;;  %v7245_v22 = vpop.f32.mrb[111].mxu1 }
 0x537   : > { %8784 = vst [vmem:[#allocation33_spill] sm:$0xff] %v7245_v22  ;;  %v7247_v49 = vpop.f32.mrb[108].mxu0  ;;  %3802 = vmax.xlane.f32.xlu1 %v3801_v17  ;;  %2837 = vmax.xlane.f32.xlu0 %v2836_v3  ;;  %v2839_v28 = vmax.f32 %v7243_v52, %v7245_v22 }
 0x538   : > { %8785 = vst [vmem:[#allocation26_spill] sm:$0xff] %v7247_v49  ;;  %v7251_v37 = vpop.f32.mrb[109].mxu0 }
 0x539   : > { %8786 = vst [vmem:[#allocation30_spill] sm:$0xff] %v7251_v37  ;;  %v3804_v44 = vmax.f32 %v7247_v49, %v7251_v37  ;;  %v7255_v26 = vpop.f32.mrb[112].mxu1 }
 0x53a   : > { %8787 = vst [vmem:[#allocation29_spill] sm:$0xff] %v7255_v26  ;;  %v7257_v24 = vpop.f32.mrb[113].mxu1 }
 0x53b   : > { %8788 = vst [vmem:[#allocation36_spill] sm:$0xff] %v7257_v24  ;;  %v7259_v16 = vpop.f32.mrb[110].mxu0  ;;  %3805 = vmax.xlane.f32.xlu0 %v3804_v44  ;;  %2840 = vmax.xlane.f32.xlu1 %v2839_v28  ;;  %v2842_v17 = vmax.f32 %v7255_v26, %v7257_v24 }
 0x53c   : > { %8789 = vst [vmem:[#allocation31_spill] sm:$0xff] %v7259_v16  ;;  %v7263_v3 = vpop.f32.mrb[111].mxu0 }
 0x53d   : > { %8790 = vst [vmem:[#allocation35_spill] sm:$0xff] %v7263_v3  ;;  %v3807_v22 = vmax.f32 %v7259_v16, %v7263_v3  ;;  %v7267_v52 = vpop.f32.mrb[114].mxu1 }
 0x53e   : > { %8791 = vst [vmem:[#allocation32_spill] sm:$0xff] %v7267_v52  ;;  %v7269_v60 = vpop.f32.mrb[115].mxu1 }
 0x53f   : > { %8792 = vst [vmem:[#allocation41_spill] sm:$0xff] %v7269_v60  ;;  %v7271_v37 = vpop.f32.mrb[112].mxu0  ;;  %3808 = vmax.xlane.f32.xlu1 %v3807_v22  ;;  %2843 = vmax.xlane.f32.xlu0 %v2842_v17  ;;  %v2845_v44 = vmax.f32 %v7267_v52, %v7269_v60 }
 0x540   : > { %8793 = vst [vmem:[#allocation34_spill] sm:$0xff] %v7271_v37  ;;  %v7275_v28 = vpop.f32.mrb[113].mxu0 }
 0x541   : > { %8794 = vst [vmem:[#allocation38_spill] sm:$0xff] %v7275_v28  ;;  %v3810_v24 = vmax.f32 %v7271_v37, %v7275_v28  ;;  %v7279_v26 = vpop.f32.mrb[116].mxu1 }
 0x542   : > { %8795 = vst [vmem:[#allocation37_spill] sm:$0xff] %v7279_v26  ;;  %v7281_v49 = vpop.f32.mrb[117].mxu1 }
 0x543   : > { %8796 = vst [vmem:[#allocation44_spill] sm:$0xff] %v7281_v49  ;;  %v7283_v3 = vpop.f32.mrb[114].mxu0  ;;  %3811 = vmax.xlane.f32.xlu0 %v3810_v24  ;;  %2846 = vmax.xlane.f32.xlu1 %v2845_v44  ;;  %v2848_v22 = vmax.f32 %v7279_v26, %v7281_v49 }
 0x544   : > { %8797 = vst [vmem:[#allocation39_spill] sm:$0xff] %v7283_v3  ;;  %v7287_v17 = vpop.f32.mrb[115].mxu0 }
 0x545   : > { %8798 = vst [vmem:[#allocation43_spill] sm:$0xff] %v7287_v17  ;;  %v3813_v60 = vmax.f32 %v7283_v3, %v7287_v17  ;;  %v7291_v52 = vpop.f32.mrb[118].mxu1 }
 0x546   : > { %8799 = vst [vmem:[#allocation40_spill] sm:$0xff] %v7291_v52  ;;  %v7293_v16 = vpop.f32.mrb[119].mxu1 }
 0x547   : > { %8800 = vst [vmem:[#allocation49_spill] sm:$0xff] %v7293_v16  ;;  %v7295_v28 = vpop.f32.mrb[116].mxu0  ;;  %3814 = vmax.xlane.f32.xlu1 %v3813_v60  ;;  %2849 = vmax.xlane.f32.xlu0 %v2848_v22  ;;  %v2851_v24 = vmax.f32 %v7291_v52, %v7293_v16 }
 0x548   : > { %8801 = vst [vmem:[#allocation42_spill] sm:$0xff] %v7295_v28  ;;  %v7299_v44 = vpop.f32.mrb[117].mxu0 }
 0x549   : > { %8802 = vst [vmem:[#allocation46_spill] sm:$0xff] %v7299_v44  ;;  %v3816_v49 = vmax.f32 %v7295_v28, %v7299_v44  ;;  %v7303_v26 = vpop.f32.mrb[120].mxu1 }
 0x54a   : > { %8803 = vst [vmem:[#allocation45_spill] sm:$0xff] %v7303_v26  ;;  %v7305_v37 = vpop.f32.mrb[121].mxu1 }
 0x54b   : > { %8804 = vst [vmem:[#allocation52_spill] sm:$0xff] %v7305_v37  ;;  %v7307_v17 = vpop.f32.mrb[118].mxu0  ;;  %3817 = vmax.xlane.f32.xlu0 %v3816_v49  ;;  %2852 = vmax.xlane.f32.xlu1 %v2851_v24  ;;  %v2854_v60 = vmax.f32 %v7303_v26, %v7305_v37 }
 0x54c   : > { %8805 = vst [vmem:[#allocation47_spill] sm:$0xff] %v7307_v17  ;;  %v7311_v22 = vpop.f32.mrb[119].mxu0 }
 0x54d   : > { %8806 = vst [vmem:[#allocation51_spill] sm:$0xff] %v7311_v22  ;;  %v3819_v16 = vmax.f32 %v7307_v17, %v7311_v22  ;;  %v7315_v52 = vpop.f32.mrb[122].mxu1 }
 0x54e   : > { %8807 = vst [vmem:[#allocation48_spill] sm:$0xff] %v7315_v52  ;;  %v7317_v3 = vpop.f32.mrb[123].mxu1 }
 0x54f   : > { %8808 = vst [vmem:[#allocation57_spill] sm:$0xff] %v7317_v3  ;;  %v7319_v44 = vpop.f32.mrb[120].mxu0  ;;  %3820 = vmax.xlane.f32.xlu1 %v3819_v16  ;;  %2855 = vmax.xlane.f32.xlu0 %v2854_v60  ;;  %v2857_v49 = vmax.f32 %v7315_v52, %v7317_v3 }
 0x550   : > { %8809 = vst [vmem:[#allocation50_spill] sm:$0xff] %v7319_v44  ;;  %v7323_v24 = vpop.f32.mrb[121].mxu0 }
 0x551   : > { %8810 = vst [vmem:[#allocation54_spill] sm:$0xff] %v7323_v24  ;;  %v3822_v37 = vmax.f32 %v7319_v44, %v7323_v24  ;;  %v7327_v26 = vpop.f32.mrb[124].mxu1 }
 0x552   : > { %8811 = vst [vmem:[#allocation53_spill] sm:$0xff] %v7327_v26  ;;  %v7329_v28 = vpop.f32.mrb[125].mxu1 }
 0x553   : > { %8812 = vst [vmem:[#allocation60_spill] sm:$0xff] %v7329_v28  ;;  %v7331_v22 = vpop.f32.mrb[122].mxu0  ;;  %3823 = vmax.xlane.f32.xlu0 %v3822_v37  ;;  %2858 = vmax.xlane.f32.xlu1 %v2857_v49  ;;  %v2860_v16 = vmax.f32 %v7327_v26, %v7329_v28 }
 0x554   : > { %8813 = vst [vmem:[#allocation55_spill] sm:$0xff] %v7331_v22  ;;  %v7335_v60 = vpop.f32.mrb[123].mxu0 }
 0x555   : > { %8814 = vst [vmem:[#allocation59_spill] sm:$0xff] %v7335_v60  ;;  %v3825_v3 = vmax.f32 %v7331_v22, %v7335_v60  ;;  %v7339_v52 = vpop.f32.mrb[126].mxu1 }
 0x556   : > { %8815 = vst [vmem:[#allocation56_spill] sm:$0xff] %v7339_v52  ;;  %v7341_v17 = vpop.f32.mrb[127].mxu1 }
 0x557   : > { %8816 = vst [vmem:[#allocation65_spill] sm:$0xff] %v7341_v17  ;;  %v7343_v24 = vpop.f32.mrb[124].mxu0  ;;  %3826 = vmax.xlane.f32.xlu1 %v3825_v3  ;;  %2861 = vmax.xlane.f32.xlu0 %v2860_v16  ;;  %v2863_v37 = vmax.f32 %v7339_v52, %v7341_v17 }
 0x558   : > { %8817 = vst [vmem:[#allocation58_spill] sm:$0xff] %v7343_v24  ;;  %v7347_v49 = vpop.f32.mrb[125].mxu0 }
 0x559   : > { %8818 = vst [vmem:[#allocation62_spill] sm:$0xff] %v7347_v49  ;;  %v3828_v28 = vmax.f32 %v7343_v24, %v7347_v49  ;;  %v7351_v26 = vpop.f32.mrb[128].mxu1 }
 0x55a   : > { %8819 = vst [vmem:[#allocation3_spill] sm:$0xff] %v7351_v26  ;;  %v7353_v44 = vpop.f32.mrb[129].mxu1 }
 0x55b   : > { %8820 = vst [vmem:[#allocation61_spill] sm:$0xff] %v7353_v44  ;;  %v7355_v60 = vpop.f32.mrb[126].mxu0  ;;  %3829 = vmax.xlane.f32.xlu0 %v3828_v28  ;;  %2864 = vmax.xlane.f32.xlu1 %v2863_v37  ;;  %v2866_v3 = vmax.f32 %v7351_v26, %v7353_v44 }
 0x55c   : > { %8821 = vst [vmem:[#allocation68_spill] sm:$0xff] %v7355_v60  ;;  %v7359_v16 = vpop.f32.mrb[127].mxu0 }
 0x55d   : > { %8822 = vst [vmem:[#allocation63_spill] sm:$0xff] %v7359_v16  ;;  %v3831_v17 = vmax.f32 %v7355_v60, %v7359_v16  ;;  %v7363_v52 = vpop.f32.mrb[130].mxu1 }
 0x55e   : > { %8823 = vst [vmem:[#allocation67_spill] sm:$0xff] %v7363_v52  ;;  %v7365_v22 = vpop.f32.mrb[131].mxu1 }
 0x55f   : > { %8824 = vst [vmem:[#allocation5_spill] sm:$0xff] %v7365_v22  ;;  %v7367_v49 = vpop.f32.mrb[128].mxu0  ;;  %3832 = vmax.xlane.f32.xlu1 %v3831_v17  ;;  %2867 = vmax.xlane.f32.xlu0 %v2866_v3  ;;  %v2869_v28 = vmax.f32 %v7363_v52, %v7365_v22 }
 0x560   : > { %8825 = vst [vmem:[#allocation64_spill] sm:$0xff] %v7367_v49  ;;  %v7371_v37 = vpop.f32.mrb[129].mxu0 }
 0x561   : > { %8826 = vst [vmem:[#allocation73_spill] sm:$0xff] %v7371_v37  ;;  %v3834_v44 = vmax.f32 %v7367_v49, %v7371_v37  ;;  %v7375_v26 = vpop.f32.mrb[132].mxu1 }
 0x562   : > { %8827 = vst [vmem:[#allocation66_spill] sm:$0xff] %v7375_v26  ;;  %v7377_v24 = vpop.f32.mrb[133].mxu1 }
 0x563   : > { %8828 = vst [vmem:[#allocation70_spill] sm:$0xff] %v7377_v24  ;;  %v7379_v16 = vpop.f32.mrb[130].mxu0  ;;  %3835 = vmax.xlane.f32.xlu0 %v3834_v44  ;;  %2870 = vmax.xlane.f32.xlu1 %v2869_v28  ;;  %v2872_v17 = vmax.f32 %v7375_v26, %v7377_v24 }
 0x564   : > { %8829 = vst [vmem:[#allocation69_spill] sm:$0xff] %v7379_v16  ;;  %v7383_v3 = vpop.f32.mrb[131].mxu0 }
 0x565   : > { %8830 = vst [vmem:[#allocation76_spill] sm:$0xff] %v7383_v3  ;;  %v3837_v22 = vmax.f32 %v7379_v16, %v7383_v3  ;;  %v7387_v52 = vpop.f32.mrb[134].mxu1 }
 0x566   : > { %8831 = vst [vmem:[#allocation71_spill] sm:$0xff] %v7387_v52  ;;  %v7389_v60 = vpop.f32.mrb[135].mxu1 }
 0x567   : > { %8832 = vst [vmem:[#allocation75_spill] sm:$0xff] %v7389_v60  ;;  %v7391_v37 = vpop.f32.mrb[132].mxu0  ;;  %3838 = vmax.xlane.f32.xlu1 %v3837_v22  ;;  %2873 = vmax.xlane.f32.xlu0 %v2872_v17  ;;  %v2875_v44 = vmax.f32 %v7387_v52, %v7389_v60 }
 0x568   : > { %8833 = vst [vmem:[#allocation72_spill] sm:$0xff] %v7391_v37  ;;  %v7395_v28 = vpop.f32.mrb[133].mxu0 }
 0x569   : > { %8834 = vst [vmem:[#allocation81_spill] sm:$0xff] %v7395_v28  ;;  %v3840_v24 = vmax.f32 %v7391_v37, %v7395_v28  ;;  %v7399_v26 = vpop.f32.mrb[136].mxu1 }
 0x56a   : > { %8835 = vst [vmem:[#allocation74_spill] sm:$0xff] %v7399_v26  ;;  %v7401_v49 = vpop.f32.mrb[137].mxu1 }
 0x56b   : > { %8836 = vst [vmem:[#allocation78_spill] sm:$0xff] %v7401_v49  ;;  %v7403_v3 = vpop.f32.mrb[134].mxu0  ;;  %3841 = vmax.xlane.f32.xlu0 %v3840_v24  ;;  %2876 = vmax.xlane.f32.xlu1 %v2875_v44  ;;  %v2878_v22 = vmax.f32 %v7399_v26, %v7401_v49 }
 0x56c   : > { %8837 = vst [vmem:[#allocation77_spill] sm:$0xff] %v7403_v3  ;;  %v7407_v17 = vpop.f32.mrb[135].mxu0 }
 0x56d   : > { %8838 = vst [vmem:[#allocation84_spill] sm:$0xff] %v7407_v17  ;;  %v3843_v60 = vmax.f32 %v7403_v3, %v7407_v17  ;;  %v7411_v52 = vpop.f32.mrb[138].mxu1 }
 0x56e   : > { %8839 = vst [vmem:[#allocation79_spill] sm:$0xff] %v7411_v52  ;;  %v7413_v16 = vpop.f32.mrb[139].mxu1 }
 0x56f   : > { %8840 = vst [vmem:[#allocation83_spill] sm:$0xff] %v7413_v16  ;;  %v7415_v28 = vpop.f32.mrb[136].mxu0  ;;  %3844 = vmax.xlane.f32.xlu1 %v3843_v60  ;;  %2879 = vmax.xlane.f32.xlu0 %v2878_v22  ;;  %v2881_v24 = vmax.f32 %v7411_v52, %v7413_v16 }
 0x570   : > { %8841 = vst [vmem:[#allocation80_spill] sm:$0xff] %v7415_v28  ;;  %v7419_v44 = vpop.f32.mrb[137].mxu0 }
 0x571   : > { %8842 = vst [vmem:[#allocation82_spill] sm:$0xff] %v7419_v44  ;;  %v3846_v49 = vmax.f32 %v7415_v28, %v7419_v44  ;;  %v7423_v26 = vpop.f32.mrb[140].mxu1 }
 0x572   : > { %8843 = vst [vmem:[#allocation87_spill] sm:$0xff] %v7423_v26  ;;  %v7425_v37 = vpop.f32.mrb[141].mxu1 }
 0x573   : > { %8844 = vst [vmem:[#allocation86_spill] sm:$0xff] %v7425_v37  ;;  %v7427_v17 = vpop.f32.mrb[138].mxu0  ;;  %3847 = vmax.xlane.f32.xlu0 %v3846_v49  ;;  %2882 = vmax.xlane.f32.xlu1 %v2881_v24  ;;  %v2884_v60 = vmax.f32 %v7423_v26, %v7425_v37 }
 0x574   : > { %8845 = vst [vmem:[#allocation91_spill] sm:$0xff] %v7427_v17  ;;  %v7431_v22 = vpop.f32.mrb[139].mxu0 }
 0x575   : > { %8846 = vst [vmem:[#allocation85_spill] sm:$0xff] %v7431_v22  ;;  %v3849_v16 = vmax.f32 %v7427_v17, %v7431_v22 }
 0x577   : > { %v7435_v52 = vpop.f32.mrb[140].mxu0  ;;  %3850 = vmax.xlane.f32.xlu1 %v3849_v16  ;;  %2885 = vmax.xlane.f32.xlu0 %v2884_v60 }
 0x578   : > { %8847 = vst [vmem:[#allocation88_spill] sm:$0xff] %v7435_v52  ;;  %v7437_v44 = vpop.f32.mrb[141].mxu0 }
 0x579   : > { %8848 = vst [vmem:[#allocation90_spill] sm:$0xff] %v7437_v44  ;;  %v3852_v28 = vmax.f32 %v7435_v52, %v7437_v44 }
 0x57b   : > { %3853 = vmax.xlane.f32.xlu0 %v3852_v28 }
 0x586   : > { %v2793_v49 = vpop.xlane.xlu0 %2792 }
 0x587   : > { %v2887_v24 = vsub.f32 %v7057_v14, %v2793_v49  ;;  %v2888_v37 = vsub.f32 %v7059_v21, %v2793_v49 }
 0x589   : > { %v2951_v26 = vmul.f32 1.442695, %v2887_v24  ;;  %v2953_v3 = vmul.f32 1.442695, %v2888_v37 }
 0x58a   : > { %v2796_v0 = vpop.xlane.xlu1 %2795 }
 0x58b   : > { %5190 = vpow2.f32 %v2951_v26  ;;  %v2889_v22 = vsub.f32 %v7063_v12, %v2796_v0  ;;  %v2890_v16 = vsub.f32 %v7065_v45, %v2796_v0 }
 0x58c   : > { %5192 = vpow2.f32 %v2953_v3  ;;  %v3761_v60 = vpop.xlane.xlu0 %3760 }
 0x58d   : > { %v2955_v17 = vmul.f32 1.442695, %v2889_v22  ;;  %v2957_v2 = vmul.f32 1.442695, %v2890_v16  ;;  %v3855_v44 = vsub.f32 %v7069_v59, %v3761_v60  ;;  %v3856_v28 = vsub.f32 %v7071_v4, %v3761_v60 }
 0x58e   : > { %v2799_v52 = vpop.xlane.xlu1 %2798 }
 0x58f   : > { %5194 = vpow2.f32 %v2955_v17  ;;  %v3919_v14 = vmul.f32 1.442695, %v3855_v44  ;;  %v3921_v21 = vmul.f32 1.442695, %v3856_v28  ;;  %v2891_v37 = vsub.f32 %v7075_v56, %v2799_v52 }
 0x590   : > { %5196 = vpow2.f32 %v2957_v2  ;;  %v2892_v26 = vsub.f32 %v7077_v55, %v2799_v52  ;;  %v3764_v12 = vpop.xlane.xlu0 %3763 }
 0x591   : > { %5198 = vpow2.f32 %v3919_v14  ;;  %v2959_v45 = vmul.f32 1.442695, %v2891_v37  ;;  %v3857_v0 = vsub.f32 %v7081_v48, %v3764_v12  ;;  %v3858_v3 = vsub.f32 %v7083_v61, %v3764_v12 }
 0x592   : > { %5200 = vpow2.f32 %v3921_v21  ;;  %v2961_v59 = vmul.f32 1.442695, %v2892_v26 }
 0x593   : > { %5202 = vpow2.f32 %v2959_v45  ;;  %v3923_v4 = vmul.f32 1.442695, %v3857_v0  ;;  %v3925_v22 = vmul.f32 1.442695, %v3858_v3 }
 0x594   : > { %5204 = vpow2.f32 %v2961_v59  ;;  %v3767_v17 = vpop.xlane.xlu1 %3766  ;;  %v2802_v44 = vpop.xlane.xlu0 %2801 }
 0x595   : > { %v7451_v49 = vpop.eup %5190  ;;  %5206 = vpow2.f32 %v3923_v4  ;;  %v3859_v56 = vsub.f32 %v7091_v62, %v3767_v17  ;;  %v3860_v55 = vsub.f32 %v7095_v7, %v3767_v17  ;;  %v2893_v2 = vsub.f32 %v7087_v53, %v2802_v44 }
 0x596   : > { %v7456_v48 = vpop.eup %5192  ;;  %5208 = vpow2.f32 %v3925_v22  ;;  %v2894_v61 = vsub.f32 %v7089_v33, %v2802_v44 }
 0x597   : > { %v3927_v52 = vmul.f32 1.442695, %v3859_v56  ;;  %v3929_v24 = vmul.f32 1.442695, %v3860_v55  ;;  %v2963_v16 = vmul.f32 1.442695, %v2893_v2  ;;  %v3079_v60 = vadd.f32 %v7456_v48, %v7451_v49 }
 0x598   : > { %v2965_v28 = vmul.f32 1.442695, %v2894_v61  ;;  %v2805_v14 = vpop.xlane.xlu1 %2804  ;;  %v3770_v21 = vpop.xlane.xlu0 %3769 }
 0x599   : > { %v7461_v37 = vpop.eup %5194  ;;  %5210 = vpow2.f32 %v3927_v52  ;;  %v2895_v62 = vsub.f32 %v7099_v46, %v2805_v14  ;;  %v2896_v53 = vsub.f32 %v7101_v15, %v2805_v14  ;;  %3080 = vadd.xlane.f32.xlu1 %v3079_v60  ;;  %v3861_v7 = vsub.f32 %v7103_v57, %v3770_v21 }
 0x59a   : > { %v7466_v33 = vpop.eup %5196  ;;  %5212 = vpow2.f32 %v3929_v24  ;;  %v3862_v26 = vsub.f32 %v7107_v40, %v3770_v21 }
 0x59b   : > { %v7469_v12 = vpop.eup %5198  ;;  %5214 = vpow2.f32 %v2963_v16  ;;  %v2967_v45 = vmul.f32 1.442695, %v2895_v62  ;;  %v2969_v0 = vmul.f32 1.442695, %v2896_v53  ;;  %v3931_v3 = vmul.f32 1.442695, %v3861_v7 }
 0x59c   : > { %v7471_v59 = vpop.eup %5200  ;;  %5216 = vpow2.f32 %v2965_v28  ;;  %v3933_v46 = vmul.f32 1.442695, %v3862_v26  ;;  %v3773_v4 = vpop.xlane.xlu1 %3772  ;;  %v3082_v15 = vadd.f32 %v7466_v33, %v7461_v37 }
 0x59d   : > { %v2808_v57 = vpop.xlane.xlu0 %2807  ;;  %v7475_v22 = vpop.eup %5202  ;;  %5218 = vpow2.f32 %v2967_v45  ;;  %v3863_v40 = vsub.f32 %v7115_v11, %v3773_v4  ;;  %v3864_v17 = vsub.f32 %v7119_v50, %v3773_v4  ;;  %v4047_v2 = vadd.f32 %v7471_v59, %v7469_v12 }
 0x59e   : > { %v2897_v44 = vsub.f32 %v7111_v1, %v2808_v57  ;;  %v7480_v56 = vpop.eup %5204  ;;  %5220 = vpow2.f32 %v2969_v0  ;;  %3083 = vadd.xlane.f32.xlu0 %v3082_v15  ;;  %v2898_v55 = vsub.f32 %v7113_v32, %v2808_v57 }
 0x59f   : > { %v7485_v61 = vpop.eup %5206  ;;  %5222 = vpow2.f32 %v3931_v3  ;;  %v3935_v52 = vmul.f32 1.442695, %v3863_v40  ;;  %v3937_v24 = vmul.f32 1.442695, %v3864_v17  ;;  %4048 = vadd.xlane.f32.xlu1 %v4047_v2  ;;  %v3085_v62 = vadd.f32 %v7480_v56, %v7475_v22 }
 0x5a0   : > { %v2971_v16 = vmul.f32 1.442695, %v2897_v44  ;;  %v7487_v11 = vpop.eup %5208  ;;  %5224 = vpow2.f32 %v3933_v46  ;;  %v2973_v50 = vmul.f32 1.442695, %v2898_v55  ;;  %v2811_v1 = vpop.xlane.xlu1 %2810 }
 0x5a1   : > { %v3776_v60 = vpop.xlane.xlu0 %3775  ;;  %5226 = vpow2.f32 %v3935_v52  ;;  %v2899_v28 = vsub.f32 %v7123_v42, %v2811_v1  ;;  %v2900_v32 = vsub.f32 %v7125_v58, %v2811_v1  ;;  %v4050_v53 = vadd.f32 %v7487_v11, %v7485_v61 }
 0x5a2   : > { %v3865_v14 = vsub.f32 %v7127_v10, %v3776_v60  ;;  %5228 = vpow2.f32 %v3937_v24  ;;  %v3866_v21 = vsub.f32 %v7131_v35, %v3776_v60 }
 0x5a3   : > { %v7497_v7 = vpop.eup %5210  ;;  %5230 = vpow2.f32 %v2971_v16  ;;  %v2975_v26 = vmul.f32 1.442695, %v2899_v28  ;;  %v2977_v45 = vmul.f32 1.442695, %v2900_v32  ;;  %3086 = vadd.xlane.f32.xlu1 %v3085_v62  ;;  %4051 = vadd.xlane.f32.xlu0 %v4050_v53 }
 0x5a4   : > { %v3939_v0 = vmul.f32 1.442695, %v3865_v14  ;;  %v7499_v42 = vpop.eup %5212  ;;  %5232 = vpow2.f32 %v2973_v50  ;;  %v3941_v58 = vmul.f32 1.442695, %v3866_v21  ;;  %v3779_v10 = vpop.xlane.xlu1 %3778 }
 0x5a5   : > { %v2814_v35 = vpop.xlane.xlu0 %2813  ;;  %v7501_v3 = vpop.eup %5214  ;;  %5234 = vpow2.f32 %v2975_v26  ;;  %v3867_v46 = vsub.f32 %v7139_v36, %v3779_v10  ;;  %v3868_v4 = vsub.f32 %v7143_v9, %v3779_v10  ;;  %v4053_v17 = vadd.f32 %v7499_v42, %v7497_v7 }
 0x5a6   : > { %v2901_v15 = vsub.f32 %v7135_v5, %v2814_v35  ;;  %v7506_v57 = vpop.eup %5216  ;;  %5236 = vpow2.f32 %v2977_v45  ;;  %v2902_v40 = vsub.f32 %v7137_v47, %v2814_v35 }
 0x5a7   : > { %v7511_v44 = vpop.eup %5218  ;;  %5238 = vpow2.f32 %v3939_v0  ;;  %v3943_v55 = vmul.f32 1.442695, %v3867_v46  ;;  %v3945_v2 = vmul.f32 1.442695, %v3868_v4  ;;  %4054 = vadd.xlane.f32.xlu1 %v4053_v17  ;;  %v3088_v5 = vadd.f32 %v7506_v57, %v7501_v3 }
 0x5a8   : > { %v2979_v52 = vmul.f32 1.442695, %v2901_v15  ;;  %v7513_v24 = vpop.eup %5220  ;;  %5240 = vpow2.f32 %v3941_v58  ;;  %v2981_v36 = vmul.f32 1.442695, %v2902_v40  ;;  %v2817_v9 = vpop.xlane.xlu1 %2816 }
 0x5a9   : > { %v3782_v16 = vpop.xlane.xlu0 %3781  ;;  %v7517_v47 = vpop.eup %5222  ;;  %5242 = vpow2.f32 %v3943_v55  ;;  %v2903_v50 = vsub.f32 %v7147_v34, %v2817_v9  ;;  %v2904_v1 = vsub.f32 %v7149_v31, %v2817_v9  ;;  %3089 = vadd.xlane.f32.xlu0 %v3088_v5  ;;  %v3091_v14 = vadd.f32 %v7513_v24, %v7511_v44 }
 0x5aa   : > { %v3869_v60 = vsub.f32 %v7151_v20, %v3782_v16  ;;  %v7522_v28 = vpop.eup %5224  ;;  %5244 = vpow2.f32 %v3945_v2  ;;  %v3870_v32 = vsub.f32 %v7155_v19, %v3782_v16 }
 0x5ab   : > { %v7527_v21 = vpop.eup %5226  ;;  %5246 = vpow2.f32 %v2979_v52  ;;  %v2983_v62 = vmul.f32 1.442695, %v2903_v50  ;;  %v2985_v53 = vmul.f32 1.442695, %v2904_v1  ;;  %3092 = vadd.xlane.f32.xlu1 %v3091_v14  ;;  %v4056_v20 = vadd.f32 %v7522_v28, %v7517_v47 }
 0x5ac   : > { %v3947_v26 = vmul.f32 1.442695, %v3869_v60  ;;  %v7529_v34 = vpop.eup %5228  ;;  %5248 = vpow2.f32 %v2981_v36  ;;  %v3949_v31 = vmul.f32 1.442695, %v3870_v32  ;;  %v3785_v45 = vpop.xlane.xlu1 %3784 }
 0x5ad   : > { %v2820_v0 = vpop.xlane.xlu0 %2819  ;;  %v7533_v19 = vpop.eup %5230  ;;  %5250 = vpow2.f32 %v2983_v62  ;;  %v3871_v58 = vsub.f32 %v7163_v39, %v3785_v45  ;;  %v3872_v10 = vsub.f32 %v7167_v51, %v3785_v45  ;;  %4057 = vadd.xlane.f32.xlu0 %v4056_v20  ;;  %v4059_v15 = vadd.f32 %v7529_v34, %v7527_v21 }
 0x5ae   : > { %v2905_v35 = vsub.f32 %v7159_v41, %v2820_v0  ;;  %v7538_v46 = vpop.eup %5232  ;;  %5252 = vpow2.f32 %v2985_v53  ;;  %v2906_v4 = vsub.f32 %v7161_v29, %v2820_v0 }
 0x5af   : > { %v7543_v40 = vpop.eup %5234  ;;  %5254 = vpow2.f32 %v3947_v26  ;;  %v3951_v17 = vmul.f32 1.442695, %v3871_v58  ;;  %v3953_v55 = vmul.f32 1.442695, %v3872_v10  ;;  %4060 = vadd.xlane.f32.xlu1 %v4059_v15  ;;  %v3094_v41 = vadd.f32 %v7538_v46, %v7533_v19 }
 0x5b0   : > { %v2987_v2 = vmul.f32 1.442695, %v2905_v35  ;;  %v7545_v39 = vpop.eup %5236  ;;  %5256 = vpow2.f32 %v3949_v31  ;;  %v2989_v51 = vmul.f32 1.442695, %v2906_v4  ;;  %v2823_v52 = vpop.xlane.xlu1 %2822 }
 0x5b1   : > { %v3788_v36 = vpop.xlane.xlu0 %3787  ;;  %v7549_v29 = vpop.eup %5238  ;;  %5258 = vpow2.f32 %v3951_v17  ;;  %v2907_v5 = vsub.f32 %v7171_v30, %v2823_v52  ;;  %v2908_v9 = vsub.f32 %v7173_v25, %v2823_v52  ;;  %3095 = vadd.xlane.f32.xlu0 %v3094_v41  ;;  %v3097_v60 = vadd.f32 %v7545_v39, %v7543_v40 }
 0x5b2   : > { %v3873_v16 = vsub.f32 %v7175_v43, %v3788_v36  ;;  %v7554_v50 = vpop.eup %5240  ;;  %5260 = vpow2.f32 %v3953_v55  ;;  %v3874_v1 = vsub.f32 %v7179_v63, %v3788_v36 }
 0x5b3   : > { %v7559_v32 = vpop.eup %5242  ;;  %5262 = vpow2.f32 %v2987_v2  ;;  %v2991_v14 = vmul.f32 1.442695, %v2907_v5  ;;  %v2993_v62 = vmul.f32 1.442695, %v2908_v9  ;;  %3098 = vadd.xlane.f32.xlu1 %v3097_v60  ;;  %v4062_v43 = vadd.f32 %v7554_v50, %v7549_v29 }
 0x5b4   : > { %v3955_v53 = vmul.f32 1.442695, %v3873_v16  ;;  %v7561_v30 = vpop.eup %5244  ;;  %5264 = vpow2.f32 %v2989_v51  ;;  %v3957_v25 = vmul.f32 1.442695, %v3874_v1  ;;  %v3791_v26 = vpop.xlane.xlu1 %3790 }
 0x5b5   : > { %v2826_v31 = vpop.xlane.xlu0 %2825  ;;  %v7565_v63 = vpop.eup %5246  ;;  %5266 = vpow2.f32 %v2991_v14  ;;  %v3875_v20 = vsub.f32 %v7187_v8, %v3791_v26  ;;  %v3876_v45 = vsub.f32 %v7191_v13, %v3791_v26  ;;  %4063 = vadd.xlane.f32.xlu0 %v4062_v43  ;;  %v4065_v35 = vadd.f32 %v7561_v30, %v7559_v32  ;;  %v8849_v43 = vld [vmem:[#allocation98_spill] sm:$0xff] }
 0x5b6   : > { %v2909_v0 = vsub.f32 %v7183_v23, %v2826_v31  ;;  %v7570_v58 = vpop.eup %5248  ;;  %5268 = vpow2.f32 %v2993_v62  ;;  %v2910_v10 = vsub.f32 %v7185_v6, %v2826_v31  ;;  %v8850_v31 = vld [vmem:[#allocation4_spill] sm:$0xff] }
 0x5b7   : > { %v7575_v4 = vpop.eup %5250  ;;  %5270 = vpow2.f32 %v3955_v53  ;;  %v3959_v15 = vmul.f32 1.442695, %v3875_v20  ;;  %v3961_v17 = vmul.f32 1.442695, %v3876_v45  ;;  %4066 = vadd.xlane.f32.xlu1 %v4065_v35  ;;  %v3100_v23 = vadd.f32 %v7570_v58, %v7565_v63  ;;  %v8851_v45 = vld [vmem:[#allocation17_spill] sm:$0xff]  ;;  %v8852_v35 = vld [vmem:[#allocation2_spill] sm:$0xff] }
 0x5b8   : > { %v2995_v55 = vmul.f32 1.442695, %v2909_v0  ;;  %v7577_v8 = vpop.eup %5252  ;;  %5272 = vpow2.f32 %v3957_v25  ;;  %v2997_v13 = vmul.f32 1.442695, %v2910_v10  ;;  %v2829_v2 = vpop.xlane.xlu1 %2828 }
 0x5b9   : > { %v3794_v51 = vpop.xlane.xlu0 %3793  ;;  %v7581_v6 = vpop.eup %5254  ;;  %5274 = vpow2.f32 %v3959_v15  ;;  %v2911_v41 = vsub.f32 %v7195_v27, %v2829_v2  ;;  %v2912_v52 = vsub.f32 %v7197_v54, %v2829_v2  ;;  %3101 = vadd.xlane.f32.xlu0 %v3100_v23  ;;  %v3103_v16 = vadd.f32 %v7577_v8, %v7575_v4 }
 0x5ba   : > { %v3877_v36 = vsub.f32 %v7199_v38, %v3794_v51  ;;  %v7586_v5 = vpop.eup %5256  ;;  %5276 = vpow2.f32 %v3961_v17  ;;  %v3878_v9 = vsub.f32 %v7203_v18, %v3794_v51 }
 0x5bb   : > { %v7591_v1 = vpop.eup %5258  ;;  %5278 = vpow2.f32 %v2995_v55  ;;  %v2999_v60 = vmul.f32 1.442695, %v2911_v41  ;;  %v3001_v14 = vmul.f32 1.442695, %v2912_v52  ;;  %3104 = vadd.xlane.f32.xlu1 %v3103_v16  ;;  %v4068_v38 = vadd.f32 %v7586_v5, %v7581_v6 }
 0x5bc   : > { %v3963_v62 = vmul.f32 1.442695, %v3877_v36  ;;  %v7593_v27 = vpop.eup %5260  ;;  %5280 = vpow2.f32 %v2997_v13  ;;  %v3965_v54 = vmul.f32 1.442695, %v3878_v9  ;;  %v3797_v53 = vpop.xlane.xlu1 %3796 }
 0x5bd   : > { %v2832_v25 = vpop.xlane.xlu0 %2831  ;;  %v7597_v18 = vpop.eup %5262  ;;  %5282 = vpow2.f32 %v2999_v60  ;;  %v3879_v26 = vsub.f32 %v8849_v43, %v3797_v53  ;;  %v3880_v20 = vsub.f32 %v8850_v31, %v3797_v53  ;;  %4069 = vadd.xlane.f32.xlu0 %v4068_v38  ;;  %v4071_v17 = vadd.f32 %v7593_v27, %v7591_v1  ;;  %v8854_v60 = vld [vmem:[#allocation20_spill] sm:$0xff]  ;;  %v8855_v38 = vld [vmem:[#allocation25_spill] sm:$0xff]  ;;  %v8856_v53 = vld [vmem:[#allocation19_spill] sm:$0xff] }
 0x5be   : > { %v2913_v0 = vsub.f32 %v8851_v45, %v2832_v25  ;;  %v7602_v10 = vpop.eup %5264  ;;  %5284 = vpow2.f32 %v3001_v14  ;;  %v2914_v15 = vsub.f32 %v8852_v35, %v2832_v25 }
 0x5bf   : > { %v7607_v55 = vpop.eup %5266  ;;  %5286 = vpow2.f32 %v3963_v62  ;;  %v3967_v13 = vmul.f32 1.442695, %v3879_v26  ;;  %v3969_v23 = vmul.f32 1.442695, %v3880_v20  ;;  %4072 = vadd.xlane.f32.xlu1 %v4071_v17  ;;  %v3106_v52 = vadd.f32 %v7602_v10, %v7597_v18 }
 0x5c0   : > { %8853 = vst [vmem:[#allocation12_spill] sm:$0xff] %v7607_v55  ;;  %v3003_v2 = vmul.f32 1.442695, %v2913_v0  ;;  %v7609_v51 = vpop.eup %5268  ;;  %5288 = vpow2.f32 %v3965_v54  ;;  %v3005_v41 = vmul.f32 1.442695, %v2914_v15  ;;  %v2835_v36 = vpop.xlane.xlu1 %2834  ;;  %v8857_v54 = vld [vmem:[#allocation22_spill] sm:$0xff] }
 0x5c1   : > { %v3800_v9 = vpop.xlane.xlu0 %3799  ;;  %v7613_v16 = vpop.eup %5270  ;;  %5290 = vpow2.f32 %v3967_v13  ;;  %v2915_v14 = vsub.f32 %v8854_v60, %v2835_v36  ;;  %v2916_v62 = vsub.f32 %v8855_v38, %v2835_v36  ;;  %3107 = vadd.xlane.f32.xlu0 %v3106_v52  ;;  %v3109_v31 = vadd.f32 %v7609_v51, %v7607_v55  ;;  %v8862_v38 = vld [vmem:[#allocation27_spill] sm:$0xff] }
 0x5c2   : > { %v3881_v25 = vsub.f32 %v8856_v53, %v3800_v9  ;;  %v7618_v43 = vpop.eup %5272  ;;  %5292 = vpow2.f32 %v3969_v23  ;;  %v3882_v26 = vsub.f32 %v8857_v54, %v3800_v9  ;;  %v8861_v9 = vld [vmem:[#allocation23_spill] sm:$0xff] }
 0x5c3   : > { %v7623_v20 = vpop.eup %5274  ;;  %5294 = vpow2.f32 %v3003_v2  ;;  %v3007_v45 = vmul.f32 1.442695, %v2915_v14  ;;  %v3009_v0 = vmul.f32 1.442695, %v2916_v62  ;;  %3110 = vadd.xlane.f32.xlu1 %v3109_v31  ;;  %v4074_v13 = vadd.f32 %v7618_v43, %v7613_v16  ;;  %v8863_v14 = vld [vmem:[#allocation21_spill] sm:$0xff] }
 0x5c4   : > { %8858 = vst [vmem:[#allocation94_spill] sm:$0xff] %v7623_v20  ;;  %v3971_v35 = vmul.f32 1.442695, %v3881_v25  ;;  %v7625_v15 = vpop.eup %5276  ;;  %5296 = vpow2.f32 %v3005_v41  ;;  %v3973_v17 = vmul.f32 1.442695, %v3882_v26  ;;  %v3803_v23 = vpop.xlane.xlu1 %3802  ;;  %v8865_v41 = vld [vmem:[#allocation28_spill] sm:$0xff] }
 0x5c5   : > { %8859 = vst [vmem:[#allocation89_spill] sm:$0xff] %v7625_v15  ;;  %v2838_v52 = vpop.xlane.xlu0 %2837  ;;  %v7629_v36 = vpop.eup %5278  ;;  %5298 = vpow2.f32 %v3007_v45  ;;  %v3883_v60 = vsub.f32 %v8861_v9, %v3803_v23  ;;  %v3884_v2 = vsub.f32 %v8862_v38, %v3803_v23  ;;  %4075 = vadd.xlane.f32.xlu0 %v4074_v13  ;;  %v4077_v54 = vadd.f32 %v7625_v15, %v7623_v20  ;;  %v8870_v20 = vld [vmem:[#allocation33_spill] sm:$0xff] }
 0x5c6   : > { %8860 = vst [vmem:[#allocation93_spill] sm:$0xff] %v7629_v36  ;;  %v2917_v62 = vsub.f32 %v8863_v14, %v2838_v52  ;;  %v7634_v53 = vpop.eup %5280  ;;  %5300 = vpow2.f32 %v3009_v0  ;;  %v2918_v25 = vsub.f32 %v8865_v41, %v2838_v52  ;;  %v8869_v14 = vld [vmem:[#allocation24_spill] sm:$0xff] }
 0x5c7   : > { %8864 = vst [vmem:[#allocation95_spill] sm:$0xff] %v7634_v53  ;;  %v7639_v26 = vpop.eup %5282  ;;  %5302 = vpow2.f32 %v3971_v35  ;;  %v3975_v31 = vmul.f32 1.442695, %v3883_v60  ;;  %v3977_v45 = vmul.f32 1.442695, %v3884_v2  ;;  %4078 = vadd.xlane.f32.xlu1 %v4077_v54  ;;  %v3112_v0 = vadd.f32 %v7634_v53, %v7629_v36  ;;  %v8871_v60 = vld [vmem:[#allocation26_spill] sm:$0xff] }
 0x5c8   : > { %8866 = vst [vmem:[#allocation97_spill] sm:$0xff] %v7639_v26  ;;  %v3011_v55 = vmul.f32 1.442695, %v2917_v62  ;;  %v7641_v9 = vpop.eup %5284  ;;  %5304 = vpow2.f32 %v3973_v17  ;;  %v3013_v23 = vmul.f32 1.442695, %v2918_v25  ;;  %v2841_v13 = vpop.xlane.xlu1 %2840  ;;  %v8873_v17 = vld [vmem:[#allocation30_spill] sm:$0xff] }
 0x5c9   : > { %8867 = vst [vmem:[#allocation92_spill] sm:$0xff] %v7641_v9  ;;  %v3806_v38 = vpop.xlane.xlu0 %3805  ;;  %v7645_v52 = vpop.eup %5286  ;;  %5306 = vpow2.f32 %v3975_v31  ;;  %v2919_v41 = vsub.f32 %v8869_v14, %v2841_v13  ;;  %v2920_v35 = vsub.f32 %v8870_v20, %v2841_v13  ;;  %3113 = vadd.xlane.f32.xlu0 %v3112_v0  ;;  %v3115_v54 = vadd.f32 %v7641_v9, %v7639_v26  ;;  %v8878_v26 = vld [vmem:[#allocation35_spill] sm:$0xff] }
 0x5ca   : > { %8868 = vst [vmem:[#allocation96_spill] sm:$0xff] %v7645_v52  ;;  %v3885_v2 = vsub.f32 %v8871_v60, %v3806_v38  ;;  %v7650_v62 = vpop.eup %5288  ;;  %5308 = vpow2.f32 %v3977_v45  ;;  %v3886_v25 = vsub.f32 %v8873_v17, %v3806_v38  ;;  %v8877_v60 = vld [vmem:[#allocation31_spill] sm:$0xff] }
 0x5cb   : > { %8872 = vst [vmem:[#allocation7_spill] sm:$0xff] %v7650_v62  ;;  %v7655_v15 = vpop.eup %5290  ;;  %5310 = vpow2.f32 %v3011_v55  ;;  %v3015_v36 = vmul.f32 1.442695, %v2919_v41  ;;  %v3017_v31 = vmul.f32 1.442695, %v2920_v35  ;;  %3116 = vadd.xlane.f32.xlu1 %v3115_v54  ;;  %v4080_v45 = vadd.f32 %v7650_v62, %v7645_v52  ;;  %v8879_v41 = vld [vmem:[#allocation29_spill] sm:$0xff] }
 0x5cc   : > { %8874 = vst [vmem:[#allocation9_spill] sm:$0xff] %v7655_v15  ;;  %v3979_v53 = vmul.f32 1.442695, %v3885_v2  ;;  %v7657_v14 = vpop.eup %5292  ;;  %5312 = vpow2.f32 %v3013_v23  ;;  %v3981_v20 = vmul.f32 1.442695, %v3886_v25  ;;  %v3809_v0 = vpop.xlane.xlu1 %3808  ;;  %v8881_v23 = vld [vmem:[#allocation36_spill] sm:$0xff] }
 0x5cd   : > { %8875 = vst [vmem:[#allocation18_spill] sm:$0xff] %v7657_v14  ;;  %v2844_v13 = vpop.xlane.xlu0 %2843  ;;  %v7661_v38 = vpop.eup %5294  ;;  %5314 = vpow2.f32 %v3015_v36  ;;  %v3887_v17 = vsub.f32 %v8877_v60, %v3809_v0  ;;  %v3888_v55 = vsub.f32 %v8878_v26, %v3809_v0  ;;  %4081 = vadd.xlane.f32.xlu0 %v4080_v45  ;;  %v4083_v54 = vadd.f32 %v7657_v14, %v7655_v15  ;;  %v8886_v15 = vld [vmem:[#allocation41_spill] sm:$0xff] }
 0x5ce   : > { %8876 = vst [vmem:[#allocation10_spill] sm:$0xff] %v7661_v38  ;;  %v2921_v35 = vsub.f32 %v8879_v41, %v2844_v13  ;;  %v7666_v2 = vpop.eup %5296  ;;  %5316 = vpow2.f32 %v3017_v31  ;;  %v2922_v25 = vsub.f32 %v8881_v23, %v2844_v13  ;;  %v8885_v41 = vld [vmem:[#allocation32_spill] sm:$0xff] }
 0x5cf   : > { %8880 = vst [vmem:[#allocation6_spill] sm:$0xff] %v7666_v2  ;;  %v7671_v9 = vpop.eup %5298  ;;  %5318 = vpow2.f32 %v3979_v53  ;;  %v3983_v52 = vmul.f32 1.442695, %v3887_v17  ;;  %v3985_v36 = vmul.f32 1.442695, %v3888_v55  ;;  %4084 = vadd.xlane.f32.xlu1 %v4083_v54  ;;  %v3118_v31 = vadd.f32 %v7666_v2, %v7661_v38  ;;  %v8887_v17 = vld [vmem:[#allocation34_spill] sm:$0xff] }
 0x5d0   : > { %8882 = vst [vmem:[#allocation11_spill] sm:$0xff] %v7671_v9  ;;  %v3019_v62 = vmul.f32 1.442695, %v2921_v35  ;;  %v7673_v60 = vpop.eup %5300  ;;  %5320 = vpow2.f32 %v3981_v20  ;;  %v3021_v26 = vmul.f32 1.442695, %v2922_v25  ;;  %v2847_v45 = vpop.xlane.xlu1 %2846  ;;  %v8889_v20 = vld [vmem:[#allocation38_spill] sm:$0xff] }
 0x5d1   : > { %8883 = vst [vmem:[#allocation8_spill] sm:$0xff] %v7673_v60  ;;  %v3812_v0 = vpop.xlane.xlu0 %3811  ;;  %v7677_v13 = vpop.eup %5302  ;;  %5322 = vpow2.f32 %v3983_v52  ;;  %v2923_v23 = vsub.f32 %v8885_v41, %v2847_v45  ;;  %v2924_v53 = vsub.f32 %v8886_v15, %v2847_v45  ;;  %3119 = vadd.xlane.f32.xlu0 %v3118_v31  ;;  %v3121_v54 = vadd.f32 %v7673_v60, %v7671_v9  ;;  %v8894_v9 = vld [vmem:[#allocation43_spill] sm:$0xff] }
 0x5d2   : > { %8884 = vst [vmem:[#allocation98_spill] sm:$0xff] %v7677_v13  ;;  %v3889_v55 = vsub.f32 %v8887_v17, %v3812_v0  ;;  %v7682_v35 = vpop.eup %5304  ;;  %5324 = vpow2.f32 %v3985_v36  ;;  %v3890_v25 = vsub.f32 %v8889_v20, %v3812_v0  ;;  %v8893_v17 = vld [vmem:[#allocation39_spill] sm:$0xff] }
 0x5d3   : > { %8888 = vst [vmem:[#allocation4_spill] sm:$0xff] %v7682_v35  ;;  %v7687_v14 = vpop.eup %5306  ;;  %5326 = vpow2.f32 %v3019_v62  ;;  %v3023_v38 = vmul.f32 1.442695, %v2923_v23  ;;  %v3025_v52 = vmul.f32 1.442695, %v2924_v53  ;;  %3122 = vadd.xlane.f32.xlu1 %v3121_v54  ;;  %v4086_v36 = vadd.f32 %v7682_v35, %v7677_v13  ;;  %v8895_v23 = vld [vmem:[#allocation37_spill] sm:$0xff] }
 0x5d4   : > { %8890 = vst [vmem:[#allocation17_spill] sm:$0xff] %v7687_v14  ;;  %v3987_v2 = vmul.f32 1.442695, %v3889_v55  ;;  %v7689_v41 = vpop.eup %5308  ;;  %5328 = vpow2.f32 %v3021_v26  ;;  %v3989_v15 = vmul.f32 1.442695, %v3890_v25  ;;  %v3815_v31 = vpop.xlane.xlu1 %3814  ;;  %v8897_v26 = vld [vmem:[#allocation44_spill] sm:$0xff] }
 0x5d5   : > { %8891 = vst [vmem:[#allocation2_spill] sm:$0xff] %v7689_v41  ;;  %v2850_v45 = vpop.xlane.xlu0 %2849  ;;  %v7693_v0 = vpop.eup %5310  ;;  %5330 = vpow2.f32 %v3023_v38  ;;  %v3891_v20 = vsub.f32 %v8893_v17, %v3815_v31  ;;  %v3892_v62 = vsub.f32 %v8894_v9, %v3815_v31  ;;  %4087 = vadd.xlane.f32.xlu0 %v4086_v36  ;;  %v4089_v54 = vadd.f32 %v7689_v41, %v7687_v14  ;;  %v8902_v14 = vld [vmem:[#allocation49_spill] sm:$0xff] }
 0x5d6   : > { %8892 = vst [vmem:[#allocation20_spill] sm:$0xff] %v7693_v0  ;;  %v2925_v53 = vsub.f32 %v8895_v23, %v2850_v45  ;;  %v7698_v55 = vpop.eup %5312  ;;  %5332 = vpow2.f32 %v3025_v52  ;;  %v2926_v25 = vsub.f32 %v8897_v26, %v2850_v45  ;;  %v8901_v23 = vld [vmem:[#allocation40_spill] sm:$0xff] }
 0x5d7   : > { %8896 = vst [vmem:[#allocation25_spill] sm:$0xff] %v7698_v55  ;;  %v7703_v60 = vpop.eup %5314  ;;  %5334 = vpow2.f32 %v3987_v2  ;;  %v3991_v13 = vmul.f32 1.442695, %v3891_v20  ;;  %v3993_v38 = vmul.f32 1.442695, %v3892_v62  ;;  %4090 = vadd.xlane.f32.xlu1 %v4089_v54  ;;  %v3124_v52 = vadd.f32 %v7698_v55, %v7693_v0  ;;  %v8903_v20 = vld [vmem:[#allocation42_spill] sm:$0xff] }
 0x5d8   : > { %8898 = vst [vmem:[#allocation19_spill] sm:$0xff] %v7703_v60  ;;  %v3027_v35 = vmul.f32 1.442695, %v2925_v53  ;;  %v7705_v17 = vpop.eup %5316  ;;  %5336 = vpow2.f32 %v3989_v15  ;;  %v3029_v9 = vmul.f32 1.442695, %v2926_v25  ;;  %v2853_v36 = vpop.xlane.xlu1 %2852  ;;  %v8905_v15 = vld [vmem:[#allocation46_spill] sm:$0xff] }
 0x5d9   : > { %8899 = vst [vmem:[#allocation22_spill] sm:$0xff] %v7705_v17  ;;  %v3818_v31 = vpop.xlane.xlu0 %3817  ;;  %v7709_v45 = vpop.eup %5318  ;;  %5338 = vpow2.f32 %v3991_v13  ;;  %v2927_v26 = vsub.f32 %v8901_v23, %v2853_v36  ;;  %v2928_v2 = vsub.f32 %v8902_v14, %v2853_v36  ;;  %3125 = vadd.xlane.f32.xlu0 %v3124_v52  ;;  %v3127_v54 = vadd.f32 %v7705_v17, %v7703_v60  ;;  %v8910_v60 = vld [vmem:[#allocation51_spill] sm:$0xff] }
 0x5da   : > { %8900 = vst [vmem:[#allocation23_spill] sm:$0xff] %v7709_v45  ;;  %v3893_v62 = vsub.f32 %v8903_v20, %v3818_v31  ;;  %v7714_v53 = vpop.eup %5320  ;;  %5340 = vpow2.f32 %v3993_v38  ;;  %v3894_v25 = vsub.f32 %v8905_v15, %v3818_v31  ;;  %v8909_v20 = vld [vmem:[#allocation47_spill] sm:$0xff] }
 0x5db   : > { %8904 = vst [vmem:[#allocation27_spill] sm:$0xff] %v7714_v53  ;;  %v7719_v41 = vpop.eup %5322  ;;  %5342 = vpow2.f32 %v3027_v35  ;;  %v3031_v0 = vmul.f32 1.442695, %v2927_v26  ;;  %v3033_v13 = vmul.f32 1.442695, %v2928_v2  ;;  %3128 = vadd.xlane.f32.xlu1 %v3127_v54  ;;  %v4092_v38 = vadd.f32 %v7714_v53, %v7709_v45  ;;  %v8911_v26 = vld [vmem:[#allocation45_spill] sm:$0xff] }
 0x5dc   : > { %8906 = vst [vmem:[#allocation21_spill] sm:$0xff] %v7719_v41  ;;  %v3995_v55 = vmul.f32 1.442695, %v3893_v62  ;;  %v7721_v23 = vpop.eup %5324  ;;  %5344 = vpow2.f32 %v3029_v9  ;;  %v3997_v14 = vmul.f32 1.442695, %v3894_v25  ;;  %v3821_v52 = vpop.xlane.xlu1 %3820  ;;  %v8913_v9 = vld [vmem:[#allocation52_spill] sm:$0xff] }
 0x5dd   : > { %8907 = vst [vmem:[#allocation28_spill] sm:$0xff] %v7721_v23  ;;  %v2856_v36 = vpop.xlane.xlu0 %2855  ;;  %v7725_v31 = vpop.eup %5326  ;;  %5346 = vpow2.f32 %v3031_v0  ;;  %v3895_v15 = vsub.f32 %v8909_v20, %v3821_v52  ;;  %v3896_v35 = vsub.f32 %v8910_v60, %v3821_v52  ;;  %4093 = vadd.xlane.f32.xlu0 %v4092_v38  ;;  %v4095_v54 = vadd.f32 %v7721_v23, %v7719_v41  ;;  %v8918_v41 = vld [vmem:[#allocation57_spill] sm:$0xff] }
 0x5de   : > { %8908 = vst [vmem:[#allocation24_spill] sm:$0xff] %v7725_v31  ;;  %v2929_v2 = vsub.f32 %v8911_v26, %v2856_v36  ;;  %v7730_v62 = vpop.eup %5328  ;;  %5348 = vpow2.f32 %v3033_v13  ;;  %v2930_v25 = vsub.f32 %v8913_v9, %v2856_v36  ;;  %v8917_v26 = vld [vmem:[#allocation48_spill] sm:$0xff] }
 0x5df   : > { %8912 = vst [vmem:[#allocation33_spill] sm:$0xff] %v7730_v62  ;;  %v7735_v17 = vpop.eup %5330  ;;  %5350 = vpow2.f32 %v3995_v55  ;;  %v3999_v45 = vmul.f32 1.442695, %v3895_v15  ;;  %v4001_v0 = vmul.f32 1.442695, %v3896_v35  ;;  %4096 = vadd.xlane.f32.xlu1 %v4095_v54  ;;  %v3130_v13 = vadd.f32 %v7730_v62, %v7725_v31  ;;  %v8919_v15 = vld [vmem:[#allocation50_spill] sm:$0xff] }
 0x5e0   : > { %8914 = vst [vmem:[#allocation26_spill] sm:$0xff] %v7735_v17  ;;  %v3035_v53 = vmul.f32 1.442695, %v2929_v2  ;;  %v7737_v20 = vpop.eup %5332  ;;  %5352 = vpow2.f32 %v3997_v14  ;;  %v3037_v60 = vmul.f32 1.442695, %v2930_v25  ;;  %v2859_v38 = vpop.xlane.xlu1 %2858  ;;  %v8921_v14 = vld [vmem:[#allocation54_spill] sm:$0xff] }
 0x5e1   : > { %8915 = vst [vmem:[#allocation30_spill] sm:$0xff] %v7737_v20  ;;  %v3824_v52 = vpop.xlane.xlu0 %3823  ;;  %v7741_v36 = vpop.eup %5334  ;;  %5354 = vpow2.f32 %v3999_v45  ;;  %v2931_v9 = vsub.f32 %v8917_v26, %v2859_v38  ;;  %v2932_v55 = vsub.f32 %v8918_v41, %v2859_v38  ;;  %3131 = vadd.xlane.f32.xlu0 %v3130_v13  ;;  %v3133_v54 = vadd.f32 %v7737_v20, %v7735_v17  ;;  %v8926_v17 = vld [vmem:[#allocation59_spill] sm:$0xff] }
 0x5e2   : > { %8916 = vst [vmem:[#allocation31_spill] sm:$0xff] %v7741_v36  ;;  %v3897_v35 = vsub.f32 %v8919_v15, %v3824_v52  ;;  %v7746_v2 = vpop.eup %5336  ;;  %5356 = vpow2.f32 %v4001_v0  ;;  %v3898_v25 = vsub.f32 %v8921_v14, %v3824_v52  ;;  %v8925_v15 = vld [vmem:[#allocation55_spill] sm:$0xff] }
 0x5e3   : > { %8920 = vst [vmem:[#allocation35_spill] sm:$0xff] %v7746_v2  ;;  %v7751_v23 = vpop.eup %5338  ;;  %5358 = vpow2.f32 %v3035_v53  ;;  %v3039_v31 = vmul.f32 1.442695, %v2931_v9  ;;  %v3041_v45 = vmul.f32 1.442695, %v2932_v55  ;;  %3134 = vadd.xlane.f32.xlu1 %v3133_v54  ;;  %v4098_v0 = vadd.f32 %v7746_v2, %v7741_v36  ;;  %v8927_v9 = vld [vmem:[#allocation53_spill] sm:$0xff] }
 0x5e4   : > { %8922 = vst [vmem:[#allocation29_spill] sm:$0xff] %v7751_v23  ;;  %v4003_v62 = vmul.f32 1.442695, %v3897_v35  ;;  %v7753_v26 = vpop.eup %5340  ;;  %5360 = vpow2.f32 %v3037_v60  ;;  %v4005_v41 = vmul.f32 1.442695, %v3898_v25  ;;  %v3827_v13 = vpop.xlane.xlu1 %3826  ;;  %v8929_v60 = vld [vmem:[#allocation60_spill] sm:$0xff] }
 0x5e5   : > { %8923 = vst [vmem:[#allocation36_spill] sm:$0xff] %v7753_v26  ;;  %v2862_v38 = vpop.xlane.xlu0 %2861  ;;  %v7757_v52 = vpop.eup %5342  ;;  %5362 = vpow2.f32 %v3039_v31  ;;  %v3899_v14 = vsub.f32 %v8925_v15, %v3827_v13  ;;  %v3900_v53 = vsub.f32 %v8926_v17, %v3827_v13  ;;  %4099 = vadd.xlane.f32.xlu0 %v4098_v0  ;;  %v4101_v54 = vadd.f32 %v7753_v26, %v7751_v23  ;;  %v8934_v23 = vld [vmem:[#allocation65_spill] sm:$0xff] }
 0x5e6   : > { %8924 = vst [vmem:[#allocation32_spill] sm:$0xff] %v7757_v52  ;;  %v2933_v55 = vsub.f32 %v8927_v9, %v2862_v38  ;;  %v7762_v35 = vpop.eup %5344  ;;  %5364 = vpow2.f32 %v3041_v45  ;;  %v2934_v25 = vsub.f32 %v8929_v60, %v2862_v38  ;;  %v8933_v9 = vld [vmem:[#allocation56_spill] sm:$0xff] }
 0x5e7   : > { %8928 = vst [vmem:[#allocation41_spill] sm:$0xff] %v7762_v35  ;;  %v7767_v20 = vpop.eup %5346  ;;  %5366 = vpow2.f32 %v4003_v62  ;;  %v4007_v36 = vmul.f32 1.442695, %v3899_v14  ;;  %v4009_v31 = vmul.f32 1.442695, %v3900_v53  ;;  %4102 = vadd.xlane.f32.xlu1 %v4101_v54  ;;  %v3136_v45 = vadd.f32 %v7762_v35, %v7757_v52  ;;  %v8935_v14 = vld [vmem:[#allocation58_spill] sm:$0xff] }
 0x5e8   : > { %8930 = vst [vmem:[#allocation34_spill] sm:$0xff] %v7767_v20  ;;  %v3043_v2 = vmul.f32 1.442695, %v2933_v55  ;;  %v7769_v15 = vpop.eup %5348  ;;  %5368 = vpow2.f32 %v4005_v41  ;;  %v3045_v17 = vmul.f32 1.442695, %v2934_v25  ;;  %v2865_v0 = vpop.xlane.xlu1 %2864  ;;  %v8937_v41 = vld [vmem:[#allocation62_spill] sm:$0xff] }
 0x5e9   : > { %8931 = vst [vmem:[#allocation38_spill] sm:$0xff] %v7769_v15  ;;  %v3830_v13 = vpop.xlane.xlu0 %3829  ;;  %v7773_v38 = vpop.eup %5350  ;;  %5370 = vpow2.f32 %v4007_v36  ;;  %v2935_v60 = vsub.f32 %v8933_v9, %v2865_v0  ;;  %v2936_v62 = vsub.f32 %v8934_v23, %v2865_v0  ;;  %3137 = vadd.xlane.f32.xlu0 %v3136_v45  ;;  %v3139_v54 = vadd.f32 %v7769_v15, %v7767_v20  ;;  %v8942_v20 = vld [vmem:[#allocation63_spill] sm:$0xff] }
 0x5ea   : > { %8932 = vst [vmem:[#allocation39_spill] sm:$0xff] %v7773_v38  ;;  %v3901_v53 = vsub.f32 %v8935_v14, %v3830_v13  ;;  %v7778_v55 = vpop.eup %5352  ;;  %5372 = vpow2.f32 %v4009_v31  ;;  %v3902_v25 = vsub.f32 %v8937_v41, %v3830_v13  ;;  %v8941_v14 = vld [vmem:[#allocation68_spill] sm:$0xff] }
 0x5eb   : > { %8936 = vst [vmem:[#allocation43_spill] sm:$0xff] %v7778_v55  ;;  %v7783_v26 = vpop.eup %5354  ;;  %5374 = vpow2.f32 %v3043_v2  ;;  %v3047_v52 = vmul.f32 1.442695, %v2935_v60  ;;  %v3049_v36 = vmul.f32 1.442695, %v2936_v62  ;;  %3140 = vadd.xlane.f32.xlu1 %v3139_v54  ;;  %v4104_v31 = vadd.f32 %v7778_v55, %v7773_v38  ;;  %v8943_v60 = vld [vmem:[#allocation3_spill] sm:$0xff] }
 0x5ec   : > { %8938 = vst [vmem:[#allocation37_spill] sm:$0xff] %v7783_v26  ;;  %v4011_v35 = vmul.f32 1.442695, %v3901_v53  ;;  %v7785_v9 = vpop.eup %5356  ;;  %5376 = vpow2.f32 %v3045_v17  ;;  %v4013_v23 = vmul.f32 1.442695, %v3902_v25  ;;  %v3833_v45 = vpop.xlane.xlu1 %3832  ;;  %v8945_v17 = vld [vmem:[#allocation61_spill] sm:$0xff] }
 0x5ed   : > { %8939 = vst [vmem:[#allocation44_spill] sm:$0xff] %v7785_v9  ;;  %v2868_v0 = vpop.xlane.xlu0 %2867  ;;  %v7789_v13 = vpop.eup %5358  ;;  %5378 = vpow2.f32 %v3047_v52  ;;  %v3903_v41 = vsub.f32 %v8941_v14, %v3833_v45  ;;  %v3904_v2 = vsub.f32 %v8942_v20, %v3833_v45  ;;  %4105 = vadd.xlane.f32.xlu0 %v4104_v31  ;;  %v4107_v54 = vadd.f32 %v7785_v9, %v7783_v26  ;;  %v8950_v26 = vld [vmem:[#allocation5_spill] sm:$0xff] }
 0x5ee   : > { %8940 = vst [vmem:[#allocation40_spill] sm:$0xff] %v7789_v13  ;;  %v2937_v62 = vsub.f32 %v8943_v60, %v2868_v0  ;;  %v7794_v53 = vpop.eup %5360  ;;  %5380 = vpow2.f32 %v3049_v36  ;;  %v2938_v25 = vsub.f32 %v8945_v17, %v2868_v0  ;;  %v8949_v60 = vld [vmem:[#allocation67_spill] sm:$0xff] }
 0x5ef   : > { %8944 = vst [vmem:[#allocation49_spill] sm:$0xff] %v7794_v53  ;;  %v7799_v15 = vpop.eup %5362  ;;  %5382 = vpow2.f32 %v4011_v35  ;;  %v4015_v38 = vmul.f32 1.442695, %v3903_v41  ;;  %v4017_v52 = vmul.f32 1.442695, %v3904_v2  ;;  %4108 = vadd.xlane.f32.xlu1 %v4107_v54  ;;  %v3142_v36 = vadd.f32 %v7794_v53, %v7789_v13  ;;  %v8951_v41 = vld [vmem:[#allocation64_spill] sm:$0xff] }
 0x5f0   : > { %8946 = vst [vmem:[#allocation42_spill] sm:$0xff] %v7799_v15  ;;  %v3051_v55 = vmul.f32 1.442695, %v2937_v62  ;;  %v7801_v14 = vpop.eup %5364  ;;  %5384 = vpow2.f32 %v4013_v23  ;;  %v3053_v20 = vmul.f32 1.442695, %v2938_v25  ;;  %v2871_v31 = vpop.xlane.xlu1 %2870  ;;  %v8953_v23 = vld [vmem:[#allocation73_spill] sm:$0xff] }
 0x5f1   : > { %8947 = vst [vmem:[#allocation46_spill] sm:$0xff] %v7801_v14  ;;  %v3836_v45 = vpop.xlane.xlu0 %3835  ;;  %v7805_v0 = vpop.eup %5366  ;;  %5386 = vpow2.f32 %v4015_v38  ;;  %v2939_v17 = vsub.f32 %v8949_v60, %v2871_v31  ;;  %v2940_v35 = vsub.f32 %v8950_v26, %v2871_v31  ;;  %3143 = vadd.xlane.f32.xlu0 %v3142_v36  ;;  %v3145_v54 = vadd.f32 %v7801_v14, %v7799_v15  ;;  %v8958_v15 = vld [vmem:[#allocation76_spill] sm:$0xff] }
 0x5f2   : > { %8948 = vst [vmem:[#allocation47_spill] sm:$0xff] %v7805_v0  ;;  %v3905_v2 = vsub.f32 %v8951_v41, %v3836_v45  ;;  %v7810_v62 = vpop.eup %5368  ;;  %5388 = vpow2.f32 %v4017_v52  ;;  %v3906_v25 = vsub.f32 %v8953_v23, %v3836_v45  ;;  %v8957_v41 = vld [vmem:[#allocation69_spill] sm:$0xff] }
 0x5f3   : > { %8952 = vst [vmem:[#allocation51_spill] sm:$0xff] %v7810_v62  ;;  %v7815_v9 = vpop.eup %5370  ;;  %5390 = vpow2.f32 %v3051_v55  ;;  %v3055_v13 = vmul.f32 1.442695, %v2939_v17  ;;  %v3057_v38 = vmul.f32 1.442695, %v2940_v35  ;;  %3146 = vadd.xlane.f32.xlu1 %v3145_v54  ;;  %v4110_v52 = vadd.f32 %v7810_v62, %v7805_v0  ;;  %v8959_v17 = vld [vmem:[#allocation66_spill] sm:$0xff] }
 0x5f4   : > { %8954 = vst [vmem:[#allocation45_spill] sm:$0xff] %v7815_v9  ;;  %v4019_v53 = vmul.f32 1.442695, %v3905_v2  ;;  %v7817_v60 = vpop.eup %5372  ;;  %5392 = vpow2.f32 %v3053_v20  ;;  %v4021_v26 = vmul.f32 1.442695, %v3906_v25  ;;  %v3839_v36 = vpop.xlane.xlu1 %3838  ;;  %v8961_v20 = vld [vmem:[#allocation70_spill] sm:$0xff] }
 0x5f5   : > { %8955 = vst [vmem:[#allocation52_spill] sm:$0xff] %v7817_v60  ;;  %v2874_v31 = vpop.xlane.xlu0 %2873  ;;  %v7821_v45 = vpop.eup %5374  ;;  %5394 = vpow2.f32 %v3055_v13  ;;  %v3907_v23 = vsub.f32 %v8957_v41, %v3839_v36  ;;  %v3908_v55 = vsub.f32 %v8958_v15, %v3839_v36  ;;  %4111 = vadd.xlane.f32.xlu0 %v4110_v52  ;;  %v4113_v54 = vadd.f32 %v7817_v60, %v7815_v9  ;;  %v8966_v9 = vld [vmem:[#allocation75_spill] sm:$0xff] }
 0x5f6   : > { %8956 = vst [vmem:[#allocation48_spill] sm:$0xff] %v7821_v45  ;;  %v2941_v35 = vsub.f32 %v8959_v17, %v2874_v31  ;;  %v7826_v2 = vpop.eup %5376  ;;  %5396 = vpow2.f32 %v3057_v38  ;;  %v2942_v25 = vsub.f32 %v8961_v20, %v2874_v31  ;;  %v8965_v17 = vld [vmem:[#allocation71_spill] sm:$0xff] }
 0x5f7   : > { %8960 = vst [vmem:[#allocation57_spill] sm:$0xff] %v7826_v2  ;;  %v7831_v14 = vpop.eup %5378  ;;  %5398 = vpow2.f32 %v4019_v53  ;;  %v4023_v0 = vmul.f32 1.442695, %v3907_v23  ;;  %v4025_v13 = vmul.f32 1.442695, %v3908_v55  ;;  %4114 = vadd.xlane.f32.xlu1 %v4113_v54  ;;  %v3148_v38 = vadd.f32 %v7826_v2, %v7821_v45  ;;  %v8967_v23 = vld [vmem:[#allocation72_spill] sm:$0xff] }
 0x5f8   : > { %8962 = vst [vmem:[#allocation50_spill] sm:$0xff] %v7831_v14  ;;  %v3059_v62 = vmul.f32 1.442695, %v2941_v35  ;;  %v7833_v41 = vpop.eup %5380  ;;  %5400 = vpow2.f32 %v4021_v26  ;;  %v3061_v15 = vmul.f32 1.442695, %v2942_v25  ;;  %v2877_v52 = vpop.xlane.xlu1 %2876  ;;  %v8969_v26 = vld [vmem:[#allocation81_spill] sm:$0xff] }
 0x5f9   : > { %8963 = vst [vmem:[#allocation54_spill] sm:$0xff] %v7833_v41  ;;  %v3842_v36 = vpop.xlane.xlu0 %3841  ;;  %v7837_v31 = vpop.eup %5382  ;;  %5402 = vpow2.f32 %v4023_v0  ;;  %v2943_v20 = vsub.f32 %v8965_v17, %v2877_v52  ;;  %v2944_v53 = vsub.f32 %v8966_v9, %v2877_v52  ;;  %3149 = vadd.xlane.f32.xlu0 %v3148_v38  ;;  %v3151_v54 = vadd.f32 %v7833_v41, %v7831_v14  ;;  %v8974_v14 = vld [vmem:[#allocation84_spill] sm:$0xff] }
 0x5fa   : > { %8964 = vst [vmem:[#allocation55_spill] sm:$0xff] %v7837_v31  ;;  %v3909_v55 = vsub.f32 %v8967_v23, %v3842_v36  ;;  %v7842_v35 = vpop.eup %5384  ;;  %5404 = vpow2.f32 %v4025_v13  ;;  %v3910_v25 = vsub.f32 %v8969_v26, %v3842_v36  ;;  %v8973_v23 = vld [vmem:[#allocation77_spill] sm:$0xff] }
 0x5fb   : > { %8968 = vst [vmem:[#allocation59_spill] sm:$0xff] %v7842_v35  ;;  %v7847_v60 = vpop.eup %5386  ;;  %5406 = vpow2.f32 %v3059_v62  ;;  %v3063_v45 = vmul.f32 1.442695, %v2943_v20  ;;  %v3065_v0 = vmul.f32 1.442695, %v2944_v53  ;;  %3152 = vadd.xlane.f32.xlu1 %v3151_v54  ;;  %v4116_v13 = vadd.f32 %v7842_v35, %v7837_v31  ;;  %v8975_v20 = vld [vmem:[#allocation74_spill] sm:$0xff] }
 0x5fc   : > { %8970 = vst [vmem:[#allocation53_spill] sm:$0xff] %v7847_v60  ;;  %v4027_v2 = vmul.f32 1.442695, %v3909_v55  ;;  %v7849_v17 = vpop.eup %5388  ;;  %5408 = vpow2.f32 %v3061_v15  ;;  %v4029_v9 = vmul.f32 1.442695, %v3910_v25  ;;  %v3845_v38 = vpop.xlane.xlu1 %3844  ;;  %v8977_v15 = vld [vmem:[#allocation78_spill] sm:$0xff] }
 0x5fd   : > { %8971 = vst [vmem:[#allocation60_spill] sm:$0xff] %v7849_v17  ;;  %v2880_v52 = vpop.xlane.xlu0 %2879  ;;  %v7853_v36 = vpop.eup %5390  ;;  %5410 = vpow2.f32 %v3063_v45  ;;  %v3911_v26 = vsub.f32 %v8973_v23, %v3845_v38  ;;  %v3912_v62 = vsub.f32 %v8974_v14, %v3845_v38  ;;  %4117 = vadd.xlane.f32.xlu0 %v4116_v13  ;;  %v4119_v54 = vadd.f32 %v7849_v17, %v7847_v60  ;;  %v8982_v60 = vld [vmem:[#allocation83_spill] sm:$0xff] }
 0x5fe   : > { %8972 = vst [vmem:[#allocation56_spill] sm:$0xff] %v7853_v36  ;;  %v2945_v53 = vsub.f32 %v8975_v20, %v2880_v52  ;;  %v7858_v55 = vpop.eup %5392  ;;  %5412 = vpow2.f32 %v3065_v0  ;;  %v2946_v25 = vsub.f32 %v8977_v15, %v2880_v52  ;;  %v8981_v20 = vld [vmem:[#allocation79_spill] sm:$0xff] }
 0x5ff   : > { %8976 = vst [vmem:[#allocation65_spill] sm:$0xff] %v7858_v55  ;;  %v7863_v41 = vpop.eup %5394  ;;  %5414 = vpow2.f32 %v4027_v2  ;;  %v4031_v31 = vmul.f32 1.442695, %v3911_v26  ;;  %v4033_v45 = vmul.f32 1.442695, %v3912_v62  ;;  %4120 = vadd.xlane.f32.xlu1 %v4119_v54  ;;  %v3154_v0 = vadd.f32 %v7858_v55, %v7853_v36  ;;  %v8983_v26 = vld [vmem:[#allocation80_spill] sm:$0xff] }
 0x600   : > { %8978 = vst [vmem:[#allocation58_spill] sm:$0xff] %v7863_v41  ;;  %v3067_v35 = vmul.f32 1.442695, %v2945_v53  ;;  %v7865_v23 = vpop.eup %5396  ;;  %5416 = vpow2.f32 %v4029_v9  ;;  %v3069_v14 = vmul.f32 1.442695, %v2946_v25  ;;  %v2883_v13 = vpop.xlane.xlu1 %2882  ;;  %v8985_v9 = vld [vmem:[#allocation82_spill] sm:$0xff] }
 0x601   : > { %8979 = vst [vmem:[#allocation62_spill] sm:$0xff] %v7865_v23  ;;  %v3848_v38 = vpop.xlane.xlu0 %3847  ;;  %v7869_v52 = vpop.eup %5398  ;;  %5418 = vpow2.f32 %v4031_v31  ;;  %v2947_v15 = vsub.f32 %v8981_v20, %v2883_v13  ;;  %v2948_v2 = vsub.f32 %v8982_v60, %v2883_v13  ;;  %3155 = vadd.xlane.f32.xlu0 %v3154_v0  ;;  %v3157_v54 = vadd.f32 %v7865_v23, %v7863_v41  ;;  %v8988_v41 = vld [vmem:[#allocation85_spill] sm:$0xff] }
 0x602   : > { %8980 = vst [vmem:[#allocation68_spill] sm:$0xff] %v7869_v52  ;;  %v3913_v62 = vsub.f32 %v8983_v26, %v3848_v38  ;;  %v7874_v53 = vpop.eup %5400  ;;  %5420 = vpow2.f32 %v4033_v45  ;;  %v3914_v25 = vsub.f32 %v8985_v9, %v3848_v38  ;;  %v8987_v26 = vld [vmem:[#allocation91_spill] sm:$0xff] }
 0x603   : > { %8984 = vst [vmem:[#allocation63_spill] sm:$0xff] %v7874_v53  ;;  %v7879_v17 = vpop.eup %5402  ;;  %5422 = vpow2.f32 %v3067_v35  ;;  %v3071_v36 = vmul.f32 1.442695, %v2947_v15  ;;  %v3073_v31 = vmul.f32 1.442695, %v2948_v2  ;;  %3158 = vadd.xlane.f32.xlu1 %v3157_v54  ;;  %v4122_v45 = vadd.f32 %v7874_v53, %v7869_v52  ;;  %v8989_v15 = vld [vmem:[#allocation87_spill] sm:$0xff] }
 0x604   : > { %8986 = vst [vmem:[#allocation3_spill] sm:$0xff] %v7879_v17  ;;  %v4035_v55 = vmul.f32 1.442695, %v3913_v62  ;;  %v7881_v20 = vpop.eup %5404  ;;  %5424 = vpow2.f32 %v3069_v14  ;;  %v4037_v60 = vmul.f32 1.442695, %v3914_v25  ;;  %v3851_v0 = vpop.xlane.xlu1 %3850  ;;  %v8990_v14 = vld [vmem:[#allocation86_spill] sm:$0xff] }
 0x605   : > { %v2886_v13 = vpop.xlane.xlu0 %2885  ;;  %v7885_v38 = vpop.eup %5406  ;;  %5426 = vpow2.f32 %v3071_v36  ;;  %v3915_v9 = vsub.f32 %v8987_v26, %v3851_v0  ;;  %v3916_v35 = vsub.f32 %v8988_v41, %v3851_v0  ;;  %4123 = vadd.xlane.f32.xlu0 %v4122_v45  ;;  %v4125_v54 = vadd.f32 %v7881_v20, %v7879_v17 }
 0x606   : > { %v2949_v2 = vsub.f32 %v8989_v15, %v2886_v13  ;;  %v7890_v62 = vpop.eup %5408  ;;  %5428 = vpow2.f32 %v3073_v31  ;;  %v2950_v25 = vsub.f32 %v8990_v14, %v2886_v13  ;;  %v8991_v13 = vld [vmem:[#allocation88_spill] sm:$0xff]  ;;  %v8992_v14 = vld [vmem:[#allocation90_spill] sm:$0xff] }
 0x607   : > { %v7895_v23 = vpop.eup %5410  ;;  %5430 = vpow2.f32 %v4035_v55  ;;  %v4039_v52 = vmul.f32 1.442695, %v3915_v9  ;;  %v4041_v36 = vmul.f32 1.442695, %v3916_v35  ;;  %4126 = vadd.xlane.f32.xlu1 %v4125_v54  ;;  %v3160_v31 = vadd.f32 %v7890_v62, %v7885_v38 }
 0x608   : > { %v3075_v53 = vmul.f32 1.442695, %v2949_v2  ;;  %v7897_v26 = vpop.eup %5412  ;;  %5432 = vpow2.f32 %v4037_v60  ;;  %v3077_v41 = vmul.f32 1.442695, %v2950_v25 }
 0x609   : > { %v3854_v45 = vpop.xlane.xlu0 %3853  ;;  %v7901_v0 = vpop.eup %5414  ;;  %5434 = vpow2.f32 %v4039_v52  ;;  %v3163_v55 = vadd.f32 %v7897_v26, %v7895_v23  ;;  %3161 = vadd.xlane.f32.xlu0 %v3160_v31 }
 0x60a   : > { %v3917_v15 = vsub.f32 %v8991_v13, %v3854_v45  ;;  %v3918_v17 = vsub.f32 %v8992_v14, %v3854_v45  ;;  %v7907_v9 = vpop.eup %5416  ;;  %5436 = vpow2.f32 %v4041_v36 }
 0x60b   : > { %v7909_v60 = vpop.eup %5418  ;;  %5438 = vpow2.f32 %v3075_v53  ;;  %v4128_v25 = vadd.f32 %v7907_v9, %v7901_v0  ;;  %3164 = vadd.xlane.f32.xlu1 %v3163_v55 }
 0x60c   : > { %8993 = vst [vmem:[#allocation61_spill] sm:$0xff] %v7909_v60  ;;  %v4043_v35 = vmul.f32 1.442695, %v3917_v15  ;;  %v4045_v2 = vmul.f32 1.442695, %v3918_v17  ;;  %v7913_v52 = vpop.eup %5420  ;;  %5440 = vpow2.f32 %v3077_v41 }
 0x60d   : > { %8994 = vst [vmem:[#allocation67_spill] sm:$0xff] %v7913_v52  ;;  %v7915_v54 = vpop.eup %5422  ;;  %v4131_v45 = vadd.f32 %v7913_v52, %v7909_v60  ;;  %4129 = vadd.xlane.f32.xlu0 %v4128_v25 }
 0x60e   : > { %8995 = vst [vmem:[#allocation5_spill] sm:$0xff] %v7915_v54  ;;  %5442 = vpow2.f32 %v4043_v35  ;;  %v7919_v36 = vpop.eup %5424 }
 0x60f   : > { %5444 = vpow2.f32 %v4045_v2  ;;  %v7921_v53 = vpop.eup %5426  ;;  %v3166_v17 = vadd.f32 %v7919_v36, %v7915_v54  ;;  %4132 = vadd.xlane.f32.xlu1 %v4131_v45 }
 0x610   : > { %8996 = vst [vmem:[#allocation64_spill] sm:$0xff] %v7921_v53  ;;  %v7925_v31 = vpop.eup %5428 }
 0x611   : > { %8997 = vst [vmem:[#allocation73_spill] sm:$0xff] %v7925_v31  ;;  %v7927_v41 = vpop.eup %5430  ;;  %v3169_v13 = vadd.f32 %v7925_v31, %v7921_v53  ;;  %3167 = vadd.xlane.f32.xlu0 %v3166_v17 }
 0x612   : > { %8998 = vst [vmem:[#allocation69_spill] sm:$0xff] %v7927_v41  ;;  %v7931_v15 = vpop.eup %5432 }
 0x613   : > { %8999 = vst [vmem:[#allocation76_spill] sm:$0xff] %v7931_v15  ;;  %v7933_v14 = vpop.eup %5434  ;;  %v4134_v55 = vadd.f32 %v7931_v15, %v7927_v41  ;;  %3170 = vadd.xlane.f32.xlu1 %v3169_v13 }
 0x614   : > { %9000 = vst [vmem:[#allocation66_spill] sm:$0xff] %v7933_v14  ;;  %v7937_v35 = vpop.eup %5436 }
 0x615   : > { %9001 = vst [vmem:[#allocation70_spill] sm:$0xff] %v7937_v35  ;;  %v7939_v2 = vpop.eup %5438  ;;  %v4137_v25 = vadd.f32 %v7937_v35, %v7933_v14  ;;  %4135 = vadd.xlane.f32.xlu0 %v4134_v55  ;;  %v201_v14 = vld [vmem:[%s8100_s2 + $0x50] sm:$0xff] }
 0x616   : > { %9002 = vst [vmem:[#allocation71_spill] sm:$0xff] %v7939_v2  ;;  %v7943_v45 = vpop.eup %5440 }
 0x617   : > { %9003 = vst [vmem:[#allocation75_spill] sm:$0xff] %v7943_v45  ;;  %v3172_v17 = vadd.f32 %v7943_v45, %v7939_v2  ;;  %4138 = vadd.xlane.f32.xlu1 %v4137_v25  ;;  %v202_v25 = vld [vmem:[%s8100_s2 + $0x58] sm:$0xff] }
 0x618   : > { %v7945_v53 = vpop.eup %5442 }
 0x619   : > { %9004 = vst [vmem:[#allocation72_spill] sm:$0xff] %v7945_v53  ;;  %v7949_v31 = vpop.eup %5444  ;;  %3173 = vadd.xlane.f32.xlu0 %v3172_v17 }
 0x61a   : > { %9005 = vst [vmem:[#allocation81_spill] sm:$0xff] %v7949_v31  ;;  %v4140_v13 = vadd.f32 %v7949_v31, %v7945_v53 }
 0x61d   : > { %4141 = vadd.xlane.f32.xlu0 %v4140_v13 }
 0x626   : > { %v3081_v35 = vpop.xlane.xlu1 %3080 }
 0x627   : > { %5446 = vrcp.f32 %v3081_v35 }
 0x628   : > { %255 = vperm.xlu1 %4805, %v201_v14  }
 0x62b   : > { %v3084_v55 = vpop.xlane.xlu0 %3083 }
 0x62c   : > { %5448 = vrcp.f32 %v3084_v55  ;;  %v4049_v41 = vpop.xlane.xlu1 %4048 }
 0x62d   : > { %5450 = vrcp.f32 %v4049_v41 }
 0x630   : > { %v3087_v2 = vpop.xlane.xlu1 %3086  ;;  %v4052_v45 = vpop.xlane.xlu0 %4051 }
 0x631   : > { %5452 = vrcp.f32 %v4052_v45  ;;  %v5447_v17 = vpop.eup %5446 }
 0x632   : > { %5454 = vrcp.f32 %v3087_v2  ;;  %v3208_v14 = vmul.f32 %v5447_v17, %v7456_v48  ;;  %v3207_v55 = vmul.f32 %v5447_v17, %v7451_v49 }
 0x633   : > { %260 = vperm.xlu0 %4804, %v202_v25  }
 0x634   : > { %v4055_v13 = vpop.xlane.xlu1 %4054 }
 0x636   : > { %v5449_v53 = vpop.eup %5448  ;;  %v3090_v31 = vpop.xlane.xlu0 %3089 }
 0x637   : > { %v3210_v35 = vmul.f32 %v5449_v53, %v7466_v33  ;;  %v3209_v41 = vmul.f32 %v5449_v53, %v7461_v37  ;;  %5456 = vrcp.f32 %v3090_v31  ;;  %v5451_v54 = vpop.eup %5450 }
 0x638   : > { %v3093_v60 = vpop.xlane.xlu1 %3092  ;;  %5458 = vrcp.f32 %v4055_v13  ;;  %v4176_v48 = vmul.f32 %v5451_v54, %v7471_v59  ;;  %v4175_v49 = vmul.f32 %v5451_v54, %v7469_v12 }
 0x639   : > { %v4662_v15 = vpack.c.bf16 %v3210_v35, %v3208_v14  ;;  %v4664_v52 = vpack.c.bf16 %v3209_v41, %v3207_v55 }
 0x63a   : > { %v4058_v45 = vpop.xlane.xlu0 %4057 }
 0x63b   : > { %4663 = vmatprep.subr.bf16.mxu1 %v4662_v15  ;;  %5460 = vrcp.f32 %v4058_v45  ;;  %v5453_v2 = vpop.eup %5452 }
 0x63c   : > { %4665 = vmatpush1.bf16.xpose.msra.mxu1 %v4664_v52  ;;  %v4061_v25 = vpop.xlane.xlu1 %4060  ;;  %5462 = vrcp.f32 %v3093_v60  ;;  %v4178_v33 = vmul.f32 %v5453_v2, %v7487_v11  ;;  %v4177_v37 = vmul.f32 %v5453_v2, %v7485_v61  ;;  %v5455_v31 = vpop.eup %5454 }
 0x63d   : > { %v3212_v59 = vmul.f32 %v5455_v31, %v7480_v56  ;;  %v3211_v11 = vmul.f32 %v5455_v31, %v7475_v22 }
 0x63e   : > { %v3096_v53 = vpop.xlane.xlu0 %3095  ;;  %v4726_v17 = vpack.c.bf16 %v4178_v33, %v4176_v48  ;;  %v4728_v13 = vpack.c.bf16 %v4177_v37, %v4175_v49 }
 0x63f   : > { %5464 = vrcp.f32 %v3096_v53 }
 0x640   : > { %v3099_v14 = vpop.xlane.xlu1 %3098  ;;  %5466 = vrcp.f32 %v4061_v25  ;;  %4727 = vmatprep.subr.bf16.mxu0 %v4726_v17 }
 0x641   : > { %v5457_v15 = vpop.eup %5456  ;;  %4729 = vmatpush1.bf16.xpose.msra.mxu0 %v4728_v13 }
 0x642   : > { %v4064_v52 = vpop.xlane.xlu0 %4063  ;;  %v3214_v60 = vmul.f32 %v5457_v15, %v7506_v57  ;;  %v3213_v12 = vmul.f32 %v5457_v15, %v7501_v3  ;;  %v5459_v61 = vpop.eup %5458 }
 0x643   : > { %5468 = vrcp.f32 %v4064_v52  ;;  %v4180_v2 = vmul.f32 %v5459_v61, %v7499_v42  ;;  %v4179_v56 = vmul.f32 %v5459_v61, %v7497_v7 }
 0x644   : > { %v4067_v54 = vpop.xlane.xlu1 %4066  ;;  %v4666_v35 = vpack.c.bf16 %v3214_v60, %v3212_v59  ;;  %v4668_v55 = vpack.c.bf16 %v3213_v12, %v3211_v11  ;;  %5470 = vrcp.f32 %v3099_v14 }
 0x645   : > { %v5461_v41 = vpop.eup %5460 }
 0x646   : > { %4667 = vmatprep.subr.bf16.mxu1 %v4666_v35  ;;  %v3102_v45 = vpop.xlane.xlu0 %3101  ;;  %v4182_v25 = vmul.f32 %v5461_v41, %v7522_v28  ;;  %v4181_v57 = vmul.f32 %v5461_v41, %v7517_v47  ;;  %v5463_v22 = vpop.eup %5462 }
 0x647   : > { %5472 = vrcp.f32 %v3102_v45  ;;  %4669 = vmatpush1.bf16.xpose.msra.mxu1 %v4668_v55  ;;  %v3216_v53 = vmul.f32 %v5463_v22, %v7513_v24  ;;  %v3215_v28 = vmul.f32 %v5463_v22, %v7511_v44 }
 0x648   : > { %v3105_v3 = vpop.xlane.xlu1 %3104  ;;  %v4730_v48 = vpack.c.bf16 %v4182_v25, %v4180_v2  ;;  %v4732_v33 = vpack.c.bf16 %v4181_v57, %v4179_v56  ;;  %5474 = vrcp.f32 %v4067_v54 }
 0x649   : > { %v5465_v49 = vpop.eup %5464 }
 0x64a   : > { %4731 = vmatprep.subr.bf16.mxu0 %v4730_v48  ;;  %v4070_v37 = vpop.xlane.xlu0 %4069  ;;  %v3218_v42 = vmul.f32 %v5465_v49, %v7538_v46  ;;  %v3217_v7 = vmul.f32 %v5465_v49, %v7533_v19  ;;  %v5467_v31 = vpop.eup %5466 }
 0x64b   : > { %5476 = vrcp.f32 %v4070_v37  ;;  %4733 = vmatpush1.bf16.xpose.msra.mxu0 %v4732_v33  ;;  %v4184_v52 = vmul.f32 %v5467_v31, %v7529_v34  ;;  %v4183_v46 = vmul.f32 %v5467_v31, %v7527_v21 }
 0x64c   : > { %v4073_v47 = vpop.xlane.xlu1 %4072  ;;  %v4670_v17 = vpack.c.bf16 %v3218_v42, %v3216_v53  ;;  %v4672_v13 = vpack.c.bf16 %v3217_v7, %v3215_v28  ;;  %5478 = vrcp.f32 %v3105_v3 }
 0x64d   : > { %v5469_v14 = vpop.eup %5468 }
 0x64e   : > { %4671 = vmatprep.subr.bf16.mxu1 %v4670_v17  ;;  %v3108_v15 = vpop.xlane.xlu0 %3107  ;;  %v4186_v24 = vmul.f32 %v5469_v14, %v7554_v50  ;;  %v4185_v44 = vmul.f32 %v5469_v14, %v7549_v29  ;;  %v5471_v59 = vpop.eup %5470 }
 0x64f   : > { %5480 = vrcp.f32 %v3108_v15  ;;  %4673 = vmatpush1.bf16.xpose.msra.mxu1 %v4672_v13  ;;  %v3220_v54 = vmul.f32 %v5471_v59, %v7545_v39  ;;  %v3219_v50 = vmul.f32 %v5471_v59, %v7543_v40 }
 0x650   : > { %v3111_v19 = vpop.xlane.xlu1 %3110  ;;  %v4734_v60 = vpack.c.bf16 %v4186_v24, %v4184_v52  ;;  %v4736_v11 = vpack.c.bf16 %v4185_v44, %v4183_v46  ;;  %5482 = vrcp.f32 %v4073_v47  ;;  %v9006_v52 = vld [vmem:[#allocation95_spill] sm:$0xff]  ;;  %v9007_v24 = vld [vmem:[#allocation12_spill] sm:$0xff]  ;;  %v9008_v46 = vld [vmem:[#allocation93_spill] sm:$0xff] }
 0x651   : > { %v5473_v12 = vpop.eup %5472 }
 0x652   : > { %4735 = vmatprep.subr.bf16.mxu0 %v4734_v60  ;;  %v4076_v61 = vpop.xlane.xlu0 %4075  ;;  %v3222_v34 = vmul.f32 %v5473_v12, %v7570_v58  ;;  %v3221_v21 = vmul.f32 %v5473_v12, %v7565_v63  ;;  %v5475_v35 = vpop.eup %5474  ;;  %v9009_v12 = vld [vmem:[#allocation89_spill] sm:$0xff] }
 0x653   : > { %5484 = vrcp.f32 %v4076_v61  ;;  %4737 = vmatpush1.bf16.xpose.msra.mxu0 %v4736_v11  ;;  %v4188_v25 = vmul.f32 %v5475_v35, %v7561_v30  ;;  %v4187_v58 = vmul.f32 %v5475_v35, %v7559_v32 }
 0x654   : > { %v4079_v29 = vpop.xlane.xlu1 %4078  ;;  %v4674_v55 = vpack.c.bf16 %v3222_v34, %v3220_v54  ;;  %v4676_v41 = vpack.c.bf16 %v3221_v21, %v3219_v50  ;;  %5486 = vrcp.f32 %v3111_v19  ;;  %v9010_v54 = vld [vmem:[#allocation7_spill] sm:$0xff]  ;;  %v9011_v34 = vld [vmem:[#allocation94_spill] sm:$0xff]  ;;  %v9012_v21 = vld [vmem:[#allocation96_spill] sm:$0xff] }
 0x655   : > { %v5477_v45 = vpop.eup %5476 }
 0x656   : > { %4675 = vmatprep.subr.bf16.mxu1 %v4674_v55  ;;  %v3114_v2 = vpop.xlane.xlu0 %3113  ;;  %v4190_v39 = vmul.f32 %v5477_v45, %v7586_v5  ;;  %v4189_v40 = vmul.f32 %v5477_v45, %v7581_v6  ;;  %v5479_v56 = vpop.eup %5478 }
 0x657   : > { %5488 = vrcp.f32 %v3114_v2  ;;  %4677 = vmatpush1.bf16.xpose.msra.mxu1 %v4676_v41  ;;  %v3224_v33 = vmul.f32 %v5479_v56, %v7577_v8  ;;  %v3223_v5 = vmul.f32 %v5479_v56, %v7575_v4 }
 0x658   : > { %v3117_v63 = vpop.xlane.xlu1 %3116  ;;  %v4738_v57 = vpack.c.bf16 %v4190_v39, %v4188_v25  ;;  %v4740_v22 = vpack.c.bf16 %v4189_v40, %v4187_v58  ;;  %5490 = vrcp.f32 %v4079_v29  ;;  %v9013_v39 = vld [vmem:[#allocation92_spill] sm:$0xff]  ;;  %v9014_v40 = vld [vmem:[#allocation6_spill] sm:$0xff] }
 0x659   : > { %v5481_v3 = vpop.eup %5480 }
 0x65a   : > { %4739 = vmatprep.subr.bf16.mxu0 %v4738_v57  ;;  %v4082_v48 = vpop.xlane.xlu0 %4081  ;;  %v3226_v30 = vmul.f32 %v5481_v3, %v7602_v10  ;;  %v3225_v32 = vmul.f32 %v5481_v3, %v7597_v18  ;;  %v5483_v49 = vpop.eup %5482 }
 0x65b   : > { %5492 = vrcp.f32 %v4082_v48  ;;  %4741 = vmatpush1.bf16.xpose.msra.mxu0 %v4740_v22  ;;  %v4192_v7 = vmul.f32 %v5483_v49, %v7593_v27  ;;  %v4191_v10 = vmul.f32 %v5483_v49, %v7591_v1  ;;  %v9016_v22 = vld [vmem:[#allocation10_spill] sm:$0xff] }
 0x65c   : > { %v4085_v6 = vpop.xlane.xlu1 %4084  ;;  %v4678_v37 = vpack.c.bf16 %v3226_v30, %v3224_v33  ;;  %v4680_v53 = vpack.c.bf16 %v3225_v32, %v3223_v5  ;;  %5494 = vrcp.f32 %v3117_v63  ;;  %v9015_v63 = vld [vmem:[#allocation97_spill] sm:$0xff] }
 0x65d   : > { %v5485_v42 = vpop.eup %5484 }
 0x65e   : > { %4679 = vmatprep.subr.bf16.mxu1 %v4678_v37  ;;  %v3120_v28 = vpop.xlane.xlu0 %3119  ;;  %v4194_v8 = vmul.f32 %v5485_v42, %v7618_v43  ;;  %v4193_v4 = vmul.f32 %v5485_v42, %v7613_v16  ;;  %v5487_v31 = vpop.eup %5486 }
 0x65f   : > { %5496 = vrcp.f32 %v3120_v28  ;;  %4681 = vmatpush1.bf16.xpose.msra.mxu1 %v4680_v53  ;;  %v3228_v15 = vmul.f32 %v5487_v31, %v7609_v51  ;;  %v3227_v43 = vmul.f32 %v5487_v31, %v9007_v24  ;;  %v9018_v53 = vld [vmem:[#allocation4_spill] sm:$0xff]  ;;  %v9019_v28 = vld [vmem:[#allocation9_spill] sm:$0xff]  ;;  %v9023_v24 = vld [vmem:[#allocation11_spill] sm:$0xff] }
 0x660   : > { %v3123_v18 = vpop.xlane.xlu1 %3122  ;;  %v4742_v47 = vpack.c.bf16 %v4194_v8, %v4192_v7  ;;  %v4744_v17 = vpack.c.bf16 %v4193_v4, %v4191_v10  ;;  %5498 = vrcp.f32 %v4085_v6  ;;  %v9017_v6 = vld [vmem:[#allocation18_spill] sm:$0xff] }
 0x661   : > { %v5489_v13 = vpop.eup %5488  ;;  %v9020_v8 = vld [vmem:[#allocation98_spill] sm:$0xff] }
 0x662   : > { %4743 = vmatprep.subr.bf16.mxu0 %v4742_v47  ;;  %v4088_v14 = vpop.xlane.xlu0 %4087  ;;  %v3230_v27 = vmul.f32 %v5489_v13, %v9006_v52  ;;  %v3229_v1 = vmul.f32 %v5489_v13, %v9008_v46  ;;  %v5491_v44 = vpop.eup %5490  ;;  %v9022_v52 = vld [vmem:[#allocation25_spill] sm:$0xff]  ;;  %v9024_v46 = vld [vmem:[#allocation20_spill] sm:$0xff] }
 0x663   : > { %5500 = vrcp.f32 %v4088_v14  ;;  %4745 = vmatpush1.bf16.xpose.msra.mxu0 %v4744_v17  ;;  %v4196_v61 = vmul.f32 %v5491_v44, %v9009_v12  ;;  %v4195_v50 = vmul.f32 %v5491_v44, %v9011_v34  ;;  %v9021_v14 = vld [vmem:[#allocation8_spill] sm:$0xff]  ;;  %v9025_v12 = vld [vmem:[#allocation2_spill] sm:$0xff]  ;;  %v9027_v34 = vld [vmem:[#allocation17_spill] sm:$0xff] }
 0x664   : > { %v4091_v16 = vpop.xlane.xlu1 %4090  ;;  %v4682_v59 = vpack.c.bf16 %v3230_v27, %v3228_v15  ;;  %v4684_v19 = vpack.c.bf16 %v3229_v1, %v3227_v43  ;;  %5502 = vrcp.f32 %v3123_v18 }
 0x665   : > { %v5493_v60 = vpop.eup %5492 }
 0x666   : > { %4683 = vmatprep.subr.bf16.mxu1 %v4682_v59  ;;  %v3126_v11 = vpop.xlane.xlu0 %3125  ;;  %v4198_v51 = vmul.f32 %v5493_v60, %v9010_v54  ;;  %v4197_v35 = vmul.f32 %v5493_v60, %v9012_v21  ;;  %v5495_v29 = vpop.eup %5494  ;;  %v9026_v54 = vld [vmem:[#allocation27_spill] sm:$0xff] }
 0x667   : > { %5504 = vrcp.f32 %v3126_v11  ;;  %4685 = vmatpush1.bf16.xpose.msra.mxu1 %v4684_v19  ;;  %v3232_v58 = vmul.f32 %v5495_v29, %v9013_v39  ;;  %v3231_v57 = vmul.f32 %v5495_v29, %v9015_v63  ;;  %v9028_v21 = vld [vmem:[#allocation23_spill] sm:$0xff]  ;;  %v9029_v39 = vld [vmem:[#allocation22_spill] sm:$0xff] }
 0x668   : > { %v3129_v55 = vpop.xlane.xlu1 %3128  ;;  %v4746_v41 = vpack.c.bf16 %v4198_v51, %v4196_v61  ;;  %v4748_v45 = vpack.c.bf16 %v4197_v35, %v4195_v50  ;;  %5506 = vrcp.f32 %v4091_v16  ;;  %v9031_v63 = vld [vmem:[#allocation19_spill] sm:$0xff] }
 0x669   : > { %v5497_v2 = vpop.eup %5496 }
 0x66a   : > { %4747 = vmatprep.subr.bf16.mxu0 %v4746_v41  ;;  %v4094_v25 = vpop.xlane.xlu0 %4093  ;;  %v3234_v56 = vmul.f32 %v5497_v2, %v9014_v40  ;;  %v3233_v3 = vmul.f32 %v5497_v2, %v9016_v22  ;;  %v5499_v48 = vpop.eup %5498  ;;  %v9030_v40 = vld [vmem:[#allocation33_spill] sm:$0xff]  ;;  %v9032_v22 = vld [vmem:[#allocation24_spill] sm:$0xff] }
 0x66b   : > { %5508 = vrcp.f32 %v4094_v25  ;;  %4749 = vmatpush1.bf16.xpose.msra.mxu0 %v4748_v45  ;;  %v4200_v37 = vmul.f32 %v5499_v48, %v9017_v6  ;;  %v4199_v7 = vmul.f32 %v5499_v48, %v9019_v28  ;;  %v9033_v6 = vld [vmem:[#allocation28_spill] sm:$0xff]  ;;  %v9035_v28 = vld [vmem:[#allocation21_spill] sm:$0xff] }
 0x66c   : > { %v4097_v33 = vpop.xlane.xlu1 %4096  ;;  %v4686_v30 = vpack.c.bf16 %v3234_v56, %v3232_v58  ;;  %v4688_v5 = vpack.c.bf16 %v3233_v3, %v3231_v57  ;;  %5510 = vrcp.f32 %v3129_v55 }
 0x66d   : > { %v5501_v32 = vpop.eup %5500 }
 0x66e   : > { %4687 = vmatprep.subr.bf16.mxu1 %v4686_v30  ;;  %v3132_v49 = vpop.xlane.xlu0 %3131  ;;  %v4202_v42 = vmul.f32 %v5501_v32, %v9018_v53  ;;  %v4201_v10 = vmul.f32 %v5501_v32, %v9020_v8  ;;  %v5503_v4 = vpop.eup %5502  ;;  %v9034_v53 = vld [vmem:[#allocation35_spill] sm:$0xff] }
 0x66f   : > { %5512 = vrcp.f32 %v3132_v49  ;;  %4689 = vmatpush1.bf16.xpose.msra.mxu1 %v4688_v5  ;;  %v3236_v15 = vmul.f32 %v5503_v4, %v9021_v14  ;;  %v3235_v43 = vmul.f32 %v5503_v4, %v9023_v24  ;;  %v9036_v8 = vld [vmem:[#allocation31_spill] sm:$0xff]  ;;  %v9037_v14 = vld [vmem:[#allocation30_spill] sm:$0xff] }
 0x670   : > { %v3135_v31 = vpop.xlane.xlu1 %3134  ;;  %v4750_v18 = vpack.c.bf16 %v4202_v42, %v4200_v37  ;;  %v4752_v47 = vpack.c.bf16 %v4201_v10, %v4199_v7  ;;  %5514 = vrcp.f32 %v4097_v33  ;;  %v9039_v24 = vld [vmem:[#allocation26_spill] sm:$0xff] }
 0x671   : > { %v5505_v17 = vpop.eup %5504 }
 0x672   : > { %4751 = vmatprep.subr.bf16.mxu0 %v4750_v18  ;;  %v4100_v13 = vpop.xlane.xlu0 %4099  ;;  %v3238_v27 = vmul.f32 %v5505_v17, %v9022_v52  ;;  %v3237_v1 = vmul.f32 %v5505_v17, %v9024_v46  ;;  %v5507_v44 = vpop.eup %5506  ;;  %v9038_v52 = vld [vmem:[#allocation41_spill] sm:$0xff]  ;;  %v9040_v46 = vld [vmem:[#allocation32_spill] sm:$0xff] }
 0x673   : > { %5516 = vrcp.f32 %v4100_v13  ;;  %4753 = vmatpush1.bf16.xpose.msra.mxu0 %v4752_v47  ;;  %v4204_v61 = vmul.f32 %v5507_v44, %v9025_v12  ;;  %v4203_v50 = vmul.f32 %v5507_v44, %v9027_v34  ;;  %v9041_v12 = vld [vmem:[#allocation36_spill] sm:$0xff]  ;;  %v9043_v34 = vld [vmem:[#allocation29_spill] sm:$0xff] }
 0x674   : > { %v4103_v16 = vpop.xlane.xlu1 %4102  ;;  %v4690_v59 = vpack.c.bf16 %v3238_v27, %v3236_v15  ;;  %v4692_v19 = vpack.c.bf16 %v3237_v1, %v3235_v43  ;;  %5518 = vrcp.f32 %v3135_v31 }
 0x675   : > { %v5509_v60 = vpop.eup %5508 }
 0x676   : > { %4691 = vmatprep.subr.bf16.mxu1 %v4690_v59  ;;  %v3138_v11 = vpop.xlane.xlu0 %3137  ;;  %v4206_v51 = vmul.f32 %v5509_v60, %v9026_v54  ;;  %v4205_v35 = vmul.f32 %v5509_v60, %v9028_v21  ;;  %v5511_v29 = vpop.eup %5510  ;;  %v9042_v54 = vld [vmem:[#allocation43_spill] sm:$0xff] }
 0x677   : > { %5520 = vrcp.f32 %v3138_v11  ;;  %4693 = vmatpush1.bf16.xpose.msra.mxu1 %v4692_v19  ;;  %v3240_v58 = vmul.f32 %v5511_v29, %v9029_v39  ;;  %v3239_v57 = vmul.f32 %v5511_v29, %v9031_v63  ;;  %v9044_v21 = vld [vmem:[#allocation39_spill] sm:$0xff]  ;;  %v9045_v39 = vld [vmem:[#allocation38_spill] sm:$0xff] }
 0x678   : > { %v3141_v55 = vpop.xlane.xlu1 %3140  ;;  %v4754_v41 = vpack.c.bf16 %v4206_v51, %v4204_v61  ;;  %v4756_v45 = vpack.c.bf16 %v4205_v35, %v4203_v50  ;;  %5522 = vrcp.f32 %v4103_v16  ;;  %v9047_v63 = vld [vmem:[#allocation34_spill] sm:$0xff] }
 0x679   : > { %v5513_v2 = vpop.eup %5512 }
 0x67a   : > { %4755 = vmatprep.subr.bf16.mxu0 %v4754_v41  ;;  %v4106_v25 = vpop.xlane.xlu0 %4105  ;;  %v3242_v56 = vmul.f32 %v5513_v2, %v9030_v40  ;;  %v3241_v3 = vmul.f32 %v5513_v2, %v9032_v22  ;;  %v5515_v48 = vpop.eup %5514  ;;  %v9046_v40 = vld [vmem:[#allocation49_spill] sm:$0xff]  ;;  %v9048_v22 = vld [vmem:[#allocation40_spill] sm:$0xff] }
 0x67b   : > { %5524 = vrcp.f32 %v4106_v25  ;;  %4757 = vmatpush1.bf16.xpose.msra.mxu0 %v4756_v45  ;;  %v4208_v37 = vmul.f32 %v5515_v48, %v9033_v6  ;;  %v4207_v7 = vmul.f32 %v5515_v48, %v9035_v28  ;;  %v9049_v6 = vld [vmem:[#allocation44_spill] sm:$0xff]  ;;  %v9051_v28 = vld [vmem:[#allocation37_spill] sm:$0xff] }
 0x67c   : > { %v4109_v33 = vpop.xlane.xlu1 %4108  ;;  %v4694_v30 = vpack.c.bf16 %v3242_v56, %v3240_v58  ;;  %v4696_v5 = vpack.c.bf16 %v3241_v3, %v3239_v57  ;;  %5526 = vrcp.f32 %v3141_v55 }
 0x67d   : > { %v5517_v32 = vpop.eup %5516 }
 0x67e   : > { %4695 = vmatprep.subr.bf16.mxu1 %v4694_v30  ;;  %v3144_v49 = vpop.xlane.xlu0 %3143  ;;  %v4210_v42 = vmul.f32 %v5517_v32, %v9034_v53  ;;  %v4209_v10 = vmul.f32 %v5517_v32, %v9036_v8  ;;  %v5519_v4 = vpop.eup %5518  ;;  %v9050_v53 = vld [vmem:[#allocation51_spill] sm:$0xff] }
 0x67f   : > { %5528 = vrcp.f32 %v3144_v49  ;;  %4697 = vmatpush1.bf16.xpose.msra.mxu1 %v4696_v5  ;;  %v3244_v15 = vmul.f32 %v5519_v4, %v9037_v14  ;;  %v3243_v43 = vmul.f32 %v5519_v4, %v9039_v24  ;;  %v9052_v8 = vld [vmem:[#allocation47_spill] sm:$0xff]  ;;  %v9053_v14 = vld [vmem:[#allocation46_spill] sm:$0xff] }
 0x680   : > { %v3147_v31 = vpop.xlane.xlu1 %3146  ;;  %v4758_v18 = vpack.c.bf16 %v4210_v42, %v4208_v37  ;;  %v4760_v47 = vpack.c.bf16 %v4209_v10, %v4207_v7  ;;  %5530 = vrcp.f32 %v4109_v33  ;;  %v9055_v24 = vld [vmem:[#allocation42_spill] sm:$0xff] }
 0x681   : > { %v5521_v17 = vpop.eup %5520 }
 0x682   : > { %4759 = vmatprep.subr.bf16.mxu0 %v4758_v18  ;;  %v4112_v13 = vpop.xlane.xlu0 %4111  ;;  %v3246_v27 = vmul.f32 %v5521_v17, %v9038_v52  ;;  %v3245_v1 = vmul.f32 %v5521_v17, %v9040_v46  ;;  %v5523_v44 = vpop.eup %5522  ;;  %v9054_v52 = vld [vmem:[#allocation57_spill] sm:$0xff]  ;;  %v9056_v46 = vld [vmem:[#allocation48_spill] sm:$0xff] }
 0x683   : > { %5532 = vrcp.f32 %v4112_v13  ;;  %4761 = vmatpush1.bf16.xpose.msra.mxu0 %v4760_v47  ;;  %v4212_v61 = vmul.f32 %v5523_v44, %v9041_v12  ;;  %v4211_v50 = vmul.f32 %v5523_v44, %v9043_v34  ;;  %v9057_v12 = vld [vmem:[#allocation52_spill] sm:$0xff]  ;;  %v9059_v34 = vld [vmem:[#allocation45_spill] sm:$0xff] }
 0x684   : > { %v4115_v16 = vpop.xlane.xlu1 %4114  ;;  %v4698_v59 = vpack.c.bf16 %v3246_v27, %v3244_v15  ;;  %v4700_v19 = vpack.c.bf16 %v3245_v1, %v3243_v43  ;;  %5534 = vrcp.f32 %v3147_v31 }
 0x685   : > { %v5525_v60 = vpop.eup %5524 }
 0x686   : > { %4699 = vmatprep.subr.bf16.mxu1 %v4698_v59  ;;  %v3150_v11 = vpop.xlane.xlu0 %3149  ;;  %v4214_v51 = vmul.f32 %v5525_v60, %v9042_v54  ;;  %v4213_v35 = vmul.f32 %v5525_v60, %v9044_v21  ;;  %v5527_v29 = vpop.eup %5526  ;;  %v9058_v54 = vld [vmem:[#allocation59_spill] sm:$0xff] }
 0x687   : > { %5536 = vrcp.f32 %v3150_v11  ;;  %4701 = vmatpush1.bf16.xpose.msra.mxu1 %v4700_v19  ;;  %v3248_v58 = vmul.f32 %v5527_v29, %v9045_v39  ;;  %v3247_v57 = vmul.f32 %v5527_v29, %v9047_v63  ;;  %v9060_v21 = vld [vmem:[#allocation55_spill] sm:$0xff]  ;;  %v9061_v39 = vld [vmem:[#allocation54_spill] sm:$0xff] }
 0x688   : > { %v3153_v55 = vpop.xlane.xlu1 %3152  ;;  %v4762_v41 = vpack.c.bf16 %v4214_v51, %v4212_v61  ;;  %v4764_v45 = vpack.c.bf16 %v4213_v35, %v4211_v50  ;;  %5538 = vrcp.f32 %v4115_v16  ;;  %v9063_v63 = vld [vmem:[#allocation50_spill] sm:$0xff] }
 0x689   : > { %v5529_v2 = vpop.eup %5528 }
 0x68a   : > { %4763 = vmatprep.subr.bf16.mxu0 %v4762_v41  ;;  %v4118_v25 = vpop.xlane.xlu0 %4117  ;;  %v3250_v56 = vmul.f32 %v5529_v2, %v9046_v40  ;;  %v3249_v3 = vmul.f32 %v5529_v2, %v9048_v22  ;;  %v5531_v48 = vpop.eup %5530  ;;  %v9062_v40 = vld [vmem:[#allocation65_spill] sm:$0xff]  ;;  %v9064_v22 = vld [vmem:[#allocation56_spill] sm:$0xff] }
 0x68b   : > { %5540 = vrcp.f32 %v4118_v25  ;;  %4765 = vmatpush1.bf16.xpose.msra.mxu0 %v4764_v45  ;;  %v4216_v37 = vmul.f32 %v5531_v48, %v9049_v6  ;;  %v4215_v7 = vmul.f32 %v5531_v48, %v9051_v28  ;;  %v9065_v6 = vld [vmem:[#allocation60_spill] sm:$0xff]  ;;  %v9067_v28 = vld [vmem:[#allocation53_spill] sm:$0xff] }
 0x68c   : > { %v4121_v33 = vpop.xlane.xlu1 %4120  ;;  %v4702_v30 = vpack.c.bf16 %v3250_v56, %v3248_v58  ;;  %v4704_v5 = vpack.c.bf16 %v3249_v3, %v3247_v57  ;;  %5542 = vrcp.f32 %v3153_v55 }
 0x68d   : > { %v5533_v32 = vpop.eup %5532 }
 0x68e   : > { %4703 = vmatprep.subr.bf16.mxu1 %v4702_v30  ;;  %v3156_v49 = vpop.xlane.xlu0 %3155  ;;  %v4218_v42 = vmul.f32 %v5533_v32, %v9050_v53  ;;  %v4217_v10 = vmul.f32 %v5533_v32, %v9052_v8  ;;  %v5535_v4 = vpop.eup %5534  ;;  %v9066_v53 = vld [vmem:[#allocation63_spill] sm:$0xff]  ;;  %v9068_v8 = vld [vmem:[#allocation68_spill] sm:$0xff] }
 0x68f   : > { %5544 = vrcp.f32 %v3156_v49  ;;  %4705 = vmatpush1.bf16.xpose.msra.mxu1 %v4704_v5  ;;  %v3252_v15 = vmul.f32 %v5535_v4, %v9053_v14  ;;  %v3251_v43 = vmul.f32 %v5535_v4, %v9055_v24  ;;  %v9069_v14 = vld [vmem:[#allocation62_spill] sm:$0xff] }
 0x690   : > { %v3159_v31 = vpop.xlane.xlu1 %3158  ;;  %v4766_v18 = vpack.c.bf16 %v4218_v42, %v4216_v37  ;;  %v4768_v47 = vpack.c.bf16 %v4217_v10, %v4215_v7  ;;  %5546 = vrcp.f32 %v4121_v33 }
 0x691   : > { %v5537_v17 = vpop.eup %5536 }
 0x692   : > { %4767 = vmatprep.subr.bf16.mxu0 %v4766_v18  ;;  %v4124_v13 = vpop.xlane.xlu0 %4123  ;;  %v3254_v27 = vmul.f32 %v5537_v17, %v9054_v52  ;;  %v3253_v1 = vmul.f32 %v5537_v17, %v9056_v46  ;;  %v5539_v44 = vpop.eup %5538 }
 0x693   : > { %5548 = vrcp.f32 %v4124_v13  ;;  %4769 = vmatpush1.bf16.xpose.msra.mxu0 %v4768_v47  ;;  %v4220_v61 = vmul.f32 %v5539_v44, %v9057_v12  ;;  %v4219_v50 = vmul.f32 %v5539_v44, %v9059_v34  ;;  %v9071_v12 = vld [vmem:[#allocation3_spill] sm:$0xff] }
 0x694   : > { %v4127_v16 = vpop.xlane.xlu1 %4126  ;;  %v4706_v59 = vpack.c.bf16 %v3254_v27, %v3252_v15  ;;  %v4708_v19 = vpack.c.bf16 %v3253_v1, %v3251_v43  ;;  %5550 = vrcp.f32 %v3159_v31  ;;  %v9070_v27 = vld [vmem:[#allocation58_spill] sm:$0xff] }
 0x695   : > { %v5541_v60 = vpop.eup %5540 }
 0x696   : > { %4707 = vmatprep.subr.bf16.mxu1 %v4706_v59  ;;  %v3162_v11 = vpop.xlane.xlu0 %3161  ;;  %v4222_v51 = vmul.f32 %v5541_v60, %v9058_v54  ;;  %v4221_v35 = vmul.f32 %v5541_v60, %v9060_v21  ;;  %v5543_v29 = vpop.eup %5542  ;;  %v9072_v21 = vld [vmem:[#allocation14_spill] sm:$0xff] }
 0x697   : > { %5552 = vrcp.f32 %v3162_v11  ;;  %4709 = vmatpush1.bf16.xpose.msra.mxu1 %v4708_v19  ;;  %v3256_v58 = vmul.f32 %v5543_v29, %v9061_v39  ;;  %v3255_v57 = vmul.f32 %v5543_v29, %v9063_v63 }
 0x698   : > { %v3165_v55 = vpop.xlane.xlu1 %3164  ;;  %v4770_v41 = vpack.c.bf16 %v4222_v51, %v4220_v61  ;;  %v4772_v45 = vpack.c.bf16 %v4221_v35, %v4219_v50  ;;  %5554 = vrcp.f32 %v4127_v16 }
 0x699   : > { %v5545_v2 = vpop.eup %5544 }
 0x69a   : > { %4771 = vmatprep.subr.bf16.mxu0 %v4770_v41  ;;  %v4130_v25 = vpop.xlane.xlu0 %4129  ;;  %v3258_v56 = vmul.f32 %v5545_v2, %v9062_v40  ;;  %v3257_v3 = vmul.f32 %v5545_v2, %v9064_v22  ;;  %v5547_v48 = vpop.eup %5546  ;;  %v9073_v41 = vld [vmem:[#allocation5_spill] sm:$0xff] }
 0x69b   : > { %5556 = vrcp.f32 %v4130_v25  ;;  %4773 = vmatpush1.bf16.xpose.msra.mxu0 %v4772_v45  ;;  %v4224_v37 = vmul.f32 %v5547_v48, %v9065_v6  ;;  %v4223_v7 = vmul.f32 %v5547_v48, %v9067_v28  ;;  %v9077_v22 = vld [vmem:[#allocation69_spill] sm:$0xff] }
 0x69c   : > { %v4133_v33 = vpop.xlane.xlu1 %4132  ;;  %v4710_v30 = vpack.c.bf16 %v3258_v56, %v3256_v58  ;;  %v4712_v5 = vpack.c.bf16 %v3257_v3, %v3255_v57  ;;  %5558 = vrcp.f32 %v3165_v55  ;;  %v9074_v58 = vld [vmem:[#allocation67_spill] sm:$0xff]  ;;  %v9075_v56 = vld [vmem:[#allocation76_spill] sm:$0xff]  ;;  %v9076_v57 = vld [vmem:[#allocation61_spill] sm:$0xff] }
 0x69d   : > { %v5549_v32 = vpop.eup %5548 }
 0x69e   : > { %4711 = vmatprep.subr.bf16.mxu1 %v4710_v30  ;;  %v3168_v49 = vpop.xlane.xlu0 %3167  ;;  %v4226_v42 = vmul.f32 %v5549_v32, %v9066_v53  ;;  %v4225_v10 = vmul.f32 %v5549_v32, %v9068_v8  ;;  %v5551_v4 = vpop.eup %5550  ;;  %v9082_v8 = vld [vmem:[#allocation16_spill] sm:$0xff] }
 0x69f   : > { %5560 = vrcp.f32 %v3168_v49  ;;  %4713 = vmatpush1.bf16.xpose.msra.mxu1 %v4712_v5  ;;  %v3260_v15 = vmul.f32 %v5551_v4, %v9069_v14  ;;  %v3259_v24 = vmul.f32 %v5551_v4, %v9070_v27  ;;  %v9078_v5 = vld [vmem:[#allocation73_spill] sm:$0xff]  ;;  %v9079_v49 = vld [vmem:[#allocation75_spill] sm:$0xff]  ;;  %v9086_v27 = vld [vmem:[#allocation72_spill] sm:$0xff] }
 0x6a0   : > { %v3171_v31 = vpop.xlane.xlu1 %3170  ;;  %v4774_v18 = vpack.c.bf16 %v4226_v42, %v4224_v37  ;;  %v4776_v47 = vpack.c.bf16 %v4225_v10, %v4223_v7  ;;  %5562 = vrcp.f32 %v4133_v33  ;;  %v9080_v37 = vld [vmem:[#allocation64_spill] sm:$0xff]  ;;  %v9081_v42 = vld [vmem:[#allocation71_spill] sm:$0xff] }
 0x6a1   : > { %v5553_v17 = vpop.eup %5552 }
 0x6a2   : > { %4775 = vmatprep.subr.bf16.mxu0 %v4774_v18  ;;  %v4136_v13 = vpop.xlane.xlu0 %4135  ;;  %v3262_v52 = vmul.f32 %v5553_v17, %v7890_v62  ;;  %v3261_v43 = vmul.f32 %v5553_v17, %v7885_v38  ;;  %v5555_v46 = vpop.eup %5554 }
 0x6a3   : > { %5564 = vrcp.f32 %v4136_v13  ;;  %4777 = vmatpush1.bf16.xpose.msra.mxu0 %v4776_v47  ;;  %v4228_v60 = vmul.f32 %v5555_v46, %v7881_v20  ;;  %v4227_v62 = vmul.f32 %v5555_v46, %v9071_v12  ;;  %v9083_v47 = vld [vmem:[#allocation70_spill] sm:$0xff]  ;;  %v9084_v13 = vld [vmem:[#allocation81_spill] sm:$0xff] }
 0x6a4   : > { %v4139_v1 = vpop.xlane.xlu1 %4138  ;;  %v4714_v44 = vpack.c.bf16 %v3262_v52, %v3260_v15  ;;  %v4716_v16 = vpack.c.bf16 %v3261_v43, %v3259_v24  ;;  %5566 = vrcp.f32 %v3171_v31  ;;  %v9085_v15 = vld [vmem:[#allocation66_spill] sm:$0xff] }
 0x6a5   : > { %v5557_v59 = vpop.eup %5556 }
 0x6a6   : > { %4715 = vmatprep.subr.bf16.mxu1 %v4714_v44  ;;  %v3174_v19 = vpop.xlane.xlu0 %3173  ;;  %v4230_v11 = vmul.f32 %v5557_v59, %v7907_v9  ;;  %v4229_v61 = vmul.f32 %v5557_v59, %v7901_v0  ;;  %v5559_v54 = vpop.eup %5558 }
 0x6a7   : > { %5568 = vrcp.f32 %v3174_v19  ;;  %4717 = vmatpush1.bf16.xpose.msra.mxu1 %v4716_v16  ;;  %v3264_v20 = vmul.f32 %v5559_v54, %v7897_v26  ;;  %v3263_v55 = vmul.f32 %v5559_v54, %v7895_v23  ;;  %v9088_v16 = vld [vmem:[#allocation15_spill] sm:$0xff] }
 0x6a8   : > { %v256_v38 = vpop.permute.xlu1 %255  ;;  %v4778_v51 = vpack.c.bf16 %v4230_v11, %v4228_v60  ;;  %v4780_v34 = vpack.c.bf16 %v4229_v61, %v4227_v62  ;;  %5570 = vrcp.f32 %v4139_v1  ;;  %v9087_v1 = vld [vmem:[#allocation13_spill] sm:$0xff] }
 0x6a9   : > { %v5561_v50 = vpop.eup %5560  ;;  %v429_v35 = vadd.f32 %v9072_v21, %v256_v38  ;;  %v427_v44 = vadd.f32 %v9087_v1, %v256_v38 }
 0x6aa   : > { %4779 = vmatprep.subr.bf16.mxu0 %v4778_v51  ;;  %v4142_v29 = vpop.xlane.xlu0 %4141  ;;  %v3266_v9 = vmul.f32 %v5561_v50, %v7919_v36  ;;  %v3265_v0 = vmul.f32 %v5561_v50, %v9073_v41  ;;  %v5563_v45 = vpop.eup %5562 }
 0x6ab   : > { %5572 = vrcp.f32 %v4142_v29  ;;  %4781 = vmatpush1.bf16.xpose.msra.mxu0 %v4780_v34  ;;  %3335 = vmatprep.mubr.f32.mxu1 %v429_v35  ;;  %v4232_v40 = vmul.f32 %v5563_v45, %v9074_v58  ;;  %v4231_v26 = vmul.f32 %v5563_v45, %v9076_v57 }
 0x6ac   : > { %v4718_v2 = vpack.c.bf16 %v3266_v9, %v3264_v20  ;;  %v4720_v25 = vpack.c.bf16 %v3265_v0, %v3263_v55 }
 0x6ad   : > { %v5565_v39 = vpop.eup %5564 }
 0x6ae   : > { %4719 = vmatprep.subr.bf16.mxu1 %v4718_v2  ;;  %v4234_v63 = vmul.f32 %v5565_v39, %v9075_v56  ;;  %v4233_v36 = vmul.f32 %v5565_v39, %v9077_v22  ;;  %v5567_v3 = vpop.eup %5566 }
 0x6af   : > { %4721 = vmatpush1.bf16.xpose.msra.mxu1 %v4720_v25  ;;  %v3268_v32 = vmul.f32 %v5567_v3, %v9078_v5  ;;  %v3267_v53 = vmul.f32 %v5567_v3, %v9080_v37 }
 0x6b0   : > { %v4782_v23 = vpack.c.bf16 %v4234_v63, %v4232_v40  ;;  %v4784_v48 = vpack.c.bf16 %v4233_v36, %v4231_v26 }
 0x6b1   : > { %v5569_v33 = vpop.eup %5568 }
 0x6b2   : > { %4783 = vmatprep.subr.bf16.mxu0 %v4782_v23  ;;  %v261_v30 = vpop.permute.xlu0 %260  ;;  %v3270_v6 = vmul.f32 %v5569_v33, %v9079_v49  ;;  %v3269_v28 = vmul.f32 %v5569_v33, %v9081_v42  ;;  %v5571_v7 = vpop.eup %5570 }
 0x6b3   : > { %v435_v10 = vadd.f32 %v9082_v8, %v261_v30  ;;  %4785 = vmatpush1.bf16.xpose.msra.mxu0 %v4784_v48  ;;  %v4236_v17 = vmul.f32 %v5571_v7, %v9083_v47  ;;  %v4235_v52 = vmul.f32 %v5571_v7, %v9085_v15  ;;  %v433_v59 = vadd.f32 %v9088_v16, %v261_v30 }
 0x6b4   : > { %v4722_v4 = vpack.c.bf16 %v3270_v6, %v3268_v32  ;;  %v4724_v31 = vpack.c.bf16 %v3269_v28, %v3267_v53 }
 0x6b5   : > { %v5573_v18 = vpop.eup %5572  ;;  %4303 = vmatprep.mubr.f32.mxu0 %v435_v10 }
 0x6b6   : > { %4723 = vmatprep.subr.bf16.mxu1 %v4722_v4  ;;  %v4238_v14 = vmul.f32 %v5573_v18, %v9084_v13  ;;  %v4237_v24 = vmul.f32 %v5573_v18, %v9086_v27 }
 0x6b7   : > { %4725 = vmatpush1.bf16.xpose.msra.mxu1 %v4724_v31 }
 0x6b8   : > { %v4786_v43 = vpack.c.bf16 %v4238_v14, %v4236_v17  ;;  %v4788_v46 = vpack.c.bf16 %v4237_v24, %v4235_v52 }
 0x6ba   : > { %4787 = vmatprep.subr.bf16.mxu0 %v4786_v43 }
 0x6bb   : > { %4789 = vmatpush1.bf16.xpose.msra.mxu0 %v4788_v46 }
 0x6be   : > { %3336 = vmatmul.mubr.f32.vlgmr.msra.gmra.mrb[142].mxu1 %v427_v44 }
 0x6c2   : > { %4304 = vmatmul.mubr.f32.vlgmr.msra.gmra.mrb[142].mxu0 %v433_v59 }
 0x791   : > { %v3337_v19 = vpop.f32.mrb[142].mxu1 }
 0x792   : > { %4314 = vst [vmem:[%s7051_s15 + $0x20] sm:$0xff] %v3337_v19  ;;  %v3339_v60 = vpop.f32.mrb[143].mxu1 }
 0x793   : > { %4315 = vst [vmem:[%s7051_s15 + $0x28] sm:$0xff] %v3339_v60 }
 0x795   : > { %v4305_v11 = vpop.f32.mrb[142].mxu0 }
 0x796   : > { %4316 = vst [vmem:[%s7051_s15 + $0x30] sm:$0xff] %v4305_v11  ;;  %v4307_v12 = vpop.f32.mrb[143].mxu0 }
 0x797   : > { %4317 = vst [vmem:[%s7051_s15 + $0x38] sm:$0xff] %v4307_v12 }
 0x798 PF: > { %s13_s12 = sadd.s32 1, %s5580_s12  }
 0x799   : > { %p10_p4 = scmp.ge.s32.totalorder %s13_s12, 4  }
 0x79b   :  { %12 = sbr.rel (!%p10_p4) target bundleno = 1 (0x1), region = 62 }

</bundles_post_ra>
